<compile_context>
chip_gen: v7x
topology: tpu7x:2x2x1
jax: 0.10.0
libtpu: 0.0.40
codegen_flags: <defaults>
</compile_context>

<pallas_src>
import functools

import jax
import jax.numpy as jnp
from jax import lax
from jax.experimental import pallas as pl
from jax.experimental.pallas import tpu as pltpu

NUM_TIMESTEP = 1000
TIME_EMBED_DIM = 32
BN_EPS = 1e-5

_VMEM = pl.BlockSpec(memory_space=pltpu.MemorySpace.VMEM)


def _round_up(x, m):
    return (x + m - 1) // m * m


def _parity_tap(p, k):
    """High-res output parity p in {0,1} and 3x3 tap index k in {0,1,2} ->
    (source parity plane, low-res spatial offset in {-1,0,1})."""
    s = p + k - 1
    return s & 1, s >> 1


def _conv_taps(w_pad):
    """Static tap table taps[q] = ((tap_k, source_plane, flat_lane_shift), ...)
    for output parity plane q = 2*ph + pw of a 3x3 SAME conv decomposed onto
    the four low-res parity planes (shift in the per-image (H+2)*(W+2)
    flattened padded layout, w_pad = W + 2)."""
    taps = []
    for ph in range(2):
        for pw in range(2):
            lst = []
            for k in range(9):
                ky, kx = k // 3, k % 3
                qy, oy = _parity_tap(ph, ky)
                qx, ox = _parity_tap(pw, kx)
                lst.append((k, qy * 2 + qx, oy * w_pad + ox))
            taps.append(tuple(lst))
    return tuple(taps)


def _shift_lanes(x, d, length):
    """out[:, i] = x[:, (i + d) % length] -- static lane rotation (XLU)."""
    s = (-d) % length
    if s == 0:
        return x
    return pltpu.roll(x, shift=s, axis=1)


# ----------------------------------------------------------------------------
# Fused kernel: folded convT + concat + conv0/BN/ReLU + temb + conv1/BN/ReLU
# ----------------------------------------------------------------------------
def _fused_upsample_kernel(z_ref, onehot_ref, temb_ref,
                           w0_ref, wl_ref, bl_ref, g0_ref, b0_ref,
                           w1_ref, g1_ref, b1_ref,
                           o_ref, h_ref, *, taps, n_valid, length):
    # z_ref:      (4, Ct, L)  parity-source planes [x ; 1 ; skip(qy,qx)]
    # onehot_ref: (N, L)      1.0 at valid (interior) lanes of image n
    # temb_ref:   (32, N)     sinusoidal embedding, transposed
    # w0_ref:     (4, 9, Cout, Ct)  convT folded into conv0, per (parity, tap)
    # w1_ref:     (9, Cout, Cout)   conv1 per tap
    # o_ref:      (4, Cout, L)      output planes (also raw-conv1 stats buffer)
    # h_ref:      (4, Cout, L)      VMEM-resident DoubleConv intermediate
    f32 = jnp.float32
    cout = o_ref.shape[1]
    inv_cnt = 1.0 / float(n_valid)

    # lane-validity mask (excludes padding ring and lane-pad tail)
    mask = jnp.sum(onehot_ref[...], axis=0, keepdims=True)            # (1, L)

    # time-embedding projection + per-image lane broadcast (hoisted, on MXU;
    # zero at invalid lanes by construction of the one-hot)
    tproj = jnp.dot(wl_ref[...], temb_ref[...],
                    preferred_element_type=f32) + bl_ref[...]         # (Cout, N)
    temb_b = jnp.dot(tproj, onehot_ref[...],
                     preferred_element_type=f32)                      # (Cout, L)

    # ---- stage 1: folded convT + skip concat + conv0 -----------------------
    s0 = jnp.zeros((cout, 1), f32)
    for q in range(4):
        acc = None
        for k, src, d in taps[q]:
            y = jnp.dot(w0_ref[q, k], z_ref[src], preferred_element_type=f32)
            y = _shift_lanes(y, d, length)        # spatial tap shift (XLU)
            acc = y if acc is None else acc + y
        h_ref[q] = acc                            # raw conv0, ref-resident
        s0 = s0 + jnp.sum(acc * mask, axis=1, keepdims=True)
    mean0 = s0 * inv_cnt
    v0 = jnp.zeros((cout, 1), f32)
    for q in range(4):                            # two-pass (centered) variance
        c = (h_ref[q] - mean0) * mask
        v0 = v0 + jnp.sum(c * c, axis=1, keepdims=True)
    scale0 = lax.rsqrt(v0 * inv_cnt + BN_EPS) * g0_ref[...]
    shift0 = b0_ref[...] - mean0 * scale0
    for q in range(4):                            # BN + ReLU + temb, in place;
        h_ref[q] = (jnp.maximum(h_ref[q] * scale0 + shift0, 0.0) * mask
                    + temb_b)                     # mask == conv1's zero padding

    # ---- stage 2: conv1 on the VMEM-resident h planes ----------------------
    s1 = jnp.zeros((cout, 1), f32)
    for q in range(4):
        acc = None
        for k, src, d in taps[q]:
            y = jnp.dot(w1_ref[k], h_ref[src], preferred_element_type=f32)
            y = _shift_lanes(y, d, length)
            acc = y if acc is None else acc + y
        o_ref[q] = acc                            # raw conv1 parked in output ref
        s1 = s1 + jnp.sum(acc * mask, axis=1, keepdims=True)
    mean1 = s1 * inv_cnt
    v1 = jnp.zeros((cout, 1), f32)
    for q in range(4):
        c = (o_ref[q] - mean1) * mask
        v1 = v1 + jnp.sum(c * c, axis=1, keepdims=True)
    scale1 = lax.rsqrt(v1 * inv_cnt + BN_EPS) * g1_ref[...]
    shift1 = b1_ref[...] - mean1 * scale1
    for q in range(4):
        o_ref[q] = jnp.maximum(o_ref[q] * scale1 + shift1, 0.0)


# ----------------------------------------------------------------------------
# One-time parameter folding / relayout
# ----------------------------------------------------------------------------
def prep_params(p):
    """Fold ConvTranspose2d(k=2,s=2) into conv0.  For output parity (ph,pw)
    and conv0 tap (ky,kx), the effective (Cout, Ct) weight on the low-res
    augmented input [x ; 1 ; skip_plane(qy,qx)] is
      [ W0_u[ky,kx] @ Wt[:,:,qy,qx]^T | W0_u[ky,kx] @ b_t | W0_skip[ky,kx] ]."""
    w_t, b_t = p["w_t"], p["b_t"]                 # (Cin, Cout, 2, 2), (Cout,)
    w0, w1 = p["w_conv0"], p["w_conv1"]           # (Cout, Cin, 3, 3), (Cout, Cout, 3, 3)
    cout = w_t.shape[1]

    planes = []
    for ph in range(2):
        for pw in range(2):
            per_tap = []
            for ky in range(3):
                for kx in range(3):
                    qy, _ = _parity_tap(ph, ky)
                    qx, _ = _parity_tap(pw, kx)
                    w0u = w0[:, :cout, ky, kx]               # (Cout, Cout_t)
                    w0s = w0[:, cout:, ky, kx]               # (Cout, Cskip)
                    a = w0u @ w_t[:, :, qy, qx].T            # (Cout, Cin)
                    b = (w0u @ b_t)[:, None]                 # (Cout, 1)  ones chan
                    per_tap.append(jnp.concatenate([a, b, w0s], axis=1))
            planes.append(jnp.stack(per_tap, axis=0))        # (9, Cout, Ct)
    w0_eff = jnp.stack(planes, axis=0)                       # (4, 9, Cout, Ct)

    w1_eff = jnp.stack([w1[:, :, k // 3, k % 3] for k in range(9)], axis=0)

    return {
        "w0_eff": w0_eff, "w1_eff": w1_eff,
        "wl": p["w_lin"], "bl": p["b_lin"][:, None],
        "g0": p["gamma0"][:, None], "be0": p["beta0"][:, None],
        "g1": p["gamma1"][:, None], "be1": p["beta1"][:, None],
    }


def time_embedding(t):
    """Sinusoidal embedding, identical to TimeEmbedding()[t]; t: (N,) int."""
    i = jnp.arange(0, TIME_EMBED_DIM, 2, dtype=jnp.float32)
    denom = jnp.power(10000.0, i / TIME_EMBED_DIM)
    pos = t.astype(jnp.float32)[:, None]
    stacked = jnp.stack([jnp.sin(pos / denom), jnp.cos(pos / denom)], axis=2)
    return stacked.reshape(t.shape[0], TIME_EMBED_DIM)


def _padded_vmem_bytes(*shapes, itemsize=4):
    """(8,128)-tile-padded f32 footprint of the given array shapes."""
    total = 0
    for s in shapes:
        lanes = _round_up(s[-1], 128)
        subl = _round_up(s[-2] if len(s) > 1 else 1, 8)
        lead = 1
        for d in s[:-2]:
            lead *= d
        total += lead * subl * lanes * itemsize
    return total


# ----------------------------------------------------------------------------
# Forward wrapper: only input/output relayouts live outside the kernel
# ----------------------------------------------------------------------------
def upsample_forward(x, t, connection, prep):
    N, cin, H, W = x.shape
    cout = prep["g0"].shape[0]
    ct = cin + 1 + connection.shape[1]
    hp, wp = H + 2, W + 2
    lp = hp * wp
    L = _round_up(N * lp, 128)                    # lane-dense flattened spatial
    f32 = jnp.float32

    # 4 parity-source planes [x ; 1 ; skip(qy::2, qx::2)], channels-first,
    # zero-ring padded and flattened with spatial in lanes (pure layout; fused
    # by XLA into the HBM reads it performs anyway).
    xf = x.astype(f32)
    ones = jnp.ones((N, 1, H, W), f32)
    cf = connection.astype(f32)
    planes = []
    for qy in range(2):
        for qx in range(2):
            pq = jnp.concatenate([xf, ones, cf[:, :, qy::2, qx::2]], axis=1)
            pq = jnp.pad(pq, ((0, 0), (0, 0), (1, 1), (1, 1)))      # (N,Ct,Hp,Wp)
            planes.append(jnp.transpose(pq, (1, 0, 2, 3)).reshape(ct, N * lp))
    z = jnp.stack(planes, axis=0)                                   # (4,Ct,N*Lp)
    z = jnp.pad(z, ((0, 0), (0, 0), (0, L - N * lp)))

    # per-image validity one-hot (drives BN masking, temb broadcast, conv1 pad)
    valid = jnp.zeros((hp, wp), f32).at[1:H + 1, 1:W + 1].set(1.0).reshape(1, lp)
    onehot = jnp.pad(jnp.kron(jnp.eye(N, dtype=f32), valid),
                     ((0, 0), (0, L - N * lp)))                     # (N, L)

    temb_t = time_embedding(t).T                                    # (32, N)

    kernel = functools.partial(
        _fused_upsample_kernel,
        taps=_conv_taps(wp), n_valid=4 * N * H * W, length=L)

    # VMEM budget from actual padded footprints (+ headroom), capped for v7x.
    footprint = _padded_vmem_bytes(
        z.shape, onehot.shape, temb_t.shape,
        prep["w0_eff"].shape, prep["wl"].shape, prep["bl"].shape,
        prep["g0"].shape, prep["be0"].shape,
        prep["w1_eff"].shape, prep["g1"].shape, prep["be1"].shape,
        (4, cout, L), (4, cout, L))
    vmem_limit = int(min(max(4 * footprint, 8 << 20), 48 << 20))

    planes_out = pl.pallas_call(
        kernel,
        out_shape=jax.ShapeDtypeStruct((4, cout, L), f32),
        in_specs=[_VMEM] * 11,
        out_specs=_VMEM,
        scratch_shapes=[pltpu.VMEM((4, cout, L), f32)],
        compiler_params=pltpu.CompilerParams(vmem_limit_bytes=vmem_limit),
    )(z, onehot, temb_t,
      prep["w0_eff"], prep["wl"], prep["bl"], prep["g0"], prep["be0"],
      prep["w1_eff"], prep["g1"], prep["be1"])

    # (q=2*ph+pw, c, n*Lp + (h+1)*Wp + (w+1)) -> NCHW (n, c, 2h+ph, 2w+pw)
    out = planes_out[:, :, :N * lp].reshape(2, 2, cout, N, hp, wp)
    out = out[:, :, :, :, 1:H + 1, 1:W + 1]
    out = jnp.transpose(out, (3, 2, 4, 0, 5, 1)).reshape(N, cout, 2 * H, 2 * W)
    return out


# ----------------------------------------------------------------------------
# Pure-JAX reference (independent formulation) for a sanity check
# ----------------------------------------------------------------------------
def upsample_ref(x, t, connection, p):
    N, cin, H, W = x.shape
    cout = p["b_t"].shape[0]
    xh = jnp.transpose(x, (0, 2, 3, 1)).astype(jnp.float32)
    ch = jnp.transpose(connection, (0, 2, 3, 1)).astype(jnp.float32)

    blk = jnp.einsum("nhwc,cokl->nhwklo", xh, p["w_t"],
                     precision=lax.Precision.HIGHEST)          # (N,H,W,2,2,Co)
    y = blk.transpose(0, 1, 3, 2, 4, 5).reshape(N, 2 * H, 2 * W, cout) + p["b_t"]
    xcat = jnp.concatenate([y, ch], axis=-1)

    def conv3(xin, w):
        return lax.conv_general_dilated(
            xin, w, (1, 1), "SAME",
            dimension_numbers=("NHWC", "OIHW", "NHWC"),
            precision=lax.Precision.HIGHEST)

    def bn(xin, g, b):
        m = jnp.mean(xin, axis=(0, 1, 2), keepdims=True)
        v = jnp.mean(jnp.square(xin - m), axis=(0, 1, 2), keepdims=True)
        return (xin - m) * lax.rsqrt(v + BN_EPS) * g + b

    h = jnp.maximum(bn(conv3(xcat, p["w_conv0"]), p["gamma0"], p["beta0"]), 0.0)
    temb = time_embedding(t) @ p["w_lin"].T + p["b_lin"]
    h = h + temb[:, None, None, :]
    out = jnp.maximum(bn(conv3(h, p["w_conv1"]), p["gamma1"], p["beta1"]), 0.0)
    return jnp.transpose(out, (0, 3, 1, 2))


# ----------------------------------------------------------------------------
if __name__ == "__main__":
    in_channel, out_channel = 8, 4
    N, H, W = 2, 8, 8                          # x: (2, 8, 8, 8) NCHW (low-res)
    skip_channels = in_channel - out_channel   # concat back to in_channel

    key = jax.random.PRNGKey(0)
    ks = jax.random.split(key, 13)
    params = {
        # ConvTranspose2d(in=8, out=4, k=2, s=2): weight (in, out, 2, 2), bias (out,)
        "w_t": 0.1 * jax.random.normal(ks[0], (in_channel, out_channel, 2, 2), jnp.float32),
        "b_t": 0.1 * jax.random.normal(ks[1], (out_channel,), jnp.float32),
        # DoubleConv(in=8, out=4)
        "w_conv0": 0.1 * jax.random.normal(ks[2], (out_channel, in_channel, 3, 3), jnp.float32),
        "gamma0": 1.0 + 0.1 * jax.random.normal(ks[3], (out_channel,), jnp.float32),
        "beta0": 0.1 * jax.random.normal(ks[4], (out_channel,), jnp.float32),
        "w_lin": 0.1 * jax.random.normal(ks[5], (out_channel, TIME_EMBED_DIM), jnp.float32),
        "b_lin": 0.1 * jax.random.normal(ks[6], (out_channel,), jnp.float32),
        "w_conv1": 0.1 * jax.random.normal(ks[7], (out_channel, out_channel, 3, 3), jnp.float32),
        "gamma1": 1.0 + 0.1 * jax.random.normal(ks[8], (out_channel,), jnp.float32),
        "beta1": 0.1 * jax.random.normal(ks[9], (out_channel,), jnp.float32),
    }

    x = jax.random.normal(ks[10], (N, in_channel, H, W), jnp.float32)
    connection = jax.random.normal(ks[11], (N, skip_channels, 2 * H, 2 * W), jnp.float32)
    t = jnp.array([3, 17], dtype=jnp.int32)

    prep = prep_params(params)                 # weight folding done ONCE
    out = jax.jit(upsample_forward)(x, t, connection, prep)
    out = jax.block_until_ready(out)

    ref = jax.block_until_ready(upsample_ref(x, t, connection, params))
    assert out.shape == (N, out_channel, 2 * H, 2 * W), out.shape
    err = float(jnp.max(jnp.abs(out - ref)))
    assert jnp.allclose(out, ref, rtol=1e-2, atol=1e-2), err

    print("KERNEL_OK")
</pallas_src>

<mosaic_0001>
module attributes {stable_mosaic.version = 11 : i64} {
  func.func @_fused_upsample_kernel(%arg0: memref<4x13x256xf32, #tpu.memory_space<vmem>>, %arg1: memref<2x256xf32, #tpu.memory_space<vmem>>, %arg2: memref<32x2xf32, #tpu.memory_space<vmem>>, %arg3: memref<4x9x4x13xf32, #tpu.memory_space<vmem>>, %arg4: memref<4x32xf32, #tpu.memory_space<vmem>>, %arg5: memref<4x1xf32, #tpu.memory_space<vmem>>, %arg6: memref<4x1xf32, #tpu.memory_space<vmem>>, %arg7: memref<4x1xf32, #tpu.memory_space<vmem>>, %arg8: memref<9x4x4xf32, #tpu.memory_space<vmem>>, %arg9: memref<4x1xf32, #tpu.memory_space<vmem>>, %arg10: memref<4x1xf32, #tpu.memory_space<vmem>>, %arg11: memref<4x4x256xf32, #tpu.memory_space<vmem>>, %arg12: memref<4x4x256xf32, #tpu.memory_space<vmem>>) attributes {dimension_semantics = [], scalar_prefetch = 0 : i64, scratch_operands = 1 : i64, tpu.core_type = #tpu.core_type<tc>} {
    %c0 = arith.constant 0 : index
    %c0_0 = arith.constant 0 : index
    %0 = vector.load %arg1[%c0, %c0_0] : memref<2x256xf32, #tpu.memory_space<vmem>>, vector<2x256xf32>
    %cst = arith.constant dense<0.000000e+00> : vector<256xf32>
    %1 = vector.multi_reduction <add>, %0, %cst [0] : vector<2x256xf32> to vector<256xf32>
    %2 = vector.shape_cast %1 : vector<256xf32> to vector<1x256xf32>
    %c0_1 = arith.constant 0 : index
    %c0_2 = arith.constant 0 : index
    %3 = vector.load %arg4[%c0_1, %c0_2] : memref<4x32xf32, #tpu.memory_space<vmem>>, vector<4x32xf32>
    %c0_3 = arith.constant 0 : index
    %c0_4 = arith.constant 0 : index
    %4 = vector.load %arg2[%c0_3, %c0_4] : memref<32x2xf32, #tpu.memory_space<vmem>>, vector<32x2xf32>
    %cst_5 = arith.constant dense<0.000000e+00> : vector<4x2xf32>
    %5 = tpu.matmul %3, %4, %cst_5 {dimension_numbers = #tpu.dot_dimension_numbers<[1], [0], [0], [1], [0, 0, 1, 1], [], []>} : vector<4x32xf32>, vector<32x2xf32>, vector<4x2xf32> -> vector<4x2xf32>
    %c0_6 = arith.constant 0 : index
    %c0_7 = arith.constant 0 : index
    %6 = vector.load %arg5[%c0_6, %c0_7] : memref<4x1xf32, #tpu.memory_space<vmem>>, vector<4x1xf32>
    %7 = vector.broadcast %6 : vector<4x1xf32> to vector<4x2xf32>
    %8 = arith.addf %5, %7 : vector<4x2xf32>
    %c0_8 = arith.constant 0 : index
    %c0_9 = arith.constant 0 : index
    %9 = vector.load %arg1[%c0_8, %c0_9] : memref<2x256xf32, #tpu.memory_space<vmem>>, vector<2x256xf32>
    %cst_10 = arith.constant dense<0.000000e+00> : vector<4x256xf32>
    %10 = tpu.matmul %8, %9, %cst_10 {dimension_numbers = #tpu.dot_dimension_numbers<[1], [0], [0], [1], [0, 0, 1, 1], [], []>} : vector<4x2xf32>, vector<2x256xf32>, vector<4x256xf32> -> vector<4x256xf32>
    %cst_11 = arith.constant 0.000000e+00 : f32
    %11 = vector.broadcast %cst_11 : f32 to vector<4x1xf32>
    %c0_12 = arith.constant 0 : index
    %c0_13 = arith.constant 0 : index
    %c0_14 = arith.constant 0 : index
    %c0_15 = arith.constant 0 : index
    %12 = vector.load %arg3[%c0_12, %c0_13, %c0_14, %c0_15] : memref<4x9x4x13xf32, #tpu.memory_space<vmem>>, vector<1x1x4x13xf32>
    %13 = vector.shape_cast %12 : vector<1x1x4x13xf32> to vector<4x13xf32>
    %c3 = arith.constant 3 : index
    %c0_16 = arith.constant 0 : index
    %c0_17 = arith.constant 0 : index
    %14 = vector.load %arg0[%c3, %c0_16, %c0_17] : memref<4x13x256xf32, #tpu.memory_space<vmem>>, vector<1x13x256xf32>
    %15 = vector.shape_cast %14 : vector<1x13x256xf32> to vector<13x256xf32>
    %cst_18 = arith.constant dense<0.000000e+00> : vector<4x256xf32>
    %16 = tpu.matmul %13, %15, %cst_18 {dimension_numbers = #tpu.dot_dimension_numbers<[1], [0], [0], [1], [0, 0, 1, 1], [], []>} : vector<4x13xf32>, vector<13x256xf32>, vector<4x256xf32> -> vector<4x256xf32>
    %c11_i32 = arith.constant 11 : i32
    %17 = tpu.dynamic_rotate %16 by %c11_i32 dim 1 : vector<4x256xf32>, i32 -> vector<4x256xf32>
    %c0_19 = arith.constant 0 : index
    %c1 = arith.constant 1 : index
    %c0_20 = arith.constant 0 : index
    %c0_21 = arith.constant 0 : index
    %18 = vector.load %arg3[%c0_19, %c1, %c0_20, %c0_21] : memref<4x9x4x13xf32, #tpu.memory_space<vmem>>, vector<1x1x4x13xf32>
    %19 = vector.shape_cast %18 : vector<1x1x4x13xf32> to vector<4x13xf32>
    %c2 = arith.constant 2 : index
    %c0_22 = arith.constant 0 : index
    %c0_23 = arith.constant 0 : index
    %20 = vector.load %arg0[%c2, %c0_22, %c0_23] : memref<4x13x256xf32, #tpu.memory_space<vmem>>, vector<1x13x256xf32>
    %21 = vector.shape_cast %20 : vector<1x13x256xf32> to vector<13x256xf32>
    %cst_24 = arith.constant dense<0.000000e+00> : vector<4x256xf32>
    %22 = tpu.matmul %19, %21, %cst_24 {dimension_numbers = #tpu.dot_dimension_numbers<[1], [0], [0], [1], [0, 0, 1, 1], [], []>} : vector<4x13xf32>, vector<13x256xf32>, vector<4x256xf32> -> vector<4x256xf32>
    %c10_i32 = arith.constant 10 : i32
    %23 = tpu.dynamic_rotate %22 by %c10_i32 dim 1 : vector<4x256xf32>, i32 -> vector<4x256xf32>
    %24 = arith.addf %17, %23 : vector<4x256xf32>
    %c0_25 = arith.constant 0 : index
    %c2_26 = arith.constant 2 : index
    %c0_27 = arith.constant 0 : index
    %c0_28 = arith.constant 0 : index
    %25 = vector.load %arg3[%c0_25, %c2_26, %c0_27, %c0_28] : memref<4x9x4x13xf32, #tpu.memory_space<vmem>>, vector<1x1x4x13xf32>
    %26 = vector.shape_cast %25 : vector<1x1x4x13xf32> to vector<4x13xf32>
    %c3_29 = arith.constant 3 : index
    %c0_30 = arith.constant 0 : index
    %c0_31 = arith.constant 0 : index
    %27 = vector.load %arg0[%c3_29, %c0_30, %c0_31] : memref<4x13x256xf32, #tpu.memory_space<vmem>>, vector<1x13x256xf32>
    %28 = vector.shape_cast %27 : vector<1x13x256xf32> to vector<13x256xf32>
    %cst_32 = arith.constant dense<0.000000e+00> : vector<4x256xf32>
    %29 = tpu.matmul %26, %28, %cst_32 {dimension_numbers = #tpu.dot_dimension_numbers<[1], [0], [0], [1], [0, 0, 1, 1], [], []>} : vector<4x13xf32>, vector<13x256xf32>, vector<4x256xf32> -> vector<4x256xf32>
    %c10_i32_33 = arith.constant 10 : i32
    %30 = tpu.dynamic_rotate %29 by %c10_i32_33 dim 1 : vector<4x256xf32>, i32 -> vector<4x256xf32>
    %31 = arith.addf %24, %30 : vector<4x256xf32>
    %c0_34 = arith.constant 0 : index
    %c3_35 = arith.constant 3 : index
    %c0_36 = arith.constant 0 : index
    %c0_37 = arith.constant 0 : index
    %32 = vector.load %arg3[%c0_34, %c3_35, %c0_36, %c0_37] : memref<4x9x4x13xf32, #tpu.memory_space<vmem>>, vector<1x1x4x13xf32>
    %33 = vector.shape_cast %32 : vector<1x1x4x13xf32> to vector<4x13xf32>
    %c1_38 = arith.constant 1 : index
    %c0_39 = arith.constant 0 : index
    %c0_40 = arith.constant 0 : index
    %34 = vector.load %arg0[%c1_38, %c0_39, %c0_40] : memref<4x13x256xf32, #tpu.memory_space<vmem>>, vector<1x13x256xf32>
    %35 = vector.shape_cast %34 : vector<1x13x256xf32> to vector<13x256xf32>
    %cst_41 = arith.constant dense<0.000000e+00> : vector<4x256xf32>
    %36 = tpu.matmul %33, %35, %cst_41 {dimension_numbers = #tpu.dot_dimension_numbers<[1], [0], [0], [1], [0, 0, 1, 1], [], []>} : vector<4x13xf32>, vector<13x256xf32>, vector<4x256xf32> -> vector<4x256xf32>
    %c1_i32 = arith.constant 1 : i32
    %37 = tpu.dynamic_rotate %36 by %c1_i32 dim 1 : vector<4x256xf32>, i32 -> vector<4x256xf32>
    %38 = arith.addf %31, %37 : vector<4x256xf32>
    %c0_42 = arith.constant 0 : index
    %c4 = arith.constant 4 : index
    %c0_43 = arith.constant 0 : index
    %c0_44 = arith.constant 0 : index
    %39 = vector.load %arg3[%c0_42, %c4, %c0_43, %c0_44] : memref<4x9x4x13xf32, #tpu.memory_space<vmem>>, vector<1x1x4x13xf32>
    %40 = vector.shape_cast %39 : vector<1x1x4x13xf32> to vector<4x13xf32>
    %c0_45 = arith.constant 0 : index
    %c0_46 = arith.constant 0 : index
    %c0_47 = arith.constant 0 : index
    %41 = vector.load %arg0[%c0_45, %c0_46, %c0_47] : memref<4x13x256xf32, #tpu.memory_space<vmem>>, vector<1x13x256xf32>
    %42 = vector.shape_cast %41 : vector<1x13x256xf32> to vector<13x256xf32>
    %cst_48 = arith.constant dense<0.000000e+00> : vector<4x256xf32>
    %43 = tpu.matmul %40, %42, %cst_48 {dimension_numbers = #tpu.dot_dimension_numbers<[1], [0], [0], [1], [0, 0, 1, 1], [], []>} : vector<4x13xf32>, vector<13x256xf32>, vector<4x256xf32> -> vector<4x256xf32>
    %44 = arith.addf %38, %43 : vector<4x256xf32>
    %c0_49 = arith.constant 0 : index
    %c5 = arith.constant 5 : index
    %c0_50 = arith.constant 0 : index
    %c0_51 = arith.constant 0 : index
    %45 = vector.load %arg3[%c0_49, %c5, %c0_50, %c0_51] : memref<4x9x4x13xf32, #tpu.memory_space<vmem>>, vector<1x1x4x13xf32>
    %46 = vector.shape_cast %45 : vector<1x1x4x13xf32> to vector<4x13xf32>
    %c1_52 = arith.constant 1 : index
    %c0_53 = arith.constant 0 : index
    %c0_54 = arith.constant 0 : index
    %47 = vector.load %arg0[%c1_52, %c0_53, %c0_54] : memref<4x13x256xf32, #tpu.memory_space<vmem>>, vector<1x13x256xf32>
    %48 = vector.shape_cast %47 : vector<1x13x256xf32> to vector<13x256xf32>
    %cst_55 = arith.constant dense<0.000000e+00> : vector<4x256xf32>
    %49 = tpu.matmul %46, %48, %cst_55 {dimension_numbers = #tpu.dot_dimension_numbers<[1], [0], [0], [1], [0, 0, 1, 1], [], []>} : vector<4x13xf32>, vector<13x256xf32>, vector<4x256xf32> -> vector<4x256xf32>
    %50 = arith.addf %44, %49 : vector<4x256xf32>
    %c0_56 = arith.constant 0 : index
    %c6 = arith.constant 6 : index
    %c0_57 = arith.constant 0 : index
    %c0_58 = arith.constant 0 : index
    %51 = vector.load %arg3[%c0_56, %c6, %c0_57, %c0_58] : memref<4x9x4x13xf32, #tpu.memory_space<vmem>>, vector<1x1x4x13xf32>
    %52 = vector.shape_cast %51 : vector<1x1x4x13xf32> to vector<4x13xf32>
    %c3_59 = arith.constant 3 : index
    %c0_60 = arith.constant 0 : index
    %c0_61 = arith.constant 0 : index
    %53 = vector.load %arg0[%c3_59, %c0_60, %c0_61] : memref<4x13x256xf32, #tpu.memory_space<vmem>>, vector<1x13x256xf32>
    %54 = vector.shape_cast %53 : vector<1x13x256xf32> to vector<13x256xf32>
    %cst_62 = arith.constant dense<0.000000e+00> : vector<4x256xf32>
    %55 = tpu.matmul %52, %54, %cst_62 {dimension_numbers = #tpu.dot_dimension_numbers<[1], [0], [0], [1], [0, 0, 1, 1], [], []>} : vector<4x13xf32>, vector<13x256xf32>, vector<4x256xf32> -> vector<4x256xf32>
    %c1_i32_63 = arith.constant 1 : i32
    %56 = tpu.dynamic_rotate %55 by %c1_i32_63 dim 1 : vector<4x256xf32>, i32 -> vector<4x256xf32>
    %57 = arith.addf %50, %56 : vector<4x256xf32>
    %c0_64 = arith.constant 0 : index
    %c7 = arith.constant 7 : index
    %c0_65 = arith.constant 0 : index
    %c0_66 = arith.constant 0 : index
    %58 = vector.load %arg3[%c0_64, %c7, %c0_65, %c0_66] : memref<4x9x4x13xf32, #tpu.memory_space<vmem>>, vector<1x1x4x13xf32>
    %59 = vector.shape_cast %58 : vector<1x1x4x13xf32> to vector<4x13xf32>
    %c2_67 = arith.constant 2 : index
    %c0_68 = arith.constant 0 : index
    %c0_69 = arith.constant 0 : index
    %60 = vector.load %arg0[%c2_67, %c0_68, %c0_69] : memref<4x13x256xf32, #tpu.memory_space<vmem>>, vector<1x13x256xf32>
    %61 = vector.shape_cast %60 : vector<1x13x256xf32> to vector<13x256xf32>
    %cst_70 = arith.constant dense<0.000000e+00> : vector<4x256xf32>
    %62 = tpu.matmul %59, %61, %cst_70 {dimension_numbers = #tpu.dot_dimension_numbers<[1], [0], [0], [1], [0, 0, 1, 1], [], []>} : vector<4x13xf32>, vector<13x256xf32>, vector<4x256xf32> -> vector<4x256xf32>
    %63 = arith.addf %57, %62 : vector<4x256xf32>
    %c0_71 = arith.constant 0 : index
    %c8 = arith.constant 8 : index
    %c0_72 = arith.constant 0 : index
    %c0_73 = arith.constant 0 : index
    %64 = vector.load %arg3[%c0_71, %c8, %c0_72, %c0_73] : memref<4x9x4x13xf32, #tpu.memory_space<vmem>>, vector<1x1x4x13xf32>
    %65 = vector.shape_cast %64 : vector<1x1x4x13xf32> to vector<4x13xf32>
    %c3_74 = arith.constant 3 : index
    %c0_75 = arith.constant 0 : index
    %c0_76 = arith.constant 0 : index
    %66 = vector.load %arg0[%c3_74, %c0_75, %c0_76] : memref<4x13x256xf32, #tpu.memory_space<vmem>>, vector<1x13x256xf32>
    %67 = vector.shape_cast %66 : vector<1x13x256xf32> to vector<13x256xf32>
    %cst_77 = arith.constant dense<0.000000e+00> : vector<4x256xf32>
    %68 = tpu.matmul %65, %67, %cst_77 {dimension_numbers = #tpu.dot_dimension_numbers<[1], [0], [0], [1], [0, 0, 1, 1], [], []>} : vector<4x13xf32>, vector<13x256xf32>, vector<4x256xf32> -> vector<4x256xf32>
    %69 = arith.addf %63, %68 : vector<4x256xf32>
    %c0_78 = arith.constant 0 : index
    %c0_79 = arith.constant 0 : index
    %c0_80 = arith.constant 0 : index
    %70 = vector.load %arg12[%c0_78, %c0_79, %c0_80] : memref<4x4x256xf32, #tpu.memory_space<vmem>>, vector<1x4x256xf32>
    %71 = vector.shape_cast %70 : vector<1x4x256xf32> to vector<4x256xf32>
    %72 = vector.shape_cast %69 : vector<4x256xf32> to vector<1x4x256xf32>
    tpu.vector_store %arg12[%c0_78, %c0_79, %c0_80], %72 {strides = array<i32>} : memref<4x4x256xf32, #tpu.memory_space<vmem>>, vector<1x4x256xf32>,
    %73 = vector.broadcast %2 : vector<1x256xf32> to vector<4x256xf32>
    %74 = arith.mulf %69, %73 : vector<4x256xf32>
    %cst_81 = arith.constant dense<0.000000e+00> : vector<4xf32>
    %75 = vector.multi_reduction <add>, %74, %cst_81 [1] : vector<4x256xf32> to vector<4xf32>
    %76 = vector.shape_cast %75 : vector<4xf32> to vector<4x1xf32>
    %77 = arith.addf %11, %76 : vector<4x1xf32>
    %c1_82 = arith.constant 1 : index
    %c0_83 = arith.constant 0 : index
    %c0_84 = arith.constant 0 : index
    %c0_85 = arith.constant 0 : index
    %78 = vector.load %arg3[%c1_82, %c0_83, %c0_84, %c0_85] : memref<4x9x4x13xf32, #tpu.memory_space<vmem>>, vector<1x1x4x13xf32>
    %79 = vector.shape_cast %78 : vector<1x1x4x13xf32> to vector<4x13xf32>
    %c2_86 = arith.constant 2 : index
    %c0_87 = arith.constant 0 : index
    %c0_88 = arith.constant 0 : index
    %80 = vector.load %arg0[%c2_86, %c0_87, %c0_88] : memref<4x13x256xf32, #tpu.memory_space<vmem>>, vector<1x13x256xf32>
    %81 = vector.shape_cast %80 : vector<1x13x256xf32> to vector<13x256xf32>
    %cst_89 = arith.constant dense<0.000000e+00> : vector<4x256xf32>
    %82 = tpu.matmul %79, %81, %cst_89 {dimension_numbers = #tpu.dot_dimension_numbers<[1], [0], [0], [1], [0, 0, 1, 1], [], []>} : vector<4x13xf32>, vector<13x256xf32>, vector<4x256xf32> -> vector<4x256xf32>
    %c10_i32_90 = arith.constant 10 : i32
    %83 = tpu.dynamic_rotate %82 by %c10_i32_90 dim 1 : vector<4x256xf32>, i32 -> vector<4x256xf32>
    %c1_91 = arith.constant 1 : index
    %c1_92 = arith.constant 1 : index
    %c0_93 = arith.constant 0 : index
    %c0_94 = arith.constant 0 : index
    %84 = vector.load %arg3[%c1_91, %c1_92, %c0_93, %c0_94] : memref<4x9x4x13xf32, #tpu.memory_space<vmem>>, vector<1x1x4x13xf32>
    %85 = vector.shape_cast %84 : vector<1x1x4x13xf32> to vector<4x13xf32>
    %c3_95 = arith.constant 3 : index
    %c0_96 = arith.constant 0 : index
    %c0_97 = arith.constant 0 : index
    %86 = vector.load %arg0[%c3_95, %c0_96, %c0_97] : memref<4x13x256xf32, #tpu.memory_space<vmem>>, vector<1x13x256xf32>
    %87 = vector.shape_cast %86 : vector<1x13x256xf32> to vector<13x256xf32>
    %cst_98 = arith.constant dense<0.000000e+00> : vector<4x256xf32>
    %88 = tpu.matmul %85, %87, %cst_98 {dimension_numbers = #tpu.dot_dimension_numbers<[1], [0], [0], [1], [0, 0, 1, 1], [], []>} : vector<4x13xf32>, vector<13x256xf32>, vector<4x256xf32> -> vector<4x256xf32>
    %c10_i32_99 = arith.constant 10 : i32
    %89 = tpu.dynamic_rotate %88 by %c10_i32_99 dim 1 : vector<4x256xf32>, i32 -> vector<4x256xf32>
    %90 = arith.addf %83, %89 : vector<4x256xf32>
    %c1_100 = arith.constant 1 : index
    %c2_101 = arith.constant 2 : index
    %c0_102 = arith.constant 0 : index
    %c0_103 = arith.constant 0 : index
    %91 = vector.load %arg3[%c1_100, %c2_101, %c0_102, %c0_103] : memref<4x9x4x13xf32, #tpu.memory_space<vmem>>, vector<1x1x4x13xf32>
    %92 = vector.shape_cast %91 : vector<1x1x4x13xf32> to vector<4x13xf32>
    %c2_104 = arith.constant 2 : index
    %c0_105 = arith.constant 0 : index
    %c0_106 = arith.constant 0 : index
    %93 = vector.load %arg0[%c2_104, %c0_105, %c0_106] : memref<4x13x256xf32, #tpu.memory_space<vmem>>, vector<1x13x256xf32>
    %94 = vector.shape_cast %93 : vector<1x13x256xf32> to vector<13x256xf32>
    %cst_107 = arith.constant dense<0.000000e+00> : vector<4x256xf32>
    %95 = tpu.matmul %92, %94, %cst_107 {dimension_numbers = #tpu.dot_dimension_numbers<[1], [0], [0], [1], [0, 0, 1, 1], [], []>} : vector<4x13xf32>, vector<13x256xf32>, vector<4x256xf32> -> vector<4x256xf32>
    %c9_i32 = arith.constant 9 : i32
    %96 = tpu.dynamic_rotate %95 by %c9_i32 dim 1 : vector<4x256xf32>, i32 -> vector<4x256xf32>
    %97 = arith.addf %90, %96 : vector<4x256xf32>
    %c1_108 = arith.constant 1 : index
    %c3_109 = arith.constant 3 : index
    %c0_110 = arith.constant 0 : index
    %c0_111 = arith.constant 0 : index
    %98 = vector.load %arg3[%c1_108, %c3_109, %c0_110, %c0_111] : memref<4x9x4x13xf32, #tpu.memory_space<vmem>>, vector<1x1x4x13xf32>
    %99 = vector.shape_cast %98 : vector<1x1x4x13xf32> to vector<4x13xf32>
    %c0_112 = arith.constant 0 : index
    %c0_113 = arith.constant 0 : index
    %c0_114 = arith.constant 0 : index
    %100 = vector.load %arg0[%c0_112, %c0_113, %c0_114] : memref<4x13x256xf32, #tpu.memory_space<vmem>>, vector<1x13x256xf32>
    %101 = vector.shape_cast %100 : vector<1x13x256xf32> to vector<13x256xf32>
    %cst_115 = arith.constant dense<0.000000e+00> : vector<4x256xf32>
    %102 = tpu.matmul %99, %101, %cst_115 {dimension_numbers = #tpu.dot_dimension_numbers<[1], [0], [0], [1], [0, 0, 1, 1], [], []>} : vector<4x13xf32>, vector<13x256xf32>, vector<4x256xf32> -> vector<4x256xf32>
    %103 = arith.addf %97, %102 : vector<4x256xf32>
    %c1_116 = arith.constant 1 : index
    %c4_117 = arith.constant 4 : index
    %c0_118 = arith.constant 0 : index
    %c0_119 = arith.constant 0 : index
    %104 = vector.load %arg3[%c1_116, %c4_117, %c0_118, %c0_119] : memref<4x9x4x13xf32, #tpu.memory_space<vmem>>, vector<1x1x4x13xf32>
    %105 = vector.shape_cast %104 : vector<1x1x4x13xf32> to vector<4x13xf32>
    %c1_120 = arith.constant 1 : index
    %c0_121 = arith.constant 0 : index
    %c0_122 = arith.constant 0 : index
    %106 = vector.load %arg0[%c1_120, %c0_121, %c0_122] : memref<4x13x256xf32, #tpu.memory_space<vmem>>, vector<1x13x256xf32>
    %107 = vector.shape_cast %106 : vector<1x13x256xf32> to vector<13x256xf32>
    %cst_123 = arith.constant dense<0.000000e+00> : vector<4x256xf32>
    %108 = tpu.matmul %105, %107, %cst_123 {dimension_numbers = #tpu.dot_dimension_numbers<[1], [0], [0], [1], [0, 0, 1, 1], [], []>} : vector<4x13xf32>, vector<13x256xf32>, vector<4x256xf32> -> vector<4x256xf32>
    %109 = arith.addf %103, %108 : vector<4x256xf32>
    %c1_124 = arith.constant 1 : index
    %c5_125 = arith.constant 5 : index
    %c0_126 = arith.constant 0 : index
    %c0_127 = arith.constant 0 : index
    %110 = vector.load %arg3[%c1_124, %c5_125, %c0_126, %c0_127] : memref<4x9x4x13xf32, #tpu.memory_space<vmem>>, vector<1x1x4x13xf32>
    %111 = vector.shape_cast %110 : vector<1x1x4x13xf32> to vector<4x13xf32>
    %c0_128 = arith.constant 0 : index
    %c0_129 = arith.constant 0 : index
    %c0_130 = arith.constant 0 : index
    %112 = vector.load %arg0[%c0_128, %c0_129, %c0_130] : memref<4x13x256xf32, #tpu.memory_space<vmem>>, vector<1x13x256xf32>
    %113 = vector.shape_cast %112 : vector<1x13x256xf32> to vector<13x256xf32>
    %cst_131 = arith.constant dense<0.000000e+00> : vector<4x256xf32>
    %114 = tpu.matmul %111, %113, %cst_131 {dimension_numbers = #tpu.dot_dimension_numbers<[1], [0], [0], [1], [0, 0, 1, 1], [], []>} : vector<4x13xf32>, vector<13x256xf32>, vector<4x256xf32> -> vector<4x256xf32>
    %c255_i32 = arith.constant 255 : i32
    %115 = tpu.dynamic_rotate %114 by %c255_i32 dim 1 : vector<4x256xf32>, i32 -> vector<4x256xf32>
    %116 = arith.addf %109, %115 : vector<4x256xf32>
    %c1_132 = arith.constant 1 : index
    %c6_133 = arith.constant 6 : index
    %c0_134 = arith.constant 0 : index
    %c0_135 = arith.constant 0 : index
    %117 = vector.load %arg3[%c1_132, %c6_133, %c0_134, %c0_135] : memref<4x9x4x13xf32, #tpu.memory_space<vmem>>, vector<1x1x4x13xf32>
    %118 = vector.shape_cast %117 : vector<1x1x4x13xf32> to vector<4x13xf32>
    %c2_136 = arith.constant 2 : index
    %c0_137 = arith.constant 0 : index
    %c0_138 = arith.constant 0 : index
    %119 = vector.load %arg0[%c2_136, %c0_137, %c0_138] : memref<4x13x256xf32, #tpu.memory_space<vmem>>, vector<1x13x256xf32>
    %120 = vector.shape_cast %119 : vector<1x13x256xf32> to vector<13x256xf32>
    %cst_139 = arith.constant dense<0.000000e+00> : vector<4x256xf32>
    %121 = tpu.matmul %118, %120, %cst_139 {dimension_numbers = #tpu.dot_dimension_numbers<[1], [0], [0], [1], [0, 0, 1, 1], [], []>} : vector<4x13xf32>, vector<13x256xf32>, vector<4x256xf32> -> vector<4x256xf32>
    %122 = arith.addf %116, %121 : vector<4x256xf32>
    %c1_140 = arith.constant 1 : index
    %c7_141 = arith.constant 7 : index
    %c0_142 = arith.constant 0 : index
    %c0_143 = arith.constant 0 : index
    %123 = vector.load %arg3[%c1_140, %c7_141, %c0_142, %c0_143] : memref<4x9x4x13xf32, #tpu.memory_space<vmem>>, vector<1x1x4x13xf32>
    %124 = vector.shape_cast %123 : vector<1x1x4x13xf32> to vector<4x13xf32>
    %c3_144 = arith.constant 3 : index
    %c0_145 = arith.constant 0 : index
    %c0_146 = arith.constant 0 : index
    %125 = vector.load %arg0[%c3_144, %c0_145, %c0_146] : memref<4x13x256xf32, #tpu.memory_space<vmem>>, vector<1x13x256xf32>
    %126 = vector.shape_cast %125 : vector<1x13x256xf32> to vector<13x256xf32>
    %cst_147 = arith.constant dense<0.000000e+00> : vector<4x256xf32>
    %127 = tpu.matmul %124, %126, %cst_147 {dimension_numbers = #tpu.dot_dimension_numbers<[1], [0], [0], [1], [0, 0, 1, 1], [], []>} : vector<4x13xf32>, vector<13x256xf32>, vector<4x256xf32> -> vector<4x256xf32>
    %128 = arith.addf %122, %127 : vector<4x256xf32>
    %c1_148 = arith.constant 1 : index
    %c8_149 = arith.constant 8 : index
    %c0_150 = arith.constant 0 : index
    %c0_151 = arith.constant 0 : index
    %129 = vector.load %arg3[%c1_148, %c8_149, %c0_150, %c0_151] : memref<4x9x4x13xf32, #tpu.memory_space<vmem>>, vector<1x1x4x13xf32>
    %130 = vector.shape_cast %129 : vector<1x1x4x13xf32> to vector<4x13xf32>
    %c2_152 = arith.constant 2 : index
    %c0_153 = arith.constant 0 : index
    %c0_154 = arith.constant 0 : index
    %131 = vector.load %arg0[%c2_152, %c0_153, %c0_154] : memref<4x13x256xf32, #tpu.memory_space<vmem>>, vector<1x13x256xf32>
    %132 = vector.shape_cast %131 : vector<1x13x256xf32> to vector<13x256xf32>
    %cst_155 = arith.constant dense<0.000000e+00> : vector<4x256xf32>
    %133 = tpu.matmul %130, %132, %cst_155 {dimension_numbers = #tpu.dot_dimension_numbers<[1], [0], [0], [1], [0, 0, 1, 1], [], []>} : vector<4x13xf32>, vector<13x256xf32>, vector<4x256xf32> -> vector<4x256xf32>
    %c255_i32_156 = arith.constant 255 : i32
    %134 = tpu.dynamic_rotate %133 by %c255_i32_156 dim 1 : vector<4x256xf32>, i32 -> vector<4x256xf32>
    %135 = arith.addf %128, %134 : vector<4x256xf32>
    %c1_157 = arith.constant 1 : index
    %c0_158 = arith.constant 0 : index
    %c0_159 = arith.constant 0 : index
    %136 = vector.load %arg12[%c1_157, %c0_158, %c0_159] : memref<4x4x256xf32, #tpu.memory_space<vmem>>, vector<1x4x256xf32>
    %137 = vector.shape_cast %136 : vector<1x4x256xf32> to vector<4x256xf32>
    %138 = vector.shape_cast %135 : vector<4x256xf32> to vector<1x4x256xf32>
    tpu.vector_store %arg12[%c1_157, %c0_158, %c0_159], %138 {strides = array<i32>} : memref<4x4x256xf32, #tpu.memory_space<vmem>>, vector<1x4x256xf32>,
    %139 = vector.broadcast %2 : vector<1x256xf32> to vector<4x256xf32>
    %140 = arith.mulf %135, %139 : vector<4x256xf32>
    %cst_160 = arith.constant dense<0.000000e+00> : vector<4xf32>
    %141 = vector.multi_reduction <add>, %140, %cst_160 [1] : vector<4x256xf32> to vector<4xf32>
    %142 = vector.shape_cast %141 : vector<4xf32> to vector<4x1xf32>
    %143 = arith.addf %77, %142 : vector<4x1xf32>
    %c2_161 = arith.constant 2 : index
    %c0_162 = arith.constant 0 : index
    %c0_163 = arith.constant 0 : index
    %c0_164 = arith.constant 0 : index
    %144 = vector.load %arg3[%c2_161, %c0_162, %c0_163, %c0_164] : memref<4x9x4x13xf32, #tpu.memory_space<vmem>>, vector<1x1x4x13xf32>
    %145 = vector.shape_cast %144 : vector<1x1x4x13xf32> to vector<4x13xf32>
    %c1_165 = arith.constant 1 : index
    %c0_166 = arith.constant 0 : index
    %c0_167 = arith.constant 0 : index
    %146 = vector.load %arg0[%c1_165, %c0_166, %c0_167] : memref<4x13x256xf32, #tpu.memory_space<vmem>>, vector<1x13x256xf32>
    %147 = vector.shape_cast %146 : vector<1x13x256xf32> to vector<13x256xf32>
    %cst_168 = arith.constant dense<0.000000e+00> : vector<4x256xf32>
    %148 = tpu.matmul %145, %147, %cst_168 {dimension_numbers = #tpu.dot_dimension_numbers<[1], [0], [0], [1], [0, 0, 1, 1], [], []>} : vector<4x13xf32>, vector<13x256xf32>, vector<4x256xf32> -> vector<4x256xf32>
    %c1_i32_169 = arith.constant 1 : i32
    %149 = tpu.dynamic_rotate %148 by %c1_i32_169 dim 1 : vector<4x256xf32>, i32 -> vector<4x256xf32>
    %c2_170 = arith.constant 2 : index
    %c1_171 = arith.constant 1 : index
    %c0_172 = arith.constant 0 : index
    %c0_173 = arith.constant 0 : index
    %150 = vector.load %arg3[%c2_170, %c1_171, %c0_172, %c0_173] : memref<4x9x4x13xf32, #tpu.memory_space<vmem>>, vector<1x1x4x13xf32>
    %151 = vector.shape_cast %150 : vector<1x1x4x13xf32> to vector<4x13xf32>
    %c0_174 = arith.constant 0 : index
    %c0_175 = arith.constant 0 : index
    %c0_176 = arith.constant 0 : index
    %152 = vector.load %arg0[%c0_174, %c0_175, %c0_176] : memref<4x13x256xf32, #tpu.memory_space<vmem>>, vector<1x13x256xf32>
    %153 = vector.shape_cast %152 : vector<1x13x256xf32> to vector<13x256xf32>
    %cst_177 = arith.constant dense<0.000000e+00> : vector<4x256xf32>
    %154 = tpu.matmul %151, %153, %cst_177 {dimension_numbers = #tpu.dot_dimension_numbers<[1], [0], [0], [1], [0, 0, 1, 1], [], []>} : vector<4x13xf32>, vector<13x256xf32>, vector<4x256xf32> -> vector<4x256xf32>
    %155 = arith.addf %149, %154 : vector<4x256xf32>
    %c2_178 = arith.constant 2 : index
    %c2_179 = arith.constant 2 : index
    %c0_180 = arith.constant 0 : index
    %c0_181 = arith.constant 0 : index
    %156 = vector.load %arg3[%c2_178, %c2_179, %c0_180, %c0_181] : memref<4x9x4x13xf32, #tpu.memory_space<vmem>>, vector<1x1x4x13xf32>
    %157 = vector.shape_cast %156 : vector<1x1x4x13xf32> to vector<4x13xf32>
    %c1_182 = arith.constant 1 : index
    %c0_183 = arith.constant 0 : index
    %c0_184 = arith.constant 0 : index
    %158 = vector.load %arg0[%c1_182, %c0_183, %c0_184] : memref<4x13x256xf32, #tpu.memory_space<vmem>>, vector<1x13x256xf32>
    %159 = vector.shape_cast %158 : vector<1x13x256xf32> to vector<13x256xf32>
    %cst_185 = arith.constant dense<0.000000e+00> : vector<4x256xf32>
    %160 = tpu.matmul %157, %159, %cst_185 {dimension_numbers = #tpu.dot_dimension_numbers<[1], [0], [0], [1], [0, 0, 1, 1], [], []>} : vector<4x13xf32>, vector<13x256xf32>, vector<4x256xf32> -> vector<4x256xf32>
    %161 = arith.addf %155, %160 : vector<4x256xf32>
    %c2_186 = arith.constant 2 : index
    %c3_187 = arith.constant 3 : index
    %c0_188 = arith.constant 0 : index
    %c0_189 = arith.constant 0 : index
    %162 = vector.load %arg3[%c2_186, %c3_187, %c0_188, %c0_189] : memref<4x9x4x13xf32, #tpu.memory_space<vmem>>, vector<1x1x4x13xf32>
    %163 = vector.shape_cast %162 : vector<1x1x4x13xf32> to vector<4x13xf32>
    %c3_190 = arith.constant 3 : index
    %c0_191 = arith.constant 0 : index
    %c0_192 = arith.constant 0 : index
    %164 = vector.load %arg0[%c3_190, %c0_191, %c0_192] : memref<4x13x256xf32, #tpu.memory_space<vmem>>, vector<1x13x256xf32>
    %165 = vector.shape_cast %164 : vector<1x13x256xf32> to vector<13x256xf32>
    %cst_193 = arith.constant dense<0.000000e+00> : vector<4x256xf32>
    %166 = tpu.matmul %163, %165, %cst_193 {dimension_numbers = #tpu.dot_dimension_numbers<[1], [0], [0], [1], [0, 0, 1, 1], [], []>} : vector<4x13xf32>, vector<13x256xf32>, vector<4x256xf32> -> vector<4x256xf32>
    %c1_i32_194 = arith.constant 1 : i32
    %167 = tpu.dynamic_rotate %166 by %c1_i32_194 dim 1 : vector<4x256xf32>, i32 -> vector<4x256xf32>
    %168 = arith.addf %161, %167 : vector<4x256xf32>
    %c2_195 = arith.constant 2 : index
    %c4_196 = arith.constant 4 : index
    %c0_197 = arith.constant 0 : index
    %c0_198 = arith.constant 0 : index
    %169 = vector.load %arg3[%c2_195, %c4_196, %c0_197, %c0_198] : memref<4x9x4x13xf32, #tpu.memory_space<vmem>>, vector<1x1x4x13xf32>
    %170 = vector.shape_cast %169 : vector<1x1x4x13xf32> to vector<4x13xf32>
    %c2_199 = arith.constant 2 : index
    %c0_200 = arith.constant 0 : index
    %c0_201 = arith.constant 0 : index
    %171 = vector.load %arg0[%c2_199, %c0_200, %c0_201] : memref<4x13x256xf32, #tpu.memory_space<vmem>>, vector<1x13x256xf32>
    %172 = vector.shape_cast %171 : vector<1x13x256xf32> to vector<13x256xf32>
    %cst_202 = arith.constant dense<0.000000e+00> : vector<4x256xf32>
    %173 = tpu.matmul %170, %172, %cst_202 {dimension_numbers = #tpu.dot_dimension_numbers<[1], [0], [0], [1], [0, 0, 1, 1], [], []>} : vector<4x13xf32>, vector<13x256xf32>, vector<4x256xf32> -> vector<4x256xf32>
    %174 = arith.addf %168, %173 : vector<4x256xf32>
    %c2_203 = arith.constant 2 : index
    %c5_204 = arith.constant 5 : index
    %c0_205 = arith.constant 0 : index
    %c0_206 = arith.constant 0 : index
    %175 = vector.load %arg3[%c2_203, %c5_204, %c0_205, %c0_206] : memref<4x9x4x13xf32, #tpu.memory_space<vmem>>, vector<1x1x4x13xf32>
    %176 = vector.shape_cast %175 : vector<1x1x4x13xf32> to vector<4x13xf32>
    %c3_207 = arith.constant 3 : index
    %c0_208 = arith.constant 0 : index
    %c0_209 = arith.constant 0 : index
    %177 = vector.load %arg0[%c3_207, %c0_208, %c0_209] : memref<4x13x256xf32, #tpu.memory_space<vmem>>, vector<1x13x256xf32>
    %178 = vector.shape_cast %177 : vector<1x13x256xf32> to vector<13x256xf32>
    %cst_210 = arith.constant dense<0.000000e+00> : vector<4x256xf32>
    %179 = tpu.matmul %176, %178, %cst_210 {dimension_numbers = #tpu.dot_dimension_numbers<[1], [0], [0], [1], [0, 0, 1, 1], [], []>} : vector<4x13xf32>, vector<13x256xf32>, vector<4x256xf32> -> vector<4x256xf32>
    %180 = arith.addf %174, %179 : vector<4x256xf32>
    %c2_211 = arith.constant 2 : index
    %c6_212 = arith.constant 6 : index
    %c0_213 = arith.constant 0 : index
    %c0_214 = arith.constant 0 : index
    %181 = vector.load %arg3[%c2_211, %c6_212, %c0_213, %c0_214] : memref<4x9x4x13xf32, #tpu.memory_space<vmem>>, vector<1x1x4x13xf32>
    %182 = vector.shape_cast %181 : vector<1x1x4x13xf32> to vector<4x13xf32>
    %c1_215 = arith.constant 1 : index
    %c0_216 = arith.constant 0 : index
    %c0_217 = arith.constant 0 : index
    %183 = vector.load %arg0[%c1_215, %c0_216, %c0_217] : memref<4x13x256xf32, #tpu.memory_space<vmem>>, vector<1x13x256xf32>
    %184 = vector.shape_cast %183 : vector<1x13x256xf32> to vector<13x256xf32>
    %cst_218 = arith.constant dense<0.000000e+00> : vector<4x256xf32>
    %185 = tpu.matmul %182, %184, %cst_218 {dimension_numbers = #tpu.dot_dimension_numbers<[1], [0], [0], [1], [0, 0, 1, 1], [], []>} : vector<4x13xf32>, vector<13x256xf32>, vector<4x256xf32> -> vector<4x256xf32>
    %c247_i32 = arith.constant 247 : i32
    %186 = tpu.dynamic_rotate %185 by %c247_i32 dim 1 : vector<4x256xf32>, i32 -> vector<4x256xf32>
    %187 = arith.addf %180, %186 : vector<4x256xf32>
    %c2_219 = arith.constant 2 : index
    %c7_220 = arith.constant 7 : index
    %c0_221 = arith.constant 0 : index
    %c0_222 = arith.constant 0 : index
    %188 = vector.load %arg3[%c2_219, %c7_220, %c0_221, %c0_222] : memref<4x9x4x13xf32, #tpu.memory_space<vmem>>, vector<1x1x4x13xf32>
    %189 = vector.shape_cast %188 : vector<1x1x4x13xf32> to vector<4x13xf32>
    %c0_223 = arith.constant 0 : index
    %c0_224 = arith.constant 0 : index
    %c0_225 = arith.constant 0 : index
    %190 = vector.load %arg0[%c0_223, %c0_224, %c0_225] : memref<4x13x256xf32, #tpu.memory_space<vmem>>, vector<1x13x256xf32>
    %191 = vector.shape_cast %190 : vector<1x13x256xf32> to vector<13x256xf32>
    %cst_226 = arith.constant dense<0.000000e+00> : vector<4x256xf32>
    %192 = tpu.matmul %189, %191, %cst_226 {dimension_numbers = #tpu.dot_dimension_numbers<[1], [0], [0], [1], [0, 0, 1, 1], [], []>} : vector<4x13xf32>, vector<13x256xf32>, vector<4x256xf32> -> vector<4x256xf32>
    %c246_i32 = arith.constant 246 : i32
    %193 = tpu.dynamic_rotate %192 by %c246_i32 dim 1 : vector<4x256xf32>, i32 -> vector<4x256xf32>
    %194 = arith.addf %187, %193 : vector<4x256xf32>
    %c2_227 = arith.constant 2 : index
    %c8_228 = arith.constant 8 : index
    %c0_229 = arith.constant 0 : index
    %c0_230 = arith.constant 0 : index
    %195 = vector.load %arg3[%c2_227, %c8_228, %c0_229, %c0_230] : memref<4x9x4x13xf32, #tpu.memory_space<vmem>>, vector<1x1x4x13xf32>
    %196 = vector.shape_cast %195 : vector<1x1x4x13xf32> to vector<4x13xf32>
    %c1_231 = arith.constant 1 : index
    %c0_232 = arith.constant 0 : index
    %c0_233 = arith.constant 0 : index
    %197 = vector.load %arg0[%c1_231, %c0_232, %c0_233] : memref<4x13x256xf32, #tpu.memory_space<vmem>>, vector<1x13x256xf32>
    %198 = vector.shape_cast %197 : vector<1x13x256xf32> to vector<13x256xf32>
    %cst_234 = arith.constant dense<0.000000e+00> : vector<4x256xf32>
    %199 = tpu.matmul %196, %198, %cst_234 {dimension_numbers = #tpu.dot_dimension_numbers<[1], [0], [0], [1], [0, 0, 1, 1], [], []>} : vector<4x13xf32>, vector<13x256xf32>, vector<4x256xf32> -> vector<4x256xf32>
    %c246_i32_235 = arith.constant 246 : i32
    %200 = tpu.dynamic_rotate %199 by %c246_i32_235 dim 1 : vector<4x256xf32>, i32 -> vector<4x256xf32>
    %201 = arith.addf %194, %200 : vector<4x256xf32>
    %c2_236 = arith.constant 2 : index
    %c0_237 = arith.constant 0 : index
    %c0_238 = arith.constant 0 : index
    %202 = vector.load %arg12[%c2_236, %c0_237, %c0_238] : memref<4x4x256xf32, #tpu.memory_space<vmem>>, vector<1x4x256xf32>
    %203 = vector.shape_cast %202 : vector<1x4x256xf32> to vector<4x256xf32>
    %204 = vector.shape_cast %201 : vector<4x256xf32> to vector<1x4x256xf32>
    tpu.vector_store %arg12[%c2_236, %c0_237, %c0_238], %204 {strides = array<i32>} : memref<4x4x256xf32, #tpu.memory_space<vmem>>, vector<1x4x256xf32>,
    %205 = vector.broadcast %2 : vector<1x256xf32> to vector<4x256xf32>
    %206 = arith.mulf %201, %205 : vector<4x256xf32>
    %cst_239 = arith.constant dense<0.000000e+00> : vector<4xf32>
    %207 = vector.multi_reduction <add>, %206, %cst_239 [1] : vector<4x256xf32> to vector<4xf32>
    %208 = vector.shape_cast %207 : vector<4xf32> to vector<4x1xf32>
    %209 = arith.addf %143, %208 : vector<4x1xf32>
    %c3_240 = arith.constant 3 : index
    %c0_241 = arith.constant 0 : index
    %c0_242 = arith.constant 0 : index
    %c0_243 = arith.constant 0 : index
    %210 = vector.load %arg3[%c3_240, %c0_241, %c0_242, %c0_243] : memref<4x9x4x13xf32, #tpu.memory_space<vmem>>, vector<1x1x4x13xf32>
    %211 = vector.shape_cast %210 : vector<1x1x4x13xf32> to vector<4x13xf32>
    %c0_244 = arith.constant 0 : index
    %c0_245 = arith.constant 0 : index
    %c0_246 = arith.constant 0 : index
    %212 = vector.load %arg0[%c0_244, %c0_245, %c0_246] : memref<4x13x256xf32, #tpu.memory_space<vmem>>, vector<1x13x256xf32>
    %213 = vector.shape_cast %212 : vector<1x13x256xf32> to vector<13x256xf32>
    %cst_247 = arith.constant dense<0.000000e+00> : vector<4x256xf32>
    %214 = tpu.matmul %211, %213, %cst_247 {dimension_numbers = #tpu.dot_dimension_numbers<[1], [0], [0], [1], [0, 0, 1, 1], [], []>} : vector<4x13xf32>, vector<13x256xf32>, vector<4x256xf32> -> vector<4x256xf32>
    %c3_248 = arith.constant 3 : index
    %c1_249 = arith.constant 1 : index
    %c0_250 = arith.constant 0 : index
    %c0_251 = arith.constant 0 : index
    %215 = vector.load %arg3[%c3_248, %c1_249, %c0_250, %c0_251] : memref<4x9x4x13xf32, #tpu.memory_space<vmem>>, vector<1x1x4x13xf32>
    %216 = vector.shape_cast %215 : vector<1x1x4x13xf32> to vector<4x13xf32>
    %c1_252 = arith.constant 1 : index
    %c0_253 = arith.constant 0 : index
    %c0_254 = arith.constant 0 : index
    %217 = vector.load %arg0[%c1_252, %c0_253, %c0_254] : memref<4x13x256xf32, #tpu.memory_space<vmem>>, vector<1x13x256xf32>
    %218 = vector.shape_cast %217 : vector<1x13x256xf32> to vector<13x256xf32>
    %cst_255 = arith.constant dense<0.000000e+00> : vector<4x256xf32>
    %219 = tpu.matmul %216, %218, %cst_255 {dimension_numbers = #tpu.dot_dimension_numbers<[1], [0], [0], [1], [0, 0, 1, 1], [], []>} : vector<4x13xf32>, vector<13x256xf32>, vector<4x256xf32> -> vector<4x256xf32>
    %220 = arith.addf %214, %219 : vector<4x256xf32>
    %c3_256 = arith.constant 3 : index
    %c2_257 = arith.constant 2 : index
    %c0_258 = arith.constant 0 : index
    %c0_259 = arith.constant 0 : index
    %221 = vector.load %arg3[%c3_256, %c2_257, %c0_258, %c0_259] : memref<4x9x4x13xf32, #tpu.memory_space<vmem>>, vector<1x1x4x13xf32>
    %222 = vector.shape_cast %221 : vector<1x1x4x13xf32> to vector<4x13xf32>
    %c0_260 = arith.constant 0 : index
    %c0_261 = arith.constant 0 : index
    %c0_262 = arith.constant 0 : index
    %223 = vector.load %arg0[%c0_260, %c0_261, %c0_262] : memref<4x13x256xf32, #tpu.memory_space<vmem>>, vector<1x13x256xf32>
    %224 = vector.shape_cast %223 : vector<1x13x256xf32> to vector<13x256xf32>
    %cst_263 = arith.constant dense<0.000000e+00> : vector<4x256xf32>
    %225 = tpu.matmul %222, %224, %cst_263 {dimension_numbers = #tpu.dot_dimension_numbers<[1], [0], [0], [1], [0, 0, 1, 1], [], []>} : vector<4x13xf32>, vector<13x256xf32>, vector<4x256xf32> -> vector<4x256xf32>
    %c255_i32_264 = arith.constant 255 : i32
    %226 = tpu.dynamic_rotate %225 by %c255_i32_264 dim 1 : vector<4x256xf32>, i32 -> vector<4x256xf32>
    %227 = arith.addf %220, %226 : vector<4x256xf32>
    %c3_265 = arith.constant 3 : index
    %c3_266 = arith.constant 3 : index
    %c0_267 = arith.constant 0 : index
    %c0_268 = arith.constant 0 : index
    %228 = vector.load %arg3[%c3_265, %c3_266, %c0_267, %c0_268] : memref<4x9x4x13xf32, #tpu.memory_space<vmem>>, vector<1x1x4x13xf32>
    %229 = vector.shape_cast %228 : vector<1x1x4x13xf32> to vector<4x13xf32>
    %c2_269 = arith.constant 2 : index
    %c0_270 = arith.constant 0 : index
    %c0_271 = arith.constant 0 : index
    %230 = vector.load %arg0[%c2_269, %c0_270, %c0_271] : memref<4x13x256xf32, #tpu.memory_space<vmem>>, vector<1x13x256xf32>
    %231 = vector.shape_cast %230 : vector<1x13x256xf32> to vector<13x256xf32>
    %cst_272 = arith.constant dense<0.000000e+00> : vector<4x256xf32>
    %232 = tpu.matmul %229, %231, %cst_272 {dimension_numbers = #tpu.dot_dimension_numbers<[1], [0], [0], [1], [0, 0, 1, 1], [], []>} : vector<4x13xf32>, vector<13x256xf32>, vector<4x256xf32> -> vector<4x256xf32>
    %233 = arith.addf %227, %232 : vector<4x256xf32>
    %c3_273 = arith.constant 3 : index
    %c4_274 = arith.constant 4 : index
    %c0_275 = arith.constant 0 : index
    %c0_276 = arith.constant 0 : index
    %234 = vector.load %arg3[%c3_273, %c4_274, %c0_275, %c0_276] : memref<4x9x4x13xf32, #tpu.memory_space<vmem>>, vector<1x1x4x13xf32>
    %235 = vector.shape_cast %234 : vector<1x1x4x13xf32> to vector<4x13xf32>
    %c3_277 = arith.constant 3 : index
    %c0_278 = arith.constant 0 : index
    %c0_279 = arith.constant 0 : index
    %236 = vector.load %arg0[%c3_277, %c0_278, %c0_279] : memref<4x13x256xf32, #tpu.memory_space<vmem>>, vector<1x13x256xf32>
    %237 = vector.shape_cast %236 : vector<1x13x256xf32> to vector<13x256xf32>
    %cst_280 = arith.constant dense<0.000000e+00> : vector<4x256xf32>
    %238 = tpu.matmul %235, %237, %cst_280 {dimension_numbers = #tpu.dot_dimension_numbers<[1], [0], [0], [1], [0, 0, 1, 1], [], []>} : vector<4x13xf32>, vector<13x256xf32>, vector<4x256xf32> -> vector<4x256xf32>
    %239 = arith.addf %233, %238 : vector<4x256xf32>
    %c3_281 = arith.constant 3 : index
    %c5_282 = arith.constant 5 : index
    %c0_283 = arith.constant 0 : index
    %c0_284 = arith.constant 0 : index
    %240 = vector.load %arg3[%c3_281, %c5_282, %c0_283, %c0_284] : memref<4x9x4x13xf32, #tpu.memory_space<vmem>>, vector<1x1x4x13xf32>
    %241 = vector.shape_cast %240 : vector<1x1x4x13xf32> to vector<4x13xf32>
    %c2_285 = arith.constant 2 : index
    %c0_286 = arith.constant 0 : index
    %c0_287 = arith.constant 0 : index
    %242 = vector.load %arg0[%c2_285, %c0_286, %c0_287] : memref<4x13x256xf32, #tpu.memory_space<vmem>>, vector<1x13x256xf32>
    %243 = vector.shape_cast %242 : vector<1x13x256xf32> to vector<13x256xf32>
    %cst_288 = arith.constant dense<0.000000e+00> : vector<4x256xf32>
    %244 = tpu.matmul %241, %243, %cst_288 {dimension_numbers = #tpu.dot_dimension_numbers<[1], [0], [0], [1], [0, 0, 1, 1], [], []>} : vector<4x13xf32>, vector<13x256xf32>, vector<4x256xf32> -> vector<4x256xf32>
    %c255_i32_289 = arith.constant 255 : i32
    %245 = tpu.dynamic_rotate %244 by %c255_i32_289 dim 1 : vector<4x256xf32>, i32 -> vector<4x256xf32>
    %246 = arith.addf %239, %245 : vector<4x256xf32>
    %c3_290 = arith.constant 3 : index
    %c6_291 = arith.constant 6 : index
    %c0_292 = arith.constant 0 : index
    %c0_293 = arith.constant 0 : index
    %247 = vector.load %arg3[%c3_290, %c6_291, %c0_292, %c0_293] : memref<4x9x4x13xf32, #tpu.memory_space<vmem>>, vector<1x1x4x13xf32>
    %248 = vector.shape_cast %247 : vector<1x1x4x13xf32> to vector<4x13xf32>
    %c0_294 = arith.constant 0 : index
    %c0_295 = arith.constant 0 : index
    %c0_296 = arith.constant 0 : index
    %249 = vector.load %arg0[%c0_294, %c0_295, %c0_296] : memref<4x13x256xf32, #tpu.memory_space<vmem>>, vector<1x13x256xf32>
    %250 = vector.shape_cast %249 : vector<1x13x256xf32> to vector<13x256xf32>
    %cst_297 = arith.constant dense<0.000000e+00> : vector<4x256xf32>
    %251 = tpu.matmul %248, %250, %cst_297 {dimension_numbers = #tpu.dot_dimension_numbers<[1], [0], [0], [1], [0, 0, 1, 1], [], []>} : vector<4x13xf32>, vector<13x256xf32>, vector<4x256xf32> -> vector<4x256xf32>
    %c246_i32_298 = arith.constant 246 : i32
    %252 = tpu.dynamic_rotate %251 by %c246_i32_298 dim 1 : vector<4x256xf32>, i32 -> vector<4x256xf32>
    %253 = arith.addf %246, %252 : vector<4x256xf32>
    %c3_299 = arith.constant 3 : index
    %c7_300 = arith.constant 7 : index
    %c0_301 = arith.constant 0 : index
    %c0_302 = arith.constant 0 : index
    %254 = vector.load %arg3[%c3_299, %c7_300, %c0_301, %c0_302] : memref<4x9x4x13xf32, #tpu.memory_space<vmem>>, vector<1x1x4x13xf32>
    %255 = vector.shape_cast %254 : vector<1x1x4x13xf32> to vector<4x13xf32>
    %c1_303 = arith.constant 1 : index
    %c0_304 = arith.constant 0 : index
    %c0_305 = arith.constant 0 : index
    %256 = vector.load %arg0[%c1_303, %c0_304, %c0_305] : memref<4x13x256xf32, #tpu.memory_space<vmem>>, vector<1x13x256xf32>
    %257 = vector.shape_cast %256 : vector<1x13x256xf32> to vector<13x256xf32>
    %cst_306 = arith.constant dense<0.000000e+00> : vector<4x256xf32>
    %258 = tpu.matmul %255, %257, %cst_306 {dimension_numbers = #tpu.dot_dimension_numbers<[1], [0], [0], [1], [0, 0, 1, 1], [], []>} : vector<4x13xf32>, vector<13x256xf32>, vector<4x256xf32> -> vector<4x256xf32>
    %c246_i32_307 = arith.constant 246 : i32
    %259 = tpu.dynamic_rotate %258 by %c246_i32_307 dim 1 : vector<4x256xf32>, i32 -> vector<4x256xf32>
    %260 = arith.addf %253, %259 : vector<4x256xf32>
    %c3_308 = arith.constant 3 : index
    %c8_309 = arith.constant 8 : index
    %c0_310 = arith.constant 0 : index
    %c0_311 = arith.constant 0 : index
    %261 = vector.load %arg3[%c3_308, %c8_309, %c0_310, %c0_311] : memref<4x9x4x13xf32, #tpu.memory_space<vmem>>, vector<1x1x4x13xf32>
    %262 = vector.shape_cast %261 : vector<1x1x4x13xf32> to vector<4x13xf32>
    %c0_312 = arith.constant 0 : index
    %c0_313 = arith.constant 0 : index
    %c0_314 = arith.constant 0 : index
    %263 = vector.load %arg0[%c0_312, %c0_313, %c0_314] : memref<4x13x256xf32, #tpu.memory_space<vmem>>, vector<1x13x256xf32>
    %264 = vector.shape_cast %263 : vector<1x13x256xf32> to vector<13x256xf32>
    %cst_315 = arith.constant dense<0.000000e+00> : vector<4x256xf32>
    %265 = tpu.matmul %262, %264, %cst_315 {dimension_numbers = #tpu.dot_dimension_numbers<[1], [0], [0], [1], [0, 0, 1, 1], [], []>} : vector<4x13xf32>, vector<13x256xf32>, vector<4x256xf32> -> vector<4x256xf32>
    %c245_i32 = arith.constant 245 : i32
    %266 = tpu.dynamic_rotate %265 by %c245_i32 dim 1 : vector<4x256xf32>, i32 -> vector<4x256xf32>
    %267 = arith.addf %260, %266 : vector<4x256xf32>
    %c3_316 = arith.constant 3 : index
    %c0_317 = arith.constant 0 : index
    %c0_318 = arith.constant 0 : index
    %268 = vector.load %arg12[%c3_316, %c0_317, %c0_318] : memref<4x4x256xf32, #tpu.memory_space<vmem>>, vector<1x4x256xf32>
    %269 = vector.shape_cast %268 : vector<1x4x256xf32> to vector<4x256xf32>
    %270 = vector.shape_cast %267 : vector<4x256xf32> to vector<1x4x256xf32>
    tpu.vector_store %arg12[%c3_316, %c0_317, %c0_318], %270 {strides = array<i32>} : memref<4x4x256xf32, #tpu.memory_space<vmem>>, vector<1x4x256xf32>,
    %271 = vector.broadcast %2 : vector<1x256xf32> to vector<4x256xf32>
    %272 = arith.mulf %267, %271 : vector<4x256xf32>
    %cst_319 = arith.constant dense<0.000000e+00> : vector<4xf32>
    %273 = vector.multi_reduction <add>, %272, %cst_319 [1] : vector<4x256xf32> to vector<4xf32>
    %274 = vector.shape_cast %273 : vector<4xf32> to vector<4x1xf32>
    %275 = arith.addf %209, %274 : vector<4x1xf32>
    %cst_320 = arith.constant 0.001953125 : f32
    %276 = vector.broadcast %cst_320 : f32 to vector<4x1xf32>
    %277 = arith.mulf %275, %276 : vector<4x1xf32>
    %cst_321 = arith.constant 0.000000e+00 : f32
    %278 = vector.broadcast %cst_321 : f32 to vector<4x1xf32>
    %c0_322 = arith.constant 0 : index
    %c0_323 = arith.constant 0 : index
    %c0_324 = arith.constant 0 : index
    %279 = vector.load %arg12[%c0_322, %c0_323, %c0_324] : memref<4x4x256xf32, #tpu.memory_space<vmem>>, vector<1x4x256xf32>
    %280 = vector.shape_cast %279 : vector<1x4x256xf32> to vector<4x256xf32>
    %281 = vector.broadcast %277 : vector<4x1xf32> to vector<4x256xf32>
    %282 = arith.subf %280, %281 : vector<4x256xf32>
    %283 = vector.broadcast %2 : vector<1x256xf32> to vector<4x256xf32>
    %284 = arith.mulf %282, %283 : vector<4x256xf32>
    %285 = arith.mulf %284, %284 : vector<4x256xf32>
    %cst_325 = arith.constant dense<0.000000e+00> : vector<4xf32>
    %286 = vector.multi_reduction <add>, %285, %cst_325 [1] : vector<4x256xf32> to vector<4xf32>
    %287 = vector.shape_cast %286 : vector<4xf32> to vector<4x1xf32>
    %288 = arith.addf %278, %287 : vector<4x1xf32>
    %c1_326 = arith.constant 1 : index
    %c0_327 = arith.constant 0 : index
    %c0_328 = arith.constant 0 : index
    %289 = vector.load %arg12[%c1_326, %c0_327, %c0_328] : memref<4x4x256xf32, #tpu.memory_space<vmem>>, vector<1x4x256xf32>
    %290 = vector.shape_cast %289 : vector<1x4x256xf32> to vector<4x256xf32>
    %291 = vector.broadcast %277 : vector<4x1xf32> to vector<4x256xf32>
    %292 = arith.subf %290, %291 : vector<4x256xf32>
    %293 = vector.broadcast %2 : vector<1x256xf32> to vector<4x256xf32>
    %294 = arith.mulf %292, %293 : vector<4x256xf32>
    %295 = arith.mulf %294, %294 : vector<4x256xf32>
    %cst_329 = arith.constant dense<0.000000e+00> : vector<4xf32>
    %296 = vector.multi_reduction <add>, %295, %cst_329 [1] : vector<4x256xf32> to vector<4xf32>
    %297 = vector.shape_cast %296 : vector<4xf32> to vector<4x1xf32>
    %298 = arith.addf %288, %297 : vector<4x1xf32>
    %c2_330 = arith.constant 2 : index
    %c0_331 = arith.constant 0 : index
    %c0_332 = arith.constant 0 : index
    %299 = vector.load %arg12[%c2_330, %c0_331, %c0_332] : memref<4x4x256xf32, #tpu.memory_space<vmem>>, vector<1x4x256xf32>
    %300 = vector.shape_cast %299 : vector<1x4x256xf32> to vector<4x256xf32>
    %301 = vector.broadcast %277 : vector<4x1xf32> to vector<4x256xf32>
    %302 = arith.subf %300, %301 : vector<4x256xf32>
    %303 = vector.broadcast %2 : vector<1x256xf32> to vector<4x256xf32>
    %304 = arith.mulf %302, %303 : vector<4x256xf32>
    %305 = arith.mulf %304, %304 : vector<4x256xf32>
    %cst_333 = arith.constant dense<0.000000e+00> : vector<4xf32>
    %306 = vector.multi_reduction <add>, %305, %cst_333 [1] : vector<4x256xf32> to vector<4xf32>
    %307 = vector.shape_cast %306 : vector<4xf32> to vector<4x1xf32>
    %308 = arith.addf %298, %307 : vector<4x1xf32>
    %c3_334 = arith.constant 3 : index
    %c0_335 = arith.constant 0 : index
    %c0_336 = arith.constant 0 : index
    %309 = vector.load %arg12[%c3_334, %c0_335, %c0_336] : memref<4x4x256xf32, #tpu.memory_space<vmem>>, vector<1x4x256xf32>
    %310 = vector.shape_cast %309 : vector<1x4x256xf32> to vector<4x256xf32>
    %311 = vector.broadcast %277 : vector<4x1xf32> to vector<4x256xf32>
    %312 = arith.subf %310, %311 : vector<4x256xf32>
    %313 = vector.broadcast %2 : vector<1x256xf32> to vector<4x256xf32>
    %314 = arith.mulf %312, %313 : vector<4x256xf32>
    %315 = arith.mulf %314, %314 : vector<4x256xf32>
    %cst_337 = arith.constant dense<0.000000e+00> : vector<4xf32>
    %316 = vector.multi_reduction <add>, %315, %cst_337 [1] : vector<4x256xf32> to vector<4xf32>
    %317 = vector.shape_cast %316 : vector<4xf32> to vector<4x1xf32>
    %318 = arith.addf %308, %317 : vector<4x1xf32>
    %cst_338 = arith.constant 0.001953125 : f32
    %319 = vector.broadcast %cst_338 : f32 to vector<4x1xf32>
    %320 = arith.mulf %318, %319 : vector<4x1xf32>
    %cst_339 = arith.constant 9.99999974E-6 : f32
    %321 = vector.broadcast %cst_339 : f32 to vector<4x1xf32>
    %322 = arith.addf %320, %321 : vector<4x1xf32>
    %323 = math.rsqrt %322 : vector<4x1xf32>
    %c0_340 = arith.constant 0 : index
    %c0_341 = arith.constant 0 : index
    %324 = vector.load %arg6[%c0_340, %c0_341] : memref<4x1xf32, #tpu.memory_space<vmem>>, vector<4x1xf32>
    %325 = arith.mulf %323, %324 : vector<4x1xf32>
    %c0_342 = arith.constant 0 : index
    %c0_343 = arith.constant 0 : index
    %326 = vector.load %arg7[%c0_342, %c0_343] : memref<4x1xf32, #tpu.memory_space<vmem>>, vector<4x1xf32>
    %327 = arith.mulf %277, %325 : vector<4x1xf32>
    %328 = arith.subf %326, %327 : vector<4x1xf32>
    %c0_344 = arith.constant 0 : index
    %c0_345 = arith.constant 0 : index
    %c0_346 = arith.constant 0 : index
    %329 = vector.load %arg12[%c0_344, %c0_345, %c0_346] : memref<4x4x256xf32, #tpu.memory_space<vmem>>, vector<1x4x256xf32>
    %330 = vector.shape_cast %329 : vector<1x4x256xf32> to vector<4x256xf32>
    %331 = vector.broadcast %325 : vector<4x1xf32> to vector<4x256xf32>
    %332 = arith.mulf %330, %331 : vector<4x256xf32>
    %333 = vector.broadcast %328 : vector<4x1xf32> to vector<4x256xf32>
    %334 = arith.addf %332, %333 : vector<4x256xf32>
    %cst_347 = arith.constant 0.000000e+00 : f32
    %335 = vector.broadcast %cst_347 : f32 to vector<4x256xf32>
    %336 = arith.maximumf %334, %335 : vector<4x256xf32>
    %337 = vector.broadcast %2 : vector<1x256xf32> to vector<4x256xf32>
    %338 = arith.mulf %336, %337 : vector<4x256xf32>
    %339 = arith.addf %338, %10 : vector<4x256xf32>
    %c0_348 = arith.constant 0 : index
    %c0_349 = arith.constant 0 : index
    %c0_350 = arith.constant 0 : index
    %340 = vector.load %arg12[%c0_348, %c0_349, %c0_350] : memref<4x4x256xf32, #tpu.memory_space<vmem>>, vector<1x4x256xf32>
    %341 = vector.shape_cast %340 : vector<1x4x256xf32> to vector<4x256xf32>
    %342 = vector.shape_cast %339 : vector<4x256xf32> to vector<1x4x256xf32>
    tpu.vector_store %arg12[%c0_348, %c0_349, %c0_350], %342 {strides = array<i32>} : memref<4x4x256xf32, #tpu.memory_space<vmem>>, vector<1x4x256xf32>,
    %c1_351 = arith.constant 1 : index
    %c0_352 = arith.constant 0 : index
    %c0_353 = arith.constant 0 : index
    %343 = vector.load %arg12[%c1_351, %c0_352, %c0_353] : memref<4x4x256xf32, #tpu.memory_space<vmem>>, vector<1x4x256xf32>
    %344 = vector.shape_cast %343 : vector<1x4x256xf32> to vector<4x256xf32>
    %345 = vector.broadcast %325 : vector<4x1xf32> to vector<4x256xf32>
    %346 = arith.mulf %344, %345 : vector<4x256xf32>
    %347 = vector.broadcast %328 : vector<4x1xf32> to vector<4x256xf32>
    %348 = arith.addf %346, %347 : vector<4x256xf32>
    %cst_354 = arith.constant 0.000000e+00 : f32
    %349 = vector.broadcast %cst_354 : f32 to vector<4x256xf32>
    %350 = arith.maximumf %348, %349 : vector<4x256xf32>
    %351 = vector.broadcast %2 : vector<1x256xf32> to vector<4x256xf32>
    %352 = arith.mulf %350, %351 : vector<4x256xf32>
    %353 = arith.addf %352, %10 : vector<4x256xf32>
    %c1_355 = arith.constant 1 : index
    %c0_356 = arith.constant 0 : index
    %c0_357 = arith.constant 0 : index
    %354 = vector.load %arg12[%c1_355, %c0_356, %c0_357] : memref<4x4x256xf32, #tpu.memory_space<vmem>>, vector<1x4x256xf32>
    %355 = vector.shape_cast %354 : vector<1x4x256xf32> to vector<4x256xf32>
    %356 = vector.shape_cast %353 : vector<4x256xf32> to vector<1x4x256xf32>
    tpu.vector_store %arg12[%c1_355, %c0_356, %c0_357], %356 {strides = array<i32>} : memref<4x4x256xf32, #tpu.memory_space<vmem>>, vector<1x4x256xf32>,
    %c2_358 = arith.constant 2 : index
    %c0_359 = arith.constant 0 : index
    %c0_360 = arith.constant 0 : index
    %357 = vector.load %arg12[%c2_358, %c0_359, %c0_360] : memref<4x4x256xf32, #tpu.memory_space<vmem>>, vector<1x4x256xf32>
    %358 = vector.shape_cast %357 : vector<1x4x256xf32> to vector<4x256xf32>
    %359 = vector.broadcast %325 : vector<4x1xf32> to vector<4x256xf32>
    %360 = arith.mulf %358, %359 : vector<4x256xf32>
    %361 = vector.broadcast %328 : vector<4x1xf32> to vector<4x256xf32>
    %362 = arith.addf %360, %361 : vector<4x256xf32>
    %cst_361 = arith.constant 0.000000e+00 : f32
    %363 = vector.broadcast %cst_361 : f32 to vector<4x256xf32>
    %364 = arith.maximumf %362, %363 : vector<4x256xf32>
    %365 = vector.broadcast %2 : vector<1x256xf32> to vector<4x256xf32>
    %366 = arith.mulf %364, %365 : vector<4x256xf32>
    %367 = arith.addf %366, %10 : vector<4x256xf32>
    %c2_362 = arith.constant 2 : index
    %c0_363 = arith.constant 0 : index
    %c0_364 = arith.constant 0 : index
    %368 = vector.load %arg12[%c2_362, %c0_363, %c0_364] : memref<4x4x256xf32, #tpu.memory_space<vmem>>, vector<1x4x256xf32>
    %369 = vector.shape_cast %368 : vector<1x4x256xf32> to vector<4x256xf32>
    %370 = vector.shape_cast %367 : vector<4x256xf32> to vector<1x4x256xf32>
    tpu.vector_store %arg12[%c2_362, %c0_363, %c0_364], %370 {strides = array<i32>} : memref<4x4x256xf32, #tpu.memory_space<vmem>>, vector<1x4x256xf32>,
    %c3_365 = arith.constant 3 : index
    %c0_366 = arith.constant 0 : index
    %c0_367 = arith.constant 0 : index
    %371 = vector.load %arg12[%c3_365, %c0_366, %c0_367] : memref<4x4x256xf32, #tpu.memory_space<vmem>>, vector<1x4x256xf32>
    %372 = vector.shape_cast %371 : vector<1x4x256xf32> to vector<4x256xf32>
    %373 = vector.broadcast %325 : vector<4x1xf32> to vector<4x256xf32>
    %374 = arith.mulf %372, %373 : vector<4x256xf32>
    %375 = vector.broadcast %328 : vector<4x1xf32> to vector<4x256xf32>
    %376 = arith.addf %374, %375 : vector<4x256xf32>
    %cst_368 = arith.constant 0.000000e+00 : f32
    %377 = vector.broadcast %cst_368 : f32 to vector<4x256xf32>
    %378 = arith.maximumf %376, %377 : vector<4x256xf32>
    %379 = vector.broadcast %2 : vector<1x256xf32> to vector<4x256xf32>
    %380 = arith.mulf %378, %379 : vector<4x256xf32>
    %381 = arith.addf %380, %10 : vector<4x256xf32>
    %c3_369 = arith.constant 3 : index
    %c0_370 = arith.constant 0 : index
    %c0_371 = arith.constant 0 : index
    %382 = vector.load %arg12[%c3_369, %c0_370, %c0_371] : memref<4x4x256xf32, #tpu.memory_space<vmem>>, vector<1x4x256xf32>
    %383 = vector.shape_cast %382 : vector<1x4x256xf32> to vector<4x256xf32>
    %384 = vector.shape_cast %381 : vector<4x256xf32> to vector<1x4x256xf32>
    tpu.vector_store %arg12[%c3_369, %c0_370, %c0_371], %384 {strides = array<i32>} : memref<4x4x256xf32, #tpu.memory_space<vmem>>, vector<1x4x256xf32>,
    %cst_372 = arith.constant 0.000000e+00 : f32
    %385 = vector.broadcast %cst_372 : f32 to vector<4x1xf32>
    %c0_373 = arith.constant 0 : index
    %c0_374 = arith.constant 0 : index
    %c0_375 = arith.constant 0 : index
    %386 = vector.load %arg8[%c0_373, %c0_374, %c0_375] : memref<9x4x4xf32, #tpu.memory_space<vmem>>, vector<1x4x4xf32>
    %387 = vector.shape_cast %386 : vector<1x4x4xf32> to vector<4x4xf32>
    %c3_376 = arith.constant 3 : index
    %c0_377 = arith.constant 0 : index
    %c0_378 = arith.constant 0 : index
    %388 = vector.load %arg12[%c3_376, %c0_377, %c0_378] : memref<4x4x256xf32, #tpu.memory_space<vmem>>, vector<1x4x256xf32>
    %389 = vector.shape_cast %388 : vector<1x4x256xf32> to vector<4x256xf32>
    %cst_379 = arith.constant dense<0.000000e+00> : vector<4x256xf32>
    %390 = tpu.matmul %387, %389, %cst_379 {dimension_numbers = #tpu.dot_dimension_numbers<[1], [0], [0], [1], [0, 0, 1, 1], [], []>} : vector<4x4xf32>, vector<4x256xf32>, vector<4x256xf32> -> vector<4x256xf32>
    %c11_i32_380 = arith.constant 11 : i32
    %391 = tpu.dynamic_rotate %390 by %c11_i32_380 dim 1 : vector<4x256xf32>, i32 -> vector<4x256xf32>
    %c1_381 = arith.constant 1 : index
    %c0_382 = arith.constant 0 : index
    %c0_383 = arith.constant 0 : index
    %392 = vector.load %arg8[%c1_381, %c0_382, %c0_383] : memref<9x4x4xf32, #tpu.memory_space<vmem>>, vector<1x4x4xf32>
    %393 = vector.shape_cast %392 : vector<1x4x4xf32> to vector<4x4xf32>
    %c2_384 = arith.constant 2 : index
    %c0_385 = arith.constant 0 : index
    %c0_386 = arith.constant 0 : index
    %394 = vector.load %arg12[%c2_384, %c0_385, %c0_386] : memref<4x4x256xf32, #tpu.memory_space<vmem>>, vector<1x4x256xf32>
    %395 = vector.shape_cast %394 : vector<1x4x256xf32> to vector<4x256xf32>
    %cst_387 = arith.constant dense<0.000000e+00> : vector<4x256xf32>
    %396 = tpu.matmul %393, %395, %cst_387 {dimension_numbers = #tpu.dot_dimension_numbers<[1], [0], [0], [1], [0, 0, 1, 1], [], []>} : vector<4x4xf32>, vector<4x256xf32>, vector<4x256xf32> -> vector<4x256xf32>
    %c10_i32_388 = arith.constant 10 : i32
    %397 = tpu.dynamic_rotate %396 by %c10_i32_388 dim 1 : vector<4x256xf32>, i32 -> vector<4x256xf32>
    %398 = arith.addf %391, %397 : vector<4x256xf32>
    %c2_389 = arith.constant 2 : index
    %c0_390 = arith.constant 0 : index
    %c0_391 = arith.constant 0 : index
    %399 = vector.load %arg8[%c2_389, %c0_390, %c0_391] : memref<9x4x4xf32, #tpu.memory_space<vmem>>, vector<1x4x4xf32>
    %400 = vector.shape_cast %399 : vector<1x4x4xf32> to vector<4x4xf32>
    %c3_392 = arith.constant 3 : index
    %c0_393 = arith.constant 0 : index
    %c0_394 = arith.constant 0 : index
    %401 = vector.load %arg12[%c3_392, %c0_393, %c0_394] : memref<4x4x256xf32, #tpu.memory_space<vmem>>, vector<1x4x256xf32>
    %402 = vector.shape_cast %401 : vector<1x4x256xf32> to vector<4x256xf32>
    %cst_395 = arith.constant dense<0.000000e+00> : vector<4x256xf32>
    %403 = tpu.matmul %400, %402, %cst_395 {dimension_numbers = #tpu.dot_dimension_numbers<[1], [0], [0], [1], [0, 0, 1, 1], [], []>} : vector<4x4xf32>, vector<4x256xf32>, vector<4x256xf32> -> vector<4x256xf32>
    %c10_i32_396 = arith.constant 10 : i32
    %404 = tpu.dynamic_rotate %403 by %c10_i32_396 dim 1 : vector<4x256xf32>, i32 -> vector<4x256xf32>
    %405 = arith.addf %398, %404 : vector<4x256xf32>
    %c3_397 = arith.constant 3 : index
    %c0_398 = arith.constant 0 : index
    %c0_399 = arith.constant 0 : index
    %406 = vector.load %arg8[%c3_397, %c0_398, %c0_399] : memref<9x4x4xf32, #tpu.memory_space<vmem>>, vector<1x4x4xf32>
    %407 = vector.shape_cast %406 : vector<1x4x4xf32> to vector<4x4xf32>
    %c1_400 = arith.constant 1 : index
    %c0_401 = arith.constant 0 : index
    %c0_402 = arith.constant 0 : index
    %408 = vector.load %arg12[%c1_400, %c0_401, %c0_402] : memref<4x4x256xf32, #tpu.memory_space<vmem>>, vector<1x4x256xf32>
    %409 = vector.shape_cast %408 : vector<1x4x256xf32> to vector<4x256xf32>
    %cst_403 = arith.constant dense<0.000000e+00> : vector<4x256xf32>
    %410 = tpu.matmul %407, %409, %cst_403 {dimension_numbers = #tpu.dot_dimension_numbers<[1], [0], [0], [1], [0, 0, 1, 1], [], []>} : vector<4x4xf32>, vector<4x256xf32>, vector<4x256xf32> -> vector<4x256xf32>
    %c1_i32_404 = arith.constant 1 : i32
    %411 = tpu.dynamic_rotate %410 by %c1_i32_404 dim 1 : vector<4x256xf32>, i32 -> vector<4x256xf32>
    %412 = arith.addf %405, %411 : vector<4x256xf32>
    %c4_405 = arith.constant 4 : index
    %c0_406 = arith.constant 0 : index
    %c0_407 = arith.constant 0 : index
    %413 = vector.load %arg8[%c4_405, %c0_406, %c0_407] : memref<9x4x4xf32, #tpu.memory_space<vmem>>, vector<1x4x4xf32>
    %414 = vector.shape_cast %413 : vector<1x4x4xf32> to vector<4x4xf32>
    %c0_408 = arith.constant 0 : index
    %c0_409 = arith.constant 0 : index
    %c0_410 = arith.constant 0 : index
    %415 = vector.load %arg12[%c0_408, %c0_409, %c0_410] : memref<4x4x256xf32, #tpu.memory_space<vmem>>, vector<1x4x256xf32>
    %416 = vector.shape_cast %415 : vector<1x4x256xf32> to vector<4x256xf32>
    %cst_411 = arith.constant dense<0.000000e+00> : vector<4x256xf32>
    %417 = tpu.matmul %414, %416, %cst_411 {dimension_numbers = #tpu.dot_dimension_numbers<[1], [0], [0], [1], [0, 0, 1, 1], [], []>} : vector<4x4xf32>, vector<4x256xf32>, vector<4x256xf32> -> vector<4x256xf32>
    %418 = arith.addf %412, %417 : vector<4x256xf32>
    %c5_412 = arith.constant 5 : index
    %c0_413 = arith.constant 0 : index
    %c0_414 = arith.constant 0 : index
    %419 = vector.load %arg8[%c5_412, %c0_413, %c0_414] : memref<9x4x4xf32, #tpu.memory_space<vmem>>, vector<1x4x4xf32>
    %420 = vector.shape_cast %419 : vector<1x4x4xf32> to vector<4x4xf32>
    %c1_415 = arith.constant 1 : index
    %c0_416 = arith.constant 0 : index
    %c0_417 = arith.constant 0 : index
    %421 = vector.load %arg12[%c1_415, %c0_416, %c0_417] : memref<4x4x256xf32, #tpu.memory_space<vmem>>, vector<1x4x256xf32>
    %422 = vector.shape_cast %421 : vector<1x4x256xf32> to vector<4x256xf32>
    %cst_418 = arith.constant dense<0.000000e+00> : vector<4x256xf32>
    %423 = tpu.matmul %420, %422, %cst_418 {dimension_numbers = #tpu.dot_dimension_numbers<[1], [0], [0], [1], [0, 0, 1, 1], [], []>} : vector<4x4xf32>, vector<4x256xf32>, vector<4x256xf32> -> vector<4x256xf32>
    %424 = arith.addf %418, %423 : vector<4x256xf32>
    %c6_419 = arith.constant 6 : index
    %c0_420 = arith.constant 0 : index
    %c0_421 = arith.constant 0 : index
    %425 = vector.load %arg8[%c6_419, %c0_420, %c0_421] : memref<9x4x4xf32, #tpu.memory_space<vmem>>, vector<1x4x4xf32>
    %426 = vector.shape_cast %425 : vector<1x4x4xf32> to vector<4x4xf32>
    %c3_422 = arith.constant 3 : index
    %c0_423 = arith.constant 0 : index
    %c0_424 = arith.constant 0 : index
    %427 = vector.load %arg12[%c3_422, %c0_423, %c0_424] : memref<4x4x256xf32, #tpu.memory_space<vmem>>, vector<1x4x256xf32>
    %428 = vector.shape_cast %427 : vector<1x4x256xf32> to vector<4x256xf32>
    %cst_425 = arith.constant dense<0.000000e+00> : vector<4x256xf32>
    %429 = tpu.matmul %426, %428, %cst_425 {dimension_numbers = #tpu.dot_dimension_numbers<[1], [0], [0], [1], [0, 0, 1, 1], [], []>} : vector<4x4xf32>, vector<4x256xf32>, vector<4x256xf32> -> vector<4x256xf32>
    %c1_i32_426 = arith.constant 1 : i32
    %430 = tpu.dynamic_rotate %429 by %c1_i32_426 dim 1 : vector<4x256xf32>, i32 -> vector<4x256xf32>
    %431 = arith.addf %424, %430 : vector<4x256xf32>
    %c7_427 = arith.constant 7 : index
    %c0_428 = arith.constant 0 : index
    %c0_429 = arith.constant 0 : index
    %432 = vector.load %arg8[%c7_427, %c0_428, %c0_429] : memref<9x4x4xf32, #tpu.memory_space<vmem>>, vector<1x4x4xf32>
    %433 = vector.shape_cast %432 : vector<1x4x4xf32> to vector<4x4xf32>
    %c2_430 = arith.constant 2 : index
    %c0_431 = arith.constant 0 : index
    %c0_432 = arith.constant 0 : index
    %434 = vector.load %arg12[%c2_430, %c0_431, %c0_432] : memref<4x4x256xf32, #tpu.memory_space<vmem>>, vector<1x4x256xf32>
    %435 = vector.shape_cast %434 : vector<1x4x256xf32> to vector<4x256xf32>
    %cst_433 = arith.constant dense<0.000000e+00> : vector<4x256xf32>
    %436 = tpu.matmul %433, %435, %cst_433 {dimension_numbers = #tpu.dot_dimension_numbers<[1], [0], [0], [1], [0, 0, 1, 1], [], []>} : vector<4x4xf32>, vector<4x256xf32>, vector<4x256xf32> -> vector<4x256xf32>
    %437 = arith.addf %431, %436 : vector<4x256xf32>
    %c8_434 = arith.constant 8 : index
    %c0_435 = arith.constant 0 : index
    %c0_436 = arith.constant 0 : index
    %438 = vector.load %arg8[%c8_434, %c0_435, %c0_436] : memref<9x4x4xf32, #tpu.memory_space<vmem>>, vector<1x4x4xf32>
    %439 = vector.shape_cast %438 : vector<1x4x4xf32> to vector<4x4xf32>
    %c3_437 = arith.constant 3 : index
    %c0_438 = arith.constant 0 : index
    %c0_439 = arith.constant 0 : index
    %440 = vector.load %arg12[%c3_437, %c0_438, %c0_439] : memref<4x4x256xf32, #tpu.memory_space<vmem>>, vector<1x4x256xf32>
    %441 = vector.shape_cast %440 : vector<1x4x256xf32> to vector<4x256xf32>
    %cst_440 = arith.constant dense<0.000000e+00> : vector<4x256xf32>
    %442 = tpu.matmul %439, %441, %cst_440 {dimension_numbers = #tpu.dot_dimension_numbers<[1], [0], [0], [1], [0, 0, 1, 1], [], []>} : vector<4x4xf32>, vector<4x256xf32>, vector<4x256xf32> -> vector<4x256xf32>
    %443 = arith.addf %437, %442 : vector<4x256xf32>
    %c0_441 = arith.constant 0 : index
    %c0_442 = arith.constant 0 : index
    %c0_443 = arith.constant 0 : index
    %444 = vector.load %arg11[%c0_441, %c0_442, %c0_443] : memref<4x4x256xf32, #tpu.memory_space<vmem>>, vector<1x4x256xf32>
    %445 = vector.shape_cast %444 : vector<1x4x256xf32> to vector<4x256xf32>
    %446 = vector.shape_cast %443 : vector<4x256xf32> to vector<1x4x256xf32>
    tpu.vector_store %arg11[%c0_441, %c0_442, %c0_443], %446 {strides = array<i32>} : memref<4x4x256xf32, #tpu.memory_space<vmem>>, vector<1x4x256xf32>,
    %447 = vector.broadcast %2 : vector<1x256xf32> to vector<4x256xf32>
    %448 = arith.mulf %443, %447 : vector<4x256xf32>
    %cst_444 = arith.constant dense<0.000000e+00> : vector<4xf32>
    %449 = vector.multi_reduction <add>, %448, %cst_444 [1] : vector<4x256xf32> to vector<4xf32>
    %450 = vector.shape_cast %449 : vector<4xf32> to vector<4x1xf32>
    %451 = arith.addf %385, %450 : vector<4x1xf32>
    %c0_445 = arith.constant 0 : index
    %c0_446 = arith.constant 0 : index
    %c0_447 = arith.constant 0 : index
    %452 = vector.load %arg8[%c0_445, %c0_446, %c0_447] : memref<9x4x4xf32, #tpu.memory_space<vmem>>, vector<1x4x4xf32>
    %453 = vector.shape_cast %452 : vector<1x4x4xf32> to vector<4x4xf32>
    %c2_448 = arith.constant 2 : index
    %c0_449 = arith.constant 0 : index
    %c0_450 = arith.constant 0 : index
    %454 = vector.load %arg12[%c2_448, %c0_449, %c0_450] : memref<4x4x256xf32, #tpu.memory_space<vmem>>, vector<1x4x256xf32>
    %455 = vector.shape_cast %454 : vector<1x4x256xf32> to vector<4x256xf32>
    %cst_451 = arith.constant dense<0.000000e+00> : vector<4x256xf32>
    %456 = tpu.matmul %453, %455, %cst_451 {dimension_numbers = #tpu.dot_dimension_numbers<[1], [0], [0], [1], [0, 0, 1, 1], [], []>} : vector<4x4xf32>, vector<4x256xf32>, vector<4x256xf32> -> vector<4x256xf32>
    %c10_i32_452 = arith.constant 10 : i32
    %457 = tpu.dynamic_rotate %456 by %c10_i32_452 dim 1 : vector<4x256xf32>, i32 -> vector<4x256xf32>
    %c1_453 = arith.constant 1 : index
    %c0_454 = arith.constant 0 : index
    %c0_455 = arith.constant 0 : index
    %458 = vector.load %arg8[%c1_453, %c0_454, %c0_455] : memref<9x4x4xf32, #tpu.memory_space<vmem>>, vector<1x4x4xf32>
    %459 = vector.shape_cast %458 : vector<1x4x4xf32> to vector<4x4xf32>
    %c3_456 = arith.constant 3 : index
    %c0_457 = arith.constant 0 : index
    %c0_458 = arith.constant 0 : index
    %460 = vector.load %arg12[%c3_456, %c0_457, %c0_458] : memref<4x4x256xf32, #tpu.memory_space<vmem>>, vector<1x4x256xf32>
    %461 = vector.shape_cast %460 : vector<1x4x256xf32> to vector<4x256xf32>
    %cst_459 = arith.constant dense<0.000000e+00> : vector<4x256xf32>
    %462 = tpu.matmul %459, %461, %cst_459 {dimension_numbers = #tpu.dot_dimension_numbers<[1], [0], [0], [1], [0, 0, 1, 1], [], []>} : vector<4x4xf32>, vector<4x256xf32>, vector<4x256xf32> -> vector<4x256xf32>
    %c10_i32_460 = arith.constant 10 : i32
    %463 = tpu.dynamic_rotate %462 by %c10_i32_460 dim 1 : vector<4x256xf32>, i32 -> vector<4x256xf32>
    %464 = arith.addf %457, %463 : vector<4x256xf32>
    %c2_461 = arith.constant 2 : index
    %c0_462 = arith.constant 0 : index
    %c0_463 = arith.constant 0 : index
    %465 = vector.load %arg8[%c2_461, %c0_462, %c0_463] : memref<9x4x4xf32, #tpu.memory_space<vmem>>, vector<1x4x4xf32>
    %466 = vector.shape_cast %465 : vector<1x4x4xf32> to vector<4x4xf32>
    %c2_464 = arith.constant 2 : index
    %c0_465 = arith.constant 0 : index
    %c0_466 = arith.constant 0 : index
    %467 = vector.load %arg12[%c2_464, %c0_465, %c0_466] : memref<4x4x256xf32, #tpu.memory_space<vmem>>, vector<1x4x256xf32>
    %468 = vector.shape_cast %467 : vector<1x4x256xf32> to vector<4x256xf32>
    %cst_467 = arith.constant dense<0.000000e+00> : vector<4x256xf32>
    %469 = tpu.matmul %466, %468, %cst_467 {dimension_numbers = #tpu.dot_dimension_numbers<[1], [0], [0], [1], [0, 0, 1, 1], [], []>} : vector<4x4xf32>, vector<4x256xf32>, vector<4x256xf32> -> vector<4x256xf32>
    %c9_i32_468 = arith.constant 9 : i32
    %470 = tpu.dynamic_rotate %469 by %c9_i32_468 dim 1 : vector<4x256xf32>, i32 -> vector<4x256xf32>
    %471 = arith.addf %464, %470 : vector<4x256xf32>
    %c3_469 = arith.constant 3 : index
    %c0_470 = arith.constant 0 : index
    %c0_471 = arith.constant 0 : index
    %472 = vector.load %arg8[%c3_469, %c0_470, %c0_471] : memref<9x4x4xf32, #tpu.memory_space<vmem>>, vector<1x4x4xf32>
    %473 = vector.shape_cast %472 : vector<1x4x4xf32> to vector<4x4xf32>
    %c0_472 = arith.constant 0 : index
    %c0_473 = arith.constant 0 : index
    %c0_474 = arith.constant 0 : index
    %474 = vector.load %arg12[%c0_472, %c0_473, %c0_474] : memref<4x4x256xf32, #tpu.memory_space<vmem>>, vector<1x4x256xf32>
    %475 = vector.shape_cast %474 : vector<1x4x256xf32> to vector<4x256xf32>
    %cst_475 = arith.constant dense<0.000000e+00> : vector<4x256xf32>
    %476 = tpu.matmul %473, %475, %cst_475 {dimension_numbers = #tpu.dot_dimension_numbers<[1], [0], [0], [1], [0, 0, 1, 1], [], []>} : vector<4x4xf32>, vector<4x256xf32>, vector<4x256xf32> -> vector<4x256xf32>
    %477 = arith.addf %471, %476 : vector<4x256xf32>
    %c4_476 = arith.constant 4 : index
    %c0_477 = arith.constant 0 : index
    %c0_478 = arith.constant 0 : index
    %478 = vector.load %arg8[%c4_476, %c0_477, %c0_478] : memref<9x4x4xf32, #tpu.memory_space<vmem>>, vector<1x4x4xf32>
    %479 = vector.shape_cast %478 : vector<1x4x4xf32> to vector<4x4xf32>
    %c1_479 = arith.constant 1 : index
    %c0_480 = arith.constant 0 : index
    %c0_481 = arith.constant 0 : index
    %480 = vector.load %arg12[%c1_479, %c0_480, %c0_481] : memref<4x4x256xf32, #tpu.memory_space<vmem>>, vector<1x4x256xf32>
    %481 = vector.shape_cast %480 : vector<1x4x256xf32> to vector<4x256xf32>
    %cst_482 = arith.constant dense<0.000000e+00> : vector<4x256xf32>
    %482 = tpu.matmul %479, %481, %cst_482 {dimension_numbers = #tpu.dot_dimension_numbers<[1], [0], [0], [1], [0, 0, 1, 1], [], []>} : vector<4x4xf32>, vector<4x256xf32>, vector<4x256xf32> -> vector<4x256xf32>
    %483 = arith.addf %477, %482 : vector<4x256xf32>
    %c5_483 = arith.constant 5 : index
    %c0_484 = arith.constant 0 : index
    %c0_485 = arith.constant 0 : index
    %484 = vector.load %arg8[%c5_483, %c0_484, %c0_485] : memref<9x4x4xf32, #tpu.memory_space<vmem>>, vector<1x4x4xf32>
    %485 = vector.shape_cast %484 : vector<1x4x4xf32> to vector<4x4xf32>
    %c0_486 = arith.constant 0 : index
    %c0_487 = arith.constant 0 : index
    %c0_488 = arith.constant 0 : index
    %486 = vector.load %arg12[%c0_486, %c0_487, %c0_488] : memref<4x4x256xf32, #tpu.memory_space<vmem>>, vector<1x4x256xf32>
    %487 = vector.shape_cast %486 : vector<1x4x256xf32> to vector<4x256xf32>
    %cst_489 = arith.constant dense<0.000000e+00> : vector<4x256xf32>
    %488 = tpu.matmul %485, %487, %cst_489 {dimension_numbers = #tpu.dot_dimension_numbers<[1], [0], [0], [1], [0, 0, 1, 1], [], []>} : vector<4x4xf32>, vector<4x256xf32>, vector<4x256xf32> -> vector<4x256xf32>
    %c255_i32_490 = arith.constant 255 : i32
    %489 = tpu.dynamic_rotate %488 by %c255_i32_490 dim 1 : vector<4x256xf32>, i32 -> vector<4x256xf32>
    %490 = arith.addf %483, %489 : vector<4x256xf32>
    %c6_491 = arith.constant 6 : index
    %c0_492 = arith.constant 0 : index
    %c0_493 = arith.constant 0 : index
    %491 = vector.load %arg8[%c6_491, %c0_492, %c0_493] : memref<9x4x4xf32, #tpu.memory_space<vmem>>, vector<1x4x4xf32>
    %492 = vector.shape_cast %491 : vector<1x4x4xf32> to vector<4x4xf32>
    %c2_494 = arith.constant 2 : index
    %c0_495 = arith.constant 0 : index
    %c0_496 = arith.constant 0 : index
    %493 = vector.load %arg12[%c2_494, %c0_495, %c0_496] : memref<4x4x256xf32, #tpu.memory_space<vmem>>, vector<1x4x256xf32>
    %494 = vector.shape_cast %493 : vector<1x4x256xf32> to vector<4x256xf32>
    %cst_497 = arith.constant dense<0.000000e+00> : vector<4x256xf32>
    %495 = tpu.matmul %492, %494, %cst_497 {dimension_numbers = #tpu.dot_dimension_numbers<[1], [0], [0], [1], [0, 0, 1, 1], [], []>} : vector<4x4xf32>, vector<4x256xf32>, vector<4x256xf32> -> vector<4x256xf32>
    %496 = arith.addf %490, %495 : vector<4x256xf32>
    %c7_498 = arith.constant 7 : index
    %c0_499 = arith.constant 0 : index
    %c0_500 = arith.constant 0 : index
    %497 = vector.load %arg8[%c7_498, %c0_499, %c0_500] : memref<9x4x4xf32, #tpu.memory_space<vmem>>, vector<1x4x4xf32>
    %498 = vector.shape_cast %497 : vector<1x4x4xf32> to vector<4x4xf32>
    %c3_501 = arith.constant 3 : index
    %c0_502 = arith.constant 0 : index
    %c0_503 = arith.constant 0 : index
    %499 = vector.load %arg12[%c3_501, %c0_502, %c0_503] : memref<4x4x256xf32, #tpu.memory_space<vmem>>, vector<1x4x256xf32>
    %500 = vector.shape_cast %499 : vector<1x4x256xf32> to vector<4x256xf32>
    %cst_504 = arith.constant dense<0.000000e+00> : vector<4x256xf32>
    %501 = tpu.matmul %498, %500, %cst_504 {dimension_numbers = #tpu.dot_dimension_numbers<[1], [0], [0], [1], [0, 0, 1, 1], [], []>} : vector<4x4xf32>, vector<4x256xf32>, vector<4x256xf32> -> vector<4x256xf32>
    %502 = arith.addf %496, %501 : vector<4x256xf32>
    %c8_505 = arith.constant 8 : index
    %c0_506 = arith.constant 0 : index
    %c0_507 = arith.constant 0 : index
    %503 = vector.load %arg8[%c8_505, %c0_506, %c0_507] : memref<9x4x4xf32, #tpu.memory_space<vmem>>, vector<1x4x4xf32>
    %504 = vector.shape_cast %503 : vector<1x4x4xf32> to vector<4x4xf32>
    %c2_508 = arith.constant 2 : index
    %c0_509 = arith.constant 0 : index
    %c0_510 = arith.constant 0 : index
    %505 = vector.load %arg12[%c2_508, %c0_509, %c0_510] : memref<4x4x256xf32, #tpu.memory_space<vmem>>, vector<1x4x256xf32>
    %506 = vector.shape_cast %505 : vector<1x4x256xf32> to vector<4x256xf32>
    %cst_511 = arith.constant dense<0.000000e+00> : vector<4x256xf32>
    %507 = tpu.matmul %504, %506, %cst_511 {dimension_numbers = #tpu.dot_dimension_numbers<[1], [0], [0], [1], [0, 0, 1, 1], [], []>} : vector<4x4xf32>, vector<4x256xf32>, vector<4x256xf32> -> vector<4x256xf32>
    %c255_i32_512 = arith.constant 255 : i32
    %508 = tpu.dynamic_rotate %507 by %c255_i32_512 dim 1 : vector<4x256xf32>, i32 -> vector<4x256xf32>
    %509 = arith.addf %502, %508 : vector<4x256xf32>
    %c1_513 = arith.constant 1 : index
    %c0_514 = arith.constant 0 : index
    %c0_515 = arith.constant 0 : index
    %510 = vector.load %arg11[%c1_513, %c0_514, %c0_515] : memref<4x4x256xf32, #tpu.memory_space<vmem>>, vector<1x4x256xf32>
    %511 = vector.shape_cast %510 : vector<1x4x256xf32> to vector<4x256xf32>
    %512 = vector.shape_cast %509 : vector<4x256xf32> to vector<1x4x256xf32>
    tpu.vector_store %arg11[%c1_513, %c0_514, %c0_515], %512 {strides = array<i32>} : memref<4x4x256xf32, #tpu.memory_space<vmem>>, vector<1x4x256xf32>,
    %513 = vector.broadcast %2 : vector<1x256xf32> to vector<4x256xf32>
    %514 = arith.mulf %509, %513 : vector<4x256xf32>
    %cst_516 = arith.constant dense<0.000000e+00> : vector<4xf32>
    %515 = vector.multi_reduction <add>, %514, %cst_516 [1] : vector<4x256xf32> to vector<4xf32>
    %516 = vector.shape_cast %515 : vector<4xf32> to vector<4x1xf32>
    %517 = arith.addf %451, %516 : vector<4x1xf32>
    %c0_517 = arith.constant 0 : index
    %c0_518 = arith.constant 0 : index
    %c0_519 = arith.constant 0 : index
    %518 = vector.load %arg8[%c0_517, %c0_518, %c0_519] : memref<9x4x4xf32, #tpu.memory_space<vmem>>, vector<1x4x4xf32>
    %519 = vector.shape_cast %518 : vector<1x4x4xf32> to vector<4x4xf32>
    %c1_520 = arith.constant 1 : index
    %c0_521 = arith.constant 0 : index
    %c0_522 = arith.constant 0 : index
    %520 = vector.load %arg12[%c1_520, %c0_521, %c0_522] : memref<4x4x256xf32, #tpu.memory_space<vmem>>, vector<1x4x256xf32>
    %521 = vector.shape_cast %520 : vector<1x4x256xf32> to vector<4x256xf32>
    %cst_523 = arith.constant dense<0.000000e+00> : vector<4x256xf32>
    %522 = tpu.matmul %519, %521, %cst_523 {dimension_numbers = #tpu.dot_dimension_numbers<[1], [0], [0], [1], [0, 0, 1, 1], [], []>} : vector<4x4xf32>, vector<4x256xf32>, vector<4x256xf32> -> vector<4x256xf32>
    %c1_i32_524 = arith.constant 1 : i32
    %523 = tpu.dynamic_rotate %522 by %c1_i32_524 dim 1 : vector<4x256xf32>, i32 -> vector<4x256xf32>
    %c1_525 = arith.constant 1 : index
    %c0_526 = arith.constant 0 : index
    %c0_527 = arith.constant 0 : index
    %524 = vector.load %arg8[%c1_525, %c0_526, %c0_527] : memref<9x4x4xf32, #tpu.memory_space<vmem>>, vector<1x4x4xf32>
    %525 = vector.shape_cast %524 : vector<1x4x4xf32> to vector<4x4xf32>
    %c0_528 = arith.constant 0 : index
    %c0_529 = arith.constant 0 : index
    %c0_530 = arith.constant 0 : index
    %526 = vector.load %arg12[%c0_528, %c0_529, %c0_530] : memref<4x4x256xf32, #tpu.memory_space<vmem>>, vector<1x4x256xf32>
    %527 = vector.shape_cast %526 : vector<1x4x256xf32> to vector<4x256xf32>
    %cst_531 = arith.constant dense<0.000000e+00> : vector<4x256xf32>
    %528 = tpu.matmul %525, %527, %cst_531 {dimension_numbers = #tpu.dot_dimension_numbers<[1], [0], [0], [1], [0, 0, 1, 1], [], []>} : vector<4x4xf32>, vector<4x256xf32>, vector<4x256xf32> -> vector<4x256xf32>
    %529 = arith.addf %523, %528 : vector<4x256xf32>
    %c2_532 = arith.constant 2 : index
    %c0_533 = arith.constant 0 : index
    %c0_534 = arith.constant 0 : index
    %530 = vector.load %arg8[%c2_532, %c0_533, %c0_534] : memref<9x4x4xf32, #tpu.memory_space<vmem>>, vector<1x4x4xf32>
    %531 = vector.shape_cast %530 : vector<1x4x4xf32> to vector<4x4xf32>
    %c1_535 = arith.constant 1 : index
    %c0_536 = arith.constant 0 : index
    %c0_537 = arith.constant 0 : index
    %532 = vector.load %arg12[%c1_535, %c0_536, %c0_537] : memref<4x4x256xf32, #tpu.memory_space<vmem>>, vector<1x4x256xf32>
    %533 = vector.shape_cast %532 : vector<1x4x256xf32> to vector<4x256xf32>
    %cst_538 = arith.constant dense<0.000000e+00> : vector<4x256xf32>
    %534 = tpu.matmul %531, %533, %cst_538 {dimension_numbers = #tpu.dot_dimension_numbers<[1], [0], [0], [1], [0, 0, 1, 1], [], []>} : vector<4x4xf32>, vector<4x256xf32>, vector<4x256xf32> -> vector<4x256xf32>
    %535 = arith.addf %529, %534 : vector<4x256xf32>
    %c3_539 = arith.constant 3 : index
    %c0_540 = arith.constant 0 : index
    %c0_541 = arith.constant 0 : index
    %536 = vector.load %arg8[%c3_539, %c0_540, %c0_541] : memref<9x4x4xf32, #tpu.memory_space<vmem>>, vector<1x4x4xf32>
    %537 = vector.shape_cast %536 : vector<1x4x4xf32> to vector<4x4xf32>
    %c3_542 = arith.constant 3 : index
    %c0_543 = arith.constant 0 : index
    %c0_544 = arith.constant 0 : index
    %538 = vector.load %arg12[%c3_542, %c0_543, %c0_544] : memref<4x4x256xf32, #tpu.memory_space<vmem>>, vector<1x4x256xf32>
    %539 = vector.shape_cast %538 : vector<1x4x256xf32> to vector<4x256xf32>
    %cst_545 = arith.constant dense<0.000000e+00> : vector<4x256xf32>
    %540 = tpu.matmul %537, %539, %cst_545 {dimension_numbers = #tpu.dot_dimension_numbers<[1], [0], [0], [1], [0, 0, 1, 1], [], []>} : vector<4x4xf32>, vector<4x256xf32>, vector<4x256xf32> -> vector<4x256xf32>
    %c1_i32_546 = arith.constant 1 : i32
    %541 = tpu.dynamic_rotate %540 by %c1_i32_546 dim 1 : vector<4x256xf32>, i32 -> vector<4x256xf32>
    %542 = arith.addf %535, %541 : vector<4x256xf32>
    %c4_547 = arith.constant 4 : index
    %c0_548 = arith.constant 0 : index
    %c0_549 = arith.constant 0 : index
    %543 = vector.load %arg8[%c4_547, %c0_548, %c0_549] : memref<9x4x4xf32, #tpu.memory_space<vmem>>, vector<1x4x4xf32>
    %544 = vector.shape_cast %543 : vector<1x4x4xf32> to vector<4x4xf32>
    %c2_550 = arith.constant 2 : index
    %c0_551 = arith.constant 0 : index
    %c0_552 = arith.constant 0 : index
    %545 = vector.load %arg12[%c2_550, %c0_551, %c0_552] : memref<4x4x256xf32, #tpu.memory_space<vmem>>, vector<1x4x256xf32>
    %546 = vector.shape_cast %545 : vector<1x4x256xf32> to vector<4x256xf32>
    %cst_553 = arith.constant dense<0.000000e+00> : vector<4x256xf32>
    %547 = tpu.matmul %544, %546, %cst_553 {dimension_numbers = #tpu.dot_dimension_numbers<[1], [0], [0], [1], [0, 0, 1, 1], [], []>} : vector<4x4xf32>, vector<4x256xf32>, vector<4x256xf32> -> vector<4x256xf32>
    %548 = arith.addf %542, %547 : vector<4x256xf32>
    %c5_554 = arith.constant 5 : index
    %c0_555 = arith.constant 0 : index
    %c0_556 = arith.constant 0 : index
    %549 = vector.load %arg8[%c5_554, %c0_555, %c0_556] : memref<9x4x4xf32, #tpu.memory_space<vmem>>, vector<1x4x4xf32>
    %550 = vector.shape_cast %549 : vector<1x4x4xf32> to vector<4x4xf32>
    %c3_557 = arith.constant 3 : index
    %c0_558 = arith.constant 0 : index
    %c0_559 = arith.constant 0 : index
    %551 = vector.load %arg12[%c3_557, %c0_558, %c0_559] : memref<4x4x256xf32, #tpu.memory_space<vmem>>, vector<1x4x256xf32>
    %552 = vector.shape_cast %551 : vector<1x4x256xf32> to vector<4x256xf32>
    %cst_560 = arith.constant dense<0.000000e+00> : vector<4x256xf32>
    %553 = tpu.matmul %550, %552, %cst_560 {dimension_numbers = #tpu.dot_dimension_numbers<[1], [0], [0], [1], [0, 0, 1, 1], [], []>} : vector<4x4xf32>, vector<4x256xf32>, vector<4x256xf32> -> vector<4x256xf32>
    %554 = arith.addf %548, %553 : vector<4x256xf32>
    %c6_561 = arith.constant 6 : index
    %c0_562 = arith.constant 0 : index
    %c0_563 = arith.constant 0 : index
    %555 = vector.load %arg8[%c6_561, %c0_562, %c0_563] : memref<9x4x4xf32, #tpu.memory_space<vmem>>, vector<1x4x4xf32>
    %556 = vector.shape_cast %555 : vector<1x4x4xf32> to vector<4x4xf32>
    %c1_564 = arith.constant 1 : index
    %c0_565 = arith.constant 0 : index
    %c0_566 = arith.constant 0 : index
    %557 = vector.load %arg12[%c1_564, %c0_565, %c0_566] : memref<4x4x256xf32, #tpu.memory_space<vmem>>, vector<1x4x256xf32>
    %558 = vector.shape_cast %557 : vector<1x4x256xf32> to vector<4x256xf32>
    %cst_567 = arith.constant dense<0.000000e+00> : vector<4x256xf32>
    %559 = tpu.matmul %556, %558, %cst_567 {dimension_numbers = #tpu.dot_dimension_numbers<[1], [0], [0], [1], [0, 0, 1, 1], [], []>} : vector<4x4xf32>, vector<4x256xf32>, vector<4x256xf32> -> vector<4x256xf32>
    %c247_i32_568 = arith.constant 247 : i32
    %560 = tpu.dynamic_rotate %559 by %c247_i32_568 dim 1 : vector<4x256xf32>, i32 -> vector<4x256xf32>
    %561 = arith.addf %554, %560 : vector<4x256xf32>
    %c7_569 = arith.constant 7 : index
    %c0_570 = arith.constant 0 : index
    %c0_571 = arith.constant 0 : index
    %562 = vector.load %arg8[%c7_569, %c0_570, %c0_571] : memref<9x4x4xf32, #tpu.memory_space<vmem>>, vector<1x4x4xf32>
    %563 = vector.shape_cast %562 : vector<1x4x4xf32> to vector<4x4xf32>
    %c0_572 = arith.constant 0 : index
    %c0_573 = arith.constant 0 : index
    %c0_574 = arith.constant 0 : index
    %564 = vector.load %arg12[%c0_572, %c0_573, %c0_574] : memref<4x4x256xf32, #tpu.memory_space<vmem>>, vector<1x4x256xf32>
    %565 = vector.shape_cast %564 : vector<1x4x256xf32> to vector<4x256xf32>
    %cst_575 = arith.constant dense<0.000000e+00> : vector<4x256xf32>
    %566 = tpu.matmul %563, %565, %cst_575 {dimension_numbers = #tpu.dot_dimension_numbers<[1], [0], [0], [1], [0, 0, 1, 1], [], []>} : vector<4x4xf32>, vector<4x256xf32>, vector<4x256xf32> -> vector<4x256xf32>
    %c246_i32_576 = arith.constant 246 : i32
    %567 = tpu.dynamic_rotate %566 by %c246_i32_576 dim 1 : vector<4x256xf32>, i32 -> vector<4x256xf32>
    %568 = arith.addf %561, %567 : vector<4x256xf32>
    %c8_577 = arith.constant 8 : index
    %c0_578 = arith.constant 0 : index
    %c0_579 = arith.constant 0 : index
    %569 = vector.load %arg8[%c8_577, %c0_578, %c0_579] : memref<9x4x4xf32, #tpu.memory_space<vmem>>, vector<1x4x4xf32>
    %570 = vector.shape_cast %569 : vector<1x4x4xf32> to vector<4x4xf32>
    %c1_580 = arith.constant 1 : index
    %c0_581 = arith.constant 0 : index
    %c0_582 = arith.constant 0 : index
    %571 = vector.load %arg12[%c1_580, %c0_581, %c0_582] : memref<4x4x256xf32, #tpu.memory_space<vmem>>, vector<1x4x256xf32>
    %572 = vector.shape_cast %571 : vector<1x4x256xf32> to vector<4x256xf32>
    %cst_583 = arith.constant dense<0.000000e+00> : vector<4x256xf32>
    %573 = tpu.matmul %570, %572, %cst_583 {dimension_numbers = #tpu.dot_dimension_numbers<[1], [0], [0], [1], [0, 0, 1, 1], [], []>} : vector<4x4xf32>, vector<4x256xf32>, vector<4x256xf32> -> vector<4x256xf32>
    %c246_i32_584 = arith.constant 246 : i32
    %574 = tpu.dynamic_rotate %573 by %c246_i32_584 dim 1 : vector<4x256xf32>, i32 -> vector<4x256xf32>
    %575 = arith.addf %568, %574 : vector<4x256xf32>
    %c2_585 = arith.constant 2 : index
    %c0_586 = arith.constant 0 : index
    %c0_587 = arith.constant 0 : index
    %576 = vector.load %arg11[%c2_585, %c0_586, %c0_587] : memref<4x4x256xf32, #tpu.memory_space<vmem>>, vector<1x4x256xf32>
    %577 = vector.shape_cast %576 : vector<1x4x256xf32> to vector<4x256xf32>
    %578 = vector.shape_cast %575 : vector<4x256xf32> to vector<1x4x256xf32>
    tpu.vector_store %arg11[%c2_585, %c0_586, %c0_587], %578 {strides = array<i32>} : memref<4x4x256xf32, #tpu.memory_space<vmem>>, vector<1x4x256xf32>,
    %579 = vector.broadcast %2 : vector<1x256xf32> to vector<4x256xf32>
    %580 = arith.mulf %575, %579 : vector<4x256xf32>
    %cst_588 = arith.constant dense<0.000000e+00> : vector<4xf32>
    %581 = vector.multi_reduction <add>, %580, %cst_588 [1] : vector<4x256xf32> to vector<4xf32>
    %582 = vector.shape_cast %581 : vector<4xf32> to vector<4x1xf32>
    %583 = arith.addf %517, %582 : vector<4x1xf32>
    %c0_589 = arith.constant 0 : index
    %c0_590 = arith.constant 0 : index
    %c0_591 = arith.constant 0 : index
    %584 = vector.load %arg8[%c0_589, %c0_590, %c0_591] : memref<9x4x4xf32, #tpu.memory_space<vmem>>, vector<1x4x4xf32>
    %585 = vector.shape_cast %584 : vector<1x4x4xf32> to vector<4x4xf32>
    %c0_592 = arith.constant 0 : index
    %c0_593 = arith.constant 0 : index
    %c0_594 = arith.constant 0 : index
    %586 = vector.load %arg12[%c0_592, %c0_593, %c0_594] : memref<4x4x256xf32, #tpu.memory_space<vmem>>, vector<1x4x256xf32>
    %587 = vector.shape_cast %586 : vector<1x4x256xf32> to vector<4x256xf32>
    %cst_595 = arith.constant dense<0.000000e+00> : vector<4x256xf32>
    %588 = tpu.matmul %585, %587, %cst_595 {dimension_numbers = #tpu.dot_dimension_numbers<[1], [0], [0], [1], [0, 0, 1, 1], [], []>} : vector<4x4xf32>, vector<4x256xf32>, vector<4x256xf32> -> vector<4x256xf32>
    %c1_596 = arith.constant 1 : index
    %c0_597 = arith.constant 0 : index
    %c0_598 = arith.constant 0 : index
    %589 = vector.load %arg8[%c1_596, %c0_597, %c0_598] : memref<9x4x4xf32, #tpu.memory_space<vmem>>, vector<1x4x4xf32>
    %590 = vector.shape_cast %589 : vector<1x4x4xf32> to vector<4x4xf32>
    %c1_599 = arith.constant 1 : index
    %c0_600 = arith.constant 0 : index
    %c0_601 = arith.constant 0 : index
    %591 = vector.load %arg12[%c1_599, %c0_600, %c0_601] : memref<4x4x256xf32, #tpu.memory_space<vmem>>, vector<1x4x256xf32>
    %592 = vector.shape_cast %591 : vector<1x4x256xf32> to vector<4x256xf32>
    %cst_602 = arith.constant dense<0.000000e+00> : vector<4x256xf32>
    %593 = tpu.matmul %590, %592, %cst_602 {dimension_numbers = #tpu.dot_dimension_numbers<[1], [0], [0], [1], [0, 0, 1, 1], [], []>} : vector<4x4xf32>, vector<4x256xf32>, vector<4x256xf32> -> vector<4x256xf32>
    %594 = arith.addf %588, %593 : vector<4x256xf32>
    %c2_603 = arith.constant 2 : index
    %c0_604 = arith.constant 0 : index
    %c0_605 = arith.constant 0 : index
    %595 = vector.load %arg8[%c2_603, %c0_604, %c0_605] : memref<9x4x4xf32, #tpu.memory_space<vmem>>, vector<1x4x4xf32>
    %596 = vector.shape_cast %595 : vector<1x4x4xf32> to vector<4x4xf32>
    %c0_606 = arith.constant 0 : index
    %c0_607 = arith.constant 0 : index
    %c0_608 = arith.constant 0 : index
    %597 = vector.load %arg12[%c0_606, %c0_607, %c0_608] : memref<4x4x256xf32, #tpu.memory_space<vmem>>, vector<1x4x256xf32>
    %598 = vector.shape_cast %597 : vector<1x4x256xf32> to vector<4x256xf32>
    %cst_609 = arith.constant dense<0.000000e+00> : vector<4x256xf32>
    %599 = tpu.matmul %596, %598, %cst_609 {dimension_numbers = #tpu.dot_dimension_numbers<[1], [0], [0], [1], [0, 0, 1, 1], [], []>} : vector<4x4xf32>, vector<4x256xf32>, vector<4x256xf32> -> vector<4x256xf32>
    %c255_i32_610 = arith.constant 255 : i32
    %600 = tpu.dynamic_rotate %599 by %c255_i32_610 dim 1 : vector<4x256xf32>, i32 -> vector<4x256xf32>
    %601 = arith.addf %594, %600 : vector<4x256xf32>
    %c3_611 = arith.constant 3 : index
    %c0_612 = arith.constant 0 : index
    %c0_613 = arith.constant 0 : index
    %602 = vector.load %arg8[%c3_611, %c0_612, %c0_613] : memref<9x4x4xf32, #tpu.memory_space<vmem>>, vector<1x4x4xf32>
    %603 = vector.shape_cast %602 : vector<1x4x4xf32> to vector<4x4xf32>
    %c2_614 = arith.constant 2 : index
    %c0_615 = arith.constant 0 : index
    %c0_616 = arith.constant 0 : index
    %604 = vector.load %arg12[%c2_614, %c0_615, %c0_616] : memref<4x4x256xf32, #tpu.memory_space<vmem>>, vector<1x4x256xf32>
    %605 = vector.shape_cast %604 : vector<1x4x256xf32> to vector<4x256xf32>
    %cst_617 = arith.constant dense<0.000000e+00> : vector<4x256xf32>
    %606 = tpu.matmul %603, %605, %cst_617 {dimension_numbers = #tpu.dot_dimension_numbers<[1], [0], [0], [1], [0, 0, 1, 1], [], []>} : vector<4x4xf32>, vector<4x256xf32>, vector<4x256xf32> -> vector<4x256xf32>
    %607 = arith.addf %601, %606 : vector<4x256xf32>
    %c4_618 = arith.constant 4 : index
    %c0_619 = arith.constant 0 : index
    %c0_620 = arith.constant 0 : index
    %608 = vector.load %arg8[%c4_618, %c0_619, %c0_620] : memref<9x4x4xf32, #tpu.memory_space<vmem>>, vector<1x4x4xf32>
    %609 = vector.shape_cast %608 : vector<1x4x4xf32> to vector<4x4xf32>
    %c3_621 = arith.constant 3 : index
    %c0_622 = arith.constant 0 : index
    %c0_623 = arith.constant 0 : index
    %610 = vector.load %arg12[%c3_621, %c0_622, %c0_623] : memref<4x4x256xf32, #tpu.memory_space<vmem>>, vector<1x4x256xf32>
    %611 = vector.shape_cast %610 : vector<1x4x256xf32> to vector<4x256xf32>
    %cst_624 = arith.constant dense<0.000000e+00> : vector<4x256xf32>
    %612 = tpu.matmul %609, %611, %cst_624 {dimension_numbers = #tpu.dot_dimension_numbers<[1], [0], [0], [1], [0, 0, 1, 1], [], []>} : vector<4x4xf32>, vector<4x256xf32>, vector<4x256xf32> -> vector<4x256xf32>
    %613 = arith.addf %607, %612 : vector<4x256xf32>
    %c5_625 = arith.constant 5 : index
    %c0_626 = arith.constant 0 : index
    %c0_627 = arith.constant 0 : index
    %614 = vector.load %arg8[%c5_625, %c0_626, %c0_627] : memref<9x4x4xf32, #tpu.memory_space<vmem>>, vector<1x4x4xf32>
    %615 = vector.shape_cast %614 : vector<1x4x4xf32> to vector<4x4xf32>
    %c2_628 = arith.constant 2 : index
    %c0_629 = arith.constant 0 : index
    %c0_630 = arith.constant 0 : index
    %616 = vector.load %arg12[%c2_628, %c0_629, %c0_630] : memref<4x4x256xf32, #tpu.memory_space<vmem>>, vector<1x4x256xf32>
    %617 = vector.shape_cast %616 : vector<1x4x256xf32> to vector<4x256xf32>
    %cst_631 = arith.constant dense<0.000000e+00> : vector<4x256xf32>
    %618 = tpu.matmul %615, %617, %cst_631 {dimension_numbers = #tpu.dot_dimension_numbers<[1], [0], [0], [1], [0, 0, 1, 1], [], []>} : vector<4x4xf32>, vector<4x256xf32>, vector<4x256xf32> -> vector<4x256xf32>
    %c255_i32_632 = arith.constant 255 : i32
    %619 = tpu.dynamic_rotate %618 by %c255_i32_632 dim 1 : vector<4x256xf32>, i32 -> vector<4x256xf32>
    %620 = arith.addf %613, %619 : vector<4x256xf32>
    %c6_633 = arith.constant 6 : index
    %c0_634 = arith.constant 0 : index
    %c0_635 = arith.constant 0 : index
    %621 = vector.load %arg8[%c6_633, %c0_634, %c0_635] : memref<9x4x4xf32, #tpu.memory_space<vmem>>, vector<1x4x4xf32>
    %622 = vector.shape_cast %621 : vector<1x4x4xf32> to vector<4x4xf32>
    %c0_636 = arith.constant 0 : index
    %c0_637 = arith.constant 0 : index
    %c0_638 = arith.constant 0 : index
    %623 = vector.load %arg12[%c0_636, %c0_637, %c0_638] : memref<4x4x256xf32, #tpu.memory_space<vmem>>, vector<1x4x256xf32>
    %624 = vector.shape_cast %623 : vector<1x4x256xf32> to vector<4x256xf32>
    %cst_639 = arith.constant dense<0.000000e+00> : vector<4x256xf32>
    %625 = tpu.matmul %622, %624, %cst_639 {dimension_numbers = #tpu.dot_dimension_numbers<[1], [0], [0], [1], [0, 0, 1, 1], [], []>} : vector<4x4xf32>, vector<4x256xf32>, vector<4x256xf32> -> vector<4x256xf32>
    %c246_i32_640 = arith.constant 246 : i32
    %626 = tpu.dynamic_rotate %625 by %c246_i32_640 dim 1 : vector<4x256xf32>, i32 -> vector<4x256xf32>
    %627 = arith.addf %620, %626 : vector<4x256xf32>
    %c7_641 = arith.constant 7 : index
    %c0_642 = arith.constant 0 : index
    %c0_643 = arith.constant 0 : index
    %628 = vector.load %arg8[%c7_641, %c0_642, %c0_643] : memref<9x4x4xf32, #tpu.memory_space<vmem>>, vector<1x4x4xf32>
    %629 = vector.shape_cast %628 : vector<1x4x4xf32> to vector<4x4xf32>
    %c1_644 = arith.constant 1 : index
    %c0_645 = arith.constant 0 : index
    %c0_646 = arith.constant 0 : index
    %630 = vector.load %arg12[%c1_644, %c0_645, %c0_646] : memref<4x4x256xf32, #tpu.memory_space<vmem>>, vector<1x4x256xf32>
    %631 = vector.shape_cast %630 : vector<1x4x256xf32> to vector<4x256xf32>
    %cst_647 = arith.constant dense<0.000000e+00> : vector<4x256xf32>
    %632 = tpu.matmul %629, %631, %cst_647 {dimension_numbers = #tpu.dot_dimension_numbers<[1], [0], [0], [1], [0, 0, 1, 1], [], []>} : vector<4x4xf32>, vector<4x256xf32>, vector<4x256xf32> -> vector<4x256xf32>
    %c246_i32_648 = arith.constant 246 : i32
    %633 = tpu.dynamic_rotate %632 by %c246_i32_648 dim 1 : vector<4x256xf32>, i32 -> vector<4x256xf32>
    %634 = arith.addf %627, %633 : vector<4x256xf32>
    %c8_649 = arith.constant 8 : index
    %c0_650 = arith.constant 0 : index
    %c0_651 = arith.constant 0 : index
    %635 = vector.load %arg8[%c8_649, %c0_650, %c0_651] : memref<9x4x4xf32, #tpu.memory_space<vmem>>, vector<1x4x4xf32>
    %636 = vector.shape_cast %635 : vector<1x4x4xf32> to vector<4x4xf32>
    %c0_652 = arith.constant 0 : index
    %c0_653 = arith.constant 0 : index
    %c0_654 = arith.constant 0 : index
    %637 = vector.load %arg12[%c0_652, %c0_653, %c0_654] : memref<4x4x256xf32, #tpu.memory_space<vmem>>, vector<1x4x256xf32>
    %638 = vector.shape_cast %637 : vector<1x4x256xf32> to vector<4x256xf32>
    %cst_655 = arith.constant dense<0.000000e+00> : vector<4x256xf32>
    %639 = tpu.matmul %636, %638, %cst_655 {dimension_numbers = #tpu.dot_dimension_numbers<[1], [0], [0], [1], [0, 0, 1, 1], [], []>} : vector<4x4xf32>, vector<4x256xf32>, vector<4x256xf32> -> vector<4x256xf32>
    %c245_i32_656 = arith.constant 245 : i32
    %640 = tpu.dynamic_rotate %639 by %c245_i32_656 dim 1 : vector<4x256xf32>, i32 -> vector<4x256xf32>
    %641 = arith.addf %634, %640 : vector<4x256xf32>
    %c3_657 = arith.constant 3 : index
    %c0_658 = arith.constant 0 : index
    %c0_659 = arith.constant 0 : index
    %642 = vector.load %arg11[%c3_657, %c0_658, %c0_659] : memref<4x4x256xf32, #tpu.memory_space<vmem>>, vector<1x4x256xf32>
    %643 = vector.shape_cast %642 : vector<1x4x256xf32> to vector<4x256xf32>
    %644 = vector.shape_cast %641 : vector<4x256xf32> to vector<1x4x256xf32>
    tpu.vector_store %arg11[%c3_657, %c0_658, %c0_659], %644 {strides = array<i32>} : memref<4x4x256xf32, #tpu.memory_space<vmem>>, vector<1x4x256xf32>,
    %645 = vector.broadcast %2 : vector<1x256xf32> to vector<4x256xf32>
    %646 = arith.mulf %641, %645 : vector<4x256xf32>
    %cst_660 = arith.constant dense<0.000000e+00> : vector<4xf32>
    %647 = vector.multi_reduction <add>, %646, %cst_660 [1] : vector<4x256xf32> to vector<4xf32>
    %648 = vector.shape_cast %647 : vector<4xf32> to vector<4x1xf32>
    %649 = arith.addf %583, %648 : vector<4x1xf32>
    %cst_661 = arith.constant 0.001953125 : f32
    %650 = vector.broadcast %cst_661 : f32 to vector<4x1xf32>
    %651 = arith.mulf %649, %650 : vector<4x1xf32>
    %cst_662 = arith.constant 0.000000e+00 : f32
    %652 = vector.broadcast %cst_662 : f32 to vector<4x1xf32>
    %c0_663 = arith.constant 0 : index
    %c0_664 = arith.constant 0 : index
    %c0_665 = arith.constant 0 : index
    %653 = vector.load %arg11[%c0_663, %c0_664, %c0_665] : memref<4x4x256xf32, #tpu.memory_space<vmem>>, vector<1x4x256xf32>
    %654 = vector.shape_cast %653 : vector<1x4x256xf32> to vector<4x256xf32>
    %655 = vector.broadcast %651 : vector<4x1xf32> to vector<4x256xf32>
    %656 = arith.subf %654, %655 : vector<4x256xf32>
    %657 = vector.broadcast %2 : vector<1x256xf32> to vector<4x256xf32>
    %658 = arith.mulf %656, %657 : vector<4x256xf32>
    %659 = arith.mulf %658, %658 : vector<4x256xf32>
    %cst_666 = arith.constant dense<0.000000e+00> : vector<4xf32>
    %660 = vector.multi_reduction <add>, %659, %cst_666 [1] : vector<4x256xf32> to vector<4xf32>
    %661 = vector.shape_cast %660 : vector<4xf32> to vector<4x1xf32>
    %662 = arith.addf %652, %661 : vector<4x1xf32>
    %c1_667 = arith.constant 1 : index
    %c0_668 = arith.constant 0 : index
    %c0_669 = arith.constant 0 : index
    %663 = vector.load %arg11[%c1_667, %c0_668, %c0_669] : memref<4x4x256xf32, #tpu.memory_space<vmem>>, vector<1x4x256xf32>
    %664 = vector.shape_cast %663 : vector<1x4x256xf32> to vector<4x256xf32>
    %665 = vector.broadcast %651 : vector<4x1xf32> to vector<4x256xf32>
    %666 = arith.subf %664, %665 : vector<4x256xf32>
    %667 = vector.broadcast %2 : vector<1x256xf32> to vector<4x256xf32>
    %668 = arith.mulf %666, %667 : vector<4x256xf32>
    %669 = arith.mulf %668, %668 : vector<4x256xf32>
    %cst_670 = arith.constant dense<0.000000e+00> : vector<4xf32>
    %670 = vector.multi_reduction <add>, %669, %cst_670 [1] : vector<4x256xf32> to vector<4xf32>
    %671 = vector.shape_cast %670 : vector<4xf32> to vector<4x1xf32>
    %672 = arith.addf %662, %671 : vector<4x1xf32>
    %c2_671 = arith.constant 2 : index
    %c0_672 = arith.constant 0 : index
    %c0_673 = arith.constant 0 : index
    %673 = vector.load %arg11[%c2_671, %c0_672, %c0_673] : memref<4x4x256xf32, #tpu.memory_space<vmem>>, vector<1x4x256xf32>
    %674 = vector.shape_cast %673 : vector<1x4x256xf32> to vector<4x256xf32>
    %675 = vector.broadcast %651 : vector<4x1xf32> to vector<4x256xf32>
    %676 = arith.subf %674, %675 : vector<4x256xf32>
    %677 = vector.broadcast %2 : vector<1x256xf32> to vector<4x256xf32>
    %678 = arith.mulf %676, %677 : vector<4x256xf32>
    %679 = arith.mulf %678, %678 : vector<4x256xf32>
    %cst_674 = arith.constant dense<0.000000e+00> : vector<4xf32>
    %680 = vector.multi_reduction <add>, %679, %cst_674 [1] : vector<4x256xf32> to vector<4xf32>
    %681 = vector.shape_cast %680 : vector<4xf32> to vector<4x1xf32>
    %682 = arith.addf %672, %681 : vector<4x1xf32>
    %c3_675 = arith.constant 3 : index
    %c0_676 = arith.constant 0 : index
    %c0_677 = arith.constant 0 : index
    %683 = vector.load %arg11[%c3_675, %c0_676, %c0_677] : memref<4x4x256xf32, #tpu.memory_space<vmem>>, vector<1x4x256xf32>
    %684 = vector.shape_cast %683 : vector<1x4x256xf32> to vector<4x256xf32>
    %685 = vector.broadcast %651 : vector<4x1xf32> to vector<4x256xf32>
    %686 = arith.subf %684, %685 : vector<4x256xf32>
    %687 = vector.broadcast %2 : vector<1x256xf32> to vector<4x256xf32>
    %688 = arith.mulf %686, %687 : vector<4x256xf32>
    %689 = arith.mulf %688, %688 : vector<4x256xf32>
    %cst_678 = arith.constant dense<0.000000e+00> : vector<4xf32>
    %690 = vector.multi_reduction <add>, %689, %cst_678 [1] : vector<4x256xf32> to vector<4xf32>
    %691 = vector.shape_cast %690 : vector<4xf32> to vector<4x1xf32>
    %692 = arith.addf %682, %691 : vector<4x1xf32>
    %cst_679 = arith.constant 0.001953125 : f32
    %693 = vector.broadcast %cst_679 : f32 to vector<4x1xf32>
    %694 = arith.mulf %692, %693 : vector<4x1xf32>
    %cst_680 = arith.constant 9.99999974E-6 : f32
    %695 = vector.broadcast %cst_680 : f32 to vector<4x1xf32>
    %696 = arith.addf %694, %695 : vector<4x1xf32>
    %697 = math.rsqrt %696 : vector<4x1xf32>
    %c0_681 = arith.constant 0 : index
    %c0_682 = arith.constant 0 : index
    %698 = vector.load %arg9[%c0_681, %c0_682] : memref<4x1xf32, #tpu.memory_space<vmem>>, vector<4x1xf32>
    %699 = arith.mulf %697, %698 : vector<4x1xf32>
    %c0_683 = arith.constant 0 : index
    %c0_684 = arith.constant 0 : index
    %700 = vector.load %arg10[%c0_683, %c0_684] : memref<4x1xf32, #tpu.memory_space<vmem>>, vector<4x1xf32>
    %701 = arith.mulf %651, %699 : vector<4x1xf32>
    %702 = arith.subf %700, %701 : vector<4x1xf32>
    %c0_685 = arith.constant 0 : index
    %c0_686 = arith.constant 0 : index
    %c0_687 = arith.constant 0 : index
    %703 = vector.load %arg11[%c0_685, %c0_686, %c0_687] : memref<4x4x256xf32, #tpu.memory_space<vmem>>, vector<1x4x256xf32>
    %704 = vector.shape_cast %703 : vector<1x4x256xf32> to vector<4x256xf32>
    %705 = vector.broadcast %699 : vector<4x1xf32> to vector<4x256xf32>
    %706 = arith.mulf %704, %705 : vector<4x256xf32>
    %707 = vector.broadcast %702 : vector<4x1xf32> to vector<4x256xf32>
    %708 = arith.addf %706, %707 : vector<4x256xf32>
    %cst_688 = arith.constant 0.000000e+00 : f32
    %709 = vector.broadcast %cst_688 : f32 to vector<4x256xf32>
    %710 = arith.maximumf %708, %709 : vector<4x256xf32>
    %c0_689 = arith.constant 0 : index
    %c0_690 = arith.constant 0 : index
    %c0_691 = arith.constant 0 : index
    %711 = vector.load %arg11[%c0_689, %c0_690, %c0_691] : memref<4x4x256xf32, #tpu.memory_space<vmem>>, vector<1x4x256xf32>
    %712 = vector.shape_cast %711 : vector<1x4x256xf32> to vector<4x256xf32>
    %713 = vector.shape_cast %710 : vector<4x256xf32> to vector<1x4x256xf32>
    tpu.vector_store %arg11[%c0_689, %c0_690, %c0_691], %713 {strides = array<i32>} : memref<4x4x256xf32, #tpu.memory_space<vmem>>, vector<1x4x256xf32>,
    %c1_692 = arith.constant 1 : index
    %c0_693 = arith.constant 0 : index
    %c0_694 = arith.constant 0 : index
    %714 = vector.load %arg11[%c1_692, %c0_693, %c0_694] : memref<4x4x256xf32, #tpu.memory_space<vmem>>, vector<1x4x256xf32>
    %715 = vector.shape_cast %714 : vector<1x4x256xf32> to vector<4x256xf32>
    %716 = vector.broadcast %699 : vector<4x1xf32> to vector<4x256xf32>
    %717 = arith.mulf %715, %716 : vector<4x256xf32>
    %718 = vector.broadcast %702 : vector<4x1xf32> to vector<4x256xf32>
    %719 = arith.addf %717, %718 : vector<4x256xf32>
    %cst_695 = arith.constant 0.000000e+00 : f32
    %720 = vector.broadcast %cst_695 : f32 to vector<4x256xf32>
    %721 = arith.maximumf %719, %720 : vector<4x256xf32>
    %c1_696 = arith.constant 1 : index
    %c0_697 = arith.constant 0 : index
    %c0_698 = arith.constant 0 : index
    %722 = vector.load %arg11[%c1_696, %c0_697, %c0_698] : memref<4x4x256xf32, #tpu.memory_space<vmem>>, vector<1x4x256xf32>
    %723 = vector.shape_cast %722 : vector<1x4x256xf32> to vector<4x256xf32>
    %724 = vector.shape_cast %721 : vector<4x256xf32> to vector<1x4x256xf32>
    tpu.vector_store %arg11[%c1_696, %c0_697, %c0_698], %724 {strides = array<i32>} : memref<4x4x256xf32, #tpu.memory_space<vmem>>, vector<1x4x256xf32>,
    %c2_699 = arith.constant 2 : index
    %c0_700 = arith.constant 0 : index
    %c0_701 = arith.constant 0 : index
    %725 = vector.load %arg11[%c2_699, %c0_700, %c0_701] : memref<4x4x256xf32, #tpu.memory_space<vmem>>, vector<1x4x256xf32>
    %726 = vector.shape_cast %725 : vector<1x4x256xf32> to vector<4x256xf32>
    %727 = vector.broadcast %699 : vector<4x1xf32> to vector<4x256xf32>
    %728 = arith.mulf %726, %727 : vector<4x256xf32>
    %729 = vector.broadcast %702 : vector<4x1xf32> to vector<4x256xf32>
    %730 = arith.addf %728, %729 : vector<4x256xf32>
    %cst_702 = arith.constant 0.000000e+00 : f32
    %731 = vector.broadcast %cst_702 : f32 to vector<4x256xf32>
    %732 = arith.maximumf %730, %731 : vector<4x256xf32>
    %c2_703 = arith.constant 2 : index
    %c0_704 = arith.constant 0 : index
    %c0_705 = arith.constant 0 : index
    %733 = vector.load %arg11[%c2_703, %c0_704, %c0_705] : memref<4x4x256xf32, #tpu.memory_space<vmem>>, vector<1x4x256xf32>
    %734 = vector.shape_cast %733 : vector<1x4x256xf32> to vector<4x256xf32>
    %735 = vector.shape_cast %732 : vector<4x256xf32> to vector<1x4x256xf32>
    tpu.vector_store %arg11[%c2_703, %c0_704, %c0_705], %735 {strides = array<i32>} : memref<4x4x256xf32, #tpu.memory_space<vmem>>, vector<1x4x256xf32>,
    %c3_706 = arith.constant 3 : index
    %c0_707 = arith.constant 0 : index
    %c0_708 = arith.constant 0 : index
    %736 = vector.load %arg11[%c3_706, %c0_707, %c0_708] : memref<4x4x256xf32, #tpu.memory_space<vmem>>, vector<1x4x256xf32>
    %737 = vector.shape_cast %736 : vector<1x4x256xf32> to vector<4x256xf32>
    %738 = vector.broadcast %699 : vector<4x1xf32> to vector<4x256xf32>
    %739 = arith.mulf %737, %738 : vector<4x256xf32>
    %740 = vector.broadcast %702 : vector<4x1xf32> to vector<4x256xf32>
    %741 = arith.addf %739, %740 : vector<4x256xf32>
    %cst_709 = arith.constant 0.000000e+00 : f32
    %742 = vector.broadcast %cst_709 : f32 to vector<4x256xf32>
    %743 = arith.maximumf %741, %742 : vector<4x256xf32>
    %c3_710 = arith.constant 3 : index
    %c0_711 = arith.constant 0 : index
    %c0_712 = arith.constant 0 : index
    %744 = vector.load %arg11[%c3_710, %c0_711, %c0_712] : memref<4x4x256xf32, #tpu.memory_space<vmem>>, vector<1x4x256xf32>
    %745 = vector.shape_cast %744 : vector<1x4x256xf32> to vector<4x256xf32>
    %746 = vector.shape_cast %743 : vector<4x256xf32> to vector<1x4x256xf32>
    tpu.vector_store %arg11[%c3_710, %c0_711, %c0_712], %746 {strides = array<i32>} : memref<4x4x256xf32, #tpu.memory_space<vmem>>, vector<1x4x256xf32>,
    return
  }
}

</mosaic_0001>

<bundles_post_ra>
// kernel: upsample_forward.1
= control target key start
LH: loop header
LB: loop body
LE: loop exit
PB: predicated region body
PF: predicated region fallthrough
CT: control target
= control target key end

     0   :  { %v7363_v0 = vmov 0.0|0.0   ;;  %vm7364_vm0 = vmmov 0   ;;  %v7365_v4 = vmov 0.0   ;;  %v7366_v7 = vmov 0   ;;  %s7368_s28 = smov 10   ;;  %s7369_s14 = smov 1   ;;  %s8914_s2 = inlined_call_operand.vmem [shape: f32[32,2], index: 2, kind: input, shape index: {}]   ;;  %s8915_s5 = inlined_call_operand.vmem [shape: f32[4,1], index: 5, kind: input, shape index: {}]   ;;  %s8916_s0 = inlined_call_operand.vmem [shape: f32[4,13,256], index: 0, kind: input, shape index: {}]   ;;  %s8917_s4 = inlined_call_operand.vmem [shape: f32[4,32], index: 4, kind: input, shape index: {}]   ;;  %s8918_s3 = inlined_call_operand.vmem [shape: f32[4,9,4,13], index: 3, kind: input, shape index: {}]   ;;  %s8919_s1 = inlined_call_operand.vmem [shape: f32[2,256], index: 1, kind: input, shape index: {}]   ;;  %s8920_s6 = inlined_call_operand.vmem [shape: f32[4,1], index: 6, kind: input, shape index: {}]   ;;  %s8921_s7 = inlined_call_operand.vmem [shape: f32[4,1], index: 7, kind: input, shape index: {}]   ;;  %s8922_s8 = inlined_call_operand.vmem [shape: f32[9,4,4], index: 8, kind: input, shape index: {}]   ;;  %s8923_s9 = inlined_call_operand.vmem [shape: f32[4,1], index: 9, kind: input, shape index: {}]   ;;  %s8924_s10 = inlined_call_operand.vmem [shape: f32[4,1], index: 10, kind: input, shape index: {}]   ;;  %s8925_s11 = inlined_call_operand.vmem [shape: f32[4,4,256], index: 11, kind: output, shape index: {}]  }
   0x1   :  { %7045 = vmatprep.subr.bf16.mxu0 %v7363_v0  ;;  %v66_v1 = vld [vmem:[%s8914_s2] sm:$0xff]  ;;  %v67_v2 = vld [vmem:[%s8914_s2 + $0x8] sm:$0xff]  ;;  %v68_v3 = vld [vmem:[%s8914_s2 + $0x10] sm:$0xff]  ;;  %7042 = vmatprep.mubr.msk.f32.mxu0 %vm7364_vm0, %v7365_v4  ;;  %vm239_vm1 = vcmask 1044480   ;;  %vm7367_vm2 = vmmov 1   ;;  %vm76_vm4 = vcmask 261120  }
   0x2   :  { %v7046_v5 = vpack.c.bf16 %v67_v2, %v66_v1  ;;  %v69_v6 = vld [vmem:[%s8914_s2 + $0x18] sm:$0xff]  ;;  %7357 = vset.pattern.permute.xlu0 %v7366_v7  ;;  %v70_v8 = vld [vmem:[%s8915_s5] sm:$0xf]  ;;  %222 = vmatprep.mubr.f32.mxu1 %v7365_v4  ;;  %v7457_v9 = vld [vmem:[%s8916_s0 + $0x68] sm:$0xff]  ;;  %vm235_vm5 = vcmask 105472   ;;  %vm50_vm6 = vcmask 1041408  }
   0x3   :  { %73 = vperm.xlu0 %7357, %v70_v8   ;;  %v6689_v10 = vld [vmem:[%s8916_s0 + $0x78] sm:$0x1f]  ;;  %7358 = vset.pattern.permute.xlu1 %v7366_v7  ;;  %v7049_v11 = vpack.c.bf16 %v69_v6, %v68_v3  ;;  %v7468_v13 = vld [vmem:[%s8916_s0 + $0x60] sm:$0xff]  ;;  %v6688_v14 = vld [vmem:[%s8916_s0 + $0x70] sm:$0x1f]  ;;  %vm150_vm7 = vcmask 15360  }
   0x4   :  { %7047 = vmatpush3.bf16.msra.mxu0 %v7046_v5  ;;  %v7463_v12 = vpack.c.bf16 %v6689_v10, %v7457_v9  ;;  %vm7473_vm3 = vmpackc.low %vm239_vm1, %vm7367_vm2  ;;  %v7480_v16 = vld [vmem:[%s8916_s0 + $0x8] sm:$0xff]  ;;  %v607_v17 = vld [vmem:[%s8916_s0 + $0x18] sm:$0x1f]  ;;  %v7489_v19 = vpack.c.bf16 %v6688_v14, %v7468_v13  ;;  %s7370_s17 = smov 119   ;;  %s7374_s5 = smov 9   ;;  %vm1015_vm12 = vcmask 1043456  }
   0x5   :  { %7048 = vmatprep.subr.bf16.mxu0 %v7363_v0  ;;  %v65_v18 = vld [vmem:[%s8917_s4] sm:$0xf]  ;;  %v7075_v20 = vpack.c.bf16 %v607_v17, %v7480_v16  ;;  %v606_v22 = vld [vmem:[%s8916_s0 + $0x10] sm:$0x1f]  ;;  %v7506_v23 = vld [vmem:[%s8916_s0 + $0x28] sm:$0xff]  ;;  %s7372_s4 = smov 127  }
   0x6   :  { %v7498_v21 = vld [vmem:[%s8916_s0] sm:$0xff]  ;;  %v6709_v24 = vld [vmem:[%s8916_s0 + $0x38] sm:$0x1f]  ;;  %v6701_v25 = vld [vmem:[%s8918_s3 + $0x8] sm:$0xf]  ;;  %s7375_s12 = smov 117  }
   0x7   :  { %v7078_v26 = vpack.c.bf16 %v606_v22, %v7498_v21  ;;  %v7522_v27 = vpack.c.bf16 %v6709_v24, %v7506_v23  ;;  %v7527_v28 = vld [vmem:[%s8916_s0 + $0x20] sm:$0xff]  ;;  %v6708_v29 = vld [vmem:[%s8916_s0 + $0x30] sm:$0x1f]  ;;  %v7535_v30 = vld [vmem:[%s8916_s0 + $0x48] sm:$0xff]  ;;  %vm3510_vm1 = vcmask 31744  }
   0x8   :  { %7050 = vmatpush3.bf16.msra.mxu0 %v7049_v11  ;;  %v6697_v31 = vld [vmem:[%s8916_s0 + $0x58] sm:$0x1f]  ;;  %v6713_v32 = vld [vmem:[%s8918_s3 + $0x10] sm:$0xf]  ;;  %v7548_v33 = vpack.c.bf16 %v6708_v29, %v7527_v28  ;;  %v7567_v35 = vld [vmem:[%s8916_s0 + $0x40] sm:$0xff] }
   0x9   :  { %7065 = vmatprep.subr.msk.bf16.mxu0 %vm7473_vm3, %v7463_v12  ;;  %v7554_v34 = vpack.c.bf16 %v6697_v31, %v7535_v30  ;;  %v6696_v36 = vld [vmem:[%s8916_s0 + $0x50] sm:$0x1f]  ;;  %v1298_v39 = vld [vmem:[%s8916_s0 + $0x18] sm:$0x1f]  ;;  %v6729_v44 = vld [vmem:[%s8918_s3 + $0x20] sm:$0xf] }
   0xa   :  { %v6717_v37 = vld [vmem:[%s8918_s3 + $0x14] sm:$0xf]  ;;  %v7576_v38 = vpack.c.bf16 %v6696_v36, %v7567_v35  ;;  %v6725_v40 = vld [vmem:[%s8918_s3 + $0x1c] sm:$0xf]  ;;  %v7593_v41 = vpack.c.bf16 %v1298_v39, %v7480_v16  ;;  %v6753_v49 = vld [vmem:[%s8918_s3 + $0x30] sm:$0xf] }
   0xb   :  { %7043 = vmatmul.mubr.msk.f32.vlgmr.msra.gmra.mrb[0].mxu0 %vm76_vm4, %v65_v18  ;;  %v1297_v42 = vld [vmem:[%s8916_s0 + $0x10] sm:$0x1f]  ;;  %v6761_v43 = vld [vmem:[%s8916_s0 + $0x38] sm:$0x1f]  ;;  %v6773_v0 = vld [vmem:[%s8918_s3 + $0x40] sm:$0xf] }
   0xc   :  { %7068 = vmatpush1.bf16.msk.msra.mxu0 %vm7473_vm3, %v7489_v19  ;;  %491 = vmatprep.mubr.f32.mxu0 %v7365_v4  ;;  %v7613_v45 = vpack.c.bf16 %v1297_v42, %v7498_v21  ;;  %v7129_v46 = vpack.c.bf16 %v6761_v43, %v7506_v23  ;;  %v6760_v47 = vld [vmem:[%s8916_s0 + $0x30] sm:$0x1f]  ;;  %v6737_v48 = vld [vmem:[%s8916_s0 + $0x58] sm:$0x1f]  ;;  %v6817_v11 = vld [vmem:[%s8918_s3 + $0x60] sm:$0xf] }
   0xd   :  { %7077 = vmatprep.subr.msk.bf16.mxu0 %vm7473_vm3, %v7075_v20  ;;  %v7132_v50 = vpack.c.bf16 %v6760_v47, %v7527_v28  ;;  %v7634_v51 = vpack.c.bf16 %v6737_v48, %v7535_v30  ;;  %v6736_v52 = vld [vmem:[%s8916_s0 + $0x50] sm:$0x1f]  ;;  %v6745_v53 = vld [vmem:[%s8916_s0 + $0x78] sm:$0x1f]  ;;  %v6821_v18 = vld [vmem:[%s8918_s3 + $0x64] sm:$0xf] }
   0xe   :  { %v6757_v54 = vld [vmem:[%s8918_s3 + $0x34] sm:$0xf]  ;;  %v7653_v55 = vpack.c.bf16 %v6736_v52, %v7567_v35  ;;  %v7656_v56 = vpack.c.bf16 %v6745_v53, %v7457_v9  ;;  %v6801_v58 = vld [vmem:[%s8916_s0 + $0x78] sm:$0x1f]  ;;  %v6865_v42 = vld [vmem:[%s8918_s3 + $0x84] sm:$0xf] }
   0xf   :  { %6704 = vmatmul.mubr.msk.f32.vlgmr.msra.gmra.mrb[2].mxu0 %vm235_vm5, %v6701_v25  ;;  %v6744_v57 = vld [vmem:[%s8916_s0 + $0x70] sm:$0x1f]  ;;  %v6769_v59 = vld [vmem:[%s8918_s3 + $0x3c] sm:$0xf]  ;;  %v7679_v61 = vpack.c.bf16 %v6801_v58, %v7457_v9  ;;  %v229_v52 = vld [vmem:[%s8918_s3] sm:$0xf] }
  0x10   :  { %7080 = vmatpush1.bf16.msk.msra.mxu0 %vm7473_vm3, %v7078_v26  ;;  %681 = vmatprep.mubr.f32.mxu0 %v7365_v4  ;;  %v7676_v60 = vpack.c.bf16 %v6744_v57, %v7468_v13  ;;  %v6800_v62 = vld [vmem:[%s8916_s0 + $0x70] sm:$0x1f]  ;;  %v6785_v63 = vld [vmem:[%s8916_s0 + $0x38] sm:$0x1f]  ;;  %v6693_v57 = vld [vmem:[%s8918_s3 + $0x4] sm:$0xf] }
  0x11   :  { %7083 = vmatprep.subr.msk.bf16.mxu0 %vm7473_vm3, %v7522_v27  ;;  %v7699_v1 = vpack.c.bf16 %v6800_v62, %v7468_v13  ;;  %v7702_v2 = vpack.c.bf16 %v6785_v63, %v7506_v23  ;;  %v6784_v3 = vld [vmem:[%s8916_s0 + $0x30] sm:$0x1f]  ;;  %v1905_v5 = vld [vmem:[%s8916_s0 + $0x18] sm:$0x1f] }
  0x12   :  { %v6797_v6 = vld [vmem:[%s8918_s3 + $0x54] sm:$0xf]  ;;  %v7719_v7 = vpack.c.bf16 %v6784_v3, %v7527_v28  ;;  %v7725_v8 = vpack.c.bf16 %v1905_v5, %v7480_v16  ;;  %v2599_v17 = vld [vmem:[%s8916_s0 + $0x18] sm:$0x1f]  ;;  %v6793_v62 = vld [vmem:[%s8918_s3 + $0x50] sm:$0xf] }
  0x13   :  { %6716 = vmatmul.mubr.msk.f32.vlgmr.msra.gmra.mrb[4].mxu0 %vm235_vm5, %v6713_v32  ;;  %v1904_v10 = vld [vmem:[%s8916_s0 + $0x10] sm:$0x1f]  ;;  %v7759_v20 = vpack.c.bf16 %v2599_v17, %v7480_v16  ;;  %v6849_v24 = vld [vmem:[%s8916_s0 + $0x58] sm:$0x1f]  ;;  %v6825_v16 = vld [vmem:[%s8918_s3 + $0x68] sm:$0xf] }
  0x14   :  { %7086 = vmatpush1.bf16.msk.msra.mxu0 %vm7473_vm3, %v7548_v33  ;;  %759 = vmatprep.mubr.f32.mxu0 %v7365_v4  ;;  %v7739_v14 = vpack.c.bf16 %v1904_v10, %v7498_v21  ;;  %v2598_v22 = vld [vmem:[%s8916_s0 + $0x10] sm:$0x1f]  ;;  %v7782_v26 = vpack.c.bf16 %v6849_v24, %v7535_v30  ;;  %v6861_v32 = vld [vmem:[%s8918_s3 + $0x80] sm:$0xf]  ;;  %v6834_v43 = vld [vmem:[%s8916_s0 + $0x38] sm:$0x1f] }
  0x15   :  { %7095 = vmatprep.subr.msk.bf16.mxu0 %vm7473_vm3, %v7554_v34  ;;  %v7776_v25 = vpack.c.bf16 %v2598_v22, %v7498_v21  ;;  %v6848_v29 = vld [vmem:[%s8916_s0 + $0x50] sm:$0x1f]  ;;  %v6681_v36 = vld.sshfl [vmem:[%s8919_s1] sm:$0x33 pattern:$0x76325410] }
  0x16   :  { %v6841_v21 = vld [vmem:[%s8918_s3 + $0x74] sm:$0xf]  ;;  %v7796_v31 = vpack.c.bf16 %v6848_v29, %v7567_v35  ;;  %v7816_v39 = vsel %vm50_vm6, %v6681_v36, 0.0  ;;  %v6805_v63 = vld [vmem:[%s8918_s3 + $0x58] sm:$0xf]  ;;  %s7371_s1 = smov 118  }
  0x17   :  { %v6813_v3 = vld [vmem:[%s8918_s3 + $0x5c] sm:$0xf]  ;;  %v6829_v17 = vld [vmem:[%s8918_s3 + $0x6c] sm:$0xf]  ;;  %v6845_v29 = vld [vmem:[%s8918_s3 + $0x78] sm:$0xf] }
  0x1b   :  { %6720 = vmatmul.mubr.msk.f32.vlgmr.msra.gmra.mrb[4].mxu0 %vm235_vm5, %v6717_v37  ;;  %v47_v37 = vcombine.high %v6681_v36, %v6681_v36 }
  0x1c   :  { %7098 = vmatpush1.bf16.msk.msra.mxu0 %vm7473_vm3, %v7576_v38  ;;  %921 = vmatprep.mubr.f32.mxu0 %v7365_v4 }
  0x1d   :  { %7101 = vmatprep.subr.msk.bf16.mxu0 %vm7473_vm3, %v7463_v12  ;;  %6683 = vmatprep.subr.msk.mxu1 %vm50_vm6, %v47_v37 }
  0x1e   :  { %6684 = vmatpush1.msk.msra.mxu1 %vm50_vm6, %v6681_v36  ;;  %v6873_v36 = vld [vmem:[%s8918_s3 + $0x8c] sm:$0xf] }
  0x1f   :  { %7053 = vmatprep.subr.msk.bf16.mxu1 %vm7473_vm3, %v7463_v12 }
  0x23   :  { %6728 = vmatmul.mubr.msk.f32.vlgmr.msra.gmra.mrb[4].mxu0 %vm235_vm5, %v6725_v40  ;;  %v7818_v40 = vsel %vm50_vm6, %v47_v37, 0.0 }
  0x24   :  { %7104 = vmatpush1.bf16.msk.msra.mxu0 %vm7473_vm3, %v7489_v19  ;;  %999 = vmatprep.mubr.f32.mxu0 %v7365_v4 }
  0x25   :  { %7125 = vmatprep.subr.msk.bf16.mxu0 %vm7473_vm3, %v7593_v41 }
  0x2b   :  { %6732 = vmatmul.mubr.msk.f32.vlgmr.msra.gmra.mrb[4].mxu0 %vm235_vm5, %v6729_v44  ;;  %v7836_v44 = vpack.c.bf16 %v6834_v43, %v7506_v23  ;;  %v6869_v23 = vld [vmem:[%s8918_s3 + $0x88] sm:$0xf] }
  0x2c   :  { %7128 = vmatpush1.bf16.msk.msra.mxu0 %vm7473_vm3, %v7613_v45  ;;  %1372 = vmatprep.mubr.f32.mxu0 %v7365_v4 }
  0x2d   :  { %7131 = vmatprep.subr.msk.bf16.mxu0 %vm7473_vm3, %v7129_v46  ;;  %v6833_v46 = vld [vmem:[%s8916_s0 + $0x30] sm:$0x1f] }
  0x2e   :  { %v7842_v47 = vpack.c.bf16 %v6833_v46, %v7527_v28 }
  0x2f   :  { %6756 = vmatmul.mubr.msk.f32.vlgmr.msra.gmra.mrb[6].mxu0 %vm235_vm5, %v6753_v49 }
  0x30   :  { %7134 = vmatpush1.bf16.msk.msra.mxu0 %vm7473_vm3, %v7132_v50  ;;  %1460 = vmatprep.mubr.f32.mxu0 %v7365_v4 }
  0x31   :  { %7143 = vmatprep.subr.msk.bf16.mxu0 %vm7473_vm3, %v7634_v51 }
  0x37   :  { %6764 = vmatmul.mubr.msk.f32.vlgmr.msra.gmra.mrb[6].mxu0 %vm235_vm5, %v6757_v54 }
  0x38   :  { %7146 = vmatpush1.bf16.msk.msra.mxu0 %vm7473_vm3, %v7653_v55  ;;  %1623 = vmatprep.mubr.f32.mxu0 %v7365_v4 }
  0x39   :  { %7149 = vmatprep.subr.msk.bf16.mxu0 %vm7473_vm3, %v7656_v56 }
  0x3f   :  { %6772 = vmatmul.mubr.msk.f32.vlgmr.msra.gmra.mrb[6].mxu0 %vm235_vm5, %v6769_v59 }
  0x40   :  { %7152 = vmatpush1.bf16.msk.msra.mxu0 %vm7473_vm3, %v7676_v60  ;;  %1701 = vmatprep.mubr.f32.mxu0 %v7365_v4 }
  0x41   :  { %7179 = vmatprep.subr.msk.bf16.mxu0 %vm7473_vm3, %v7679_v61 }
  0x47   :  { %6776 = vmatmul.mubr.msk.f32.vlgmr.msra.gmra.mrb[6].mxu0 %vm235_vm5, %v6773_v0 }
  0x48   :  { %7182 = vmatpush1.bf16.msk.msra.mxu0 %vm7473_vm3, %v7699_v1  ;;  %2145 = vmatprep.mubr.f32.mxu0 %v7365_v4 }
  0x49   :  { %7197 = vmatprep.subr.msk.bf16.mxu0 %vm7473_vm3, %v7702_v2 }
  0x4b   :  { %6804 = vmatmul.mubr.msk.f32.vlgmr.msra.gmra.mrb[8].mxu0 %vm235_vm5, %v6797_v6 }
  0x4c   :  { %7200 = vmatpush1.bf16.msk.msra.mxu0 %vm7473_vm3, %v7719_v7  ;;  %2395 = vmatprep.mubr.f32.mxu0 %v7365_v4 }
  0x4d   :  { %7203 = vmatprep.subr.msk.bf16.mxu0 %vm7473_vm3, %v7725_v8 }
  0x4f   :  { %6820 = vmatmul.mubr.msk.f32.vlgmr.msra.gmra.mrb[10].mxu0 %vm235_vm5, %v6817_v11 }
  0x50   :  { %7206 = vmatpush1.bf16.msk.msra.mxu0 %vm7473_vm3, %v7739_v14  ;;  %2480 = vmatprep.mubr.f32.mxu0 %v7365_v4 }
  0x51   :  { %7209 = vmatprep.subr.msk.bf16.mxu0 %vm7473_vm3, %v7702_v2 }
  0x53   :  { %6824 = vmatmul.mubr.msk.f32.vlgmr.msra.gmra.mrb[12].mxu0 %vm235_vm5, %v6821_v18 }
  0x54   :  { %7212 = vmatpush1.bf16.msk.msra.mxu0 %vm7473_vm3, %v7719_v7  ;;  %2565 = vmatprep.mubr.f32.mxu0 %v7365_v4 }
  0x55   :  { %7227 = vmatprep.subr.msk.bf16.mxu0 %vm7473_vm3, %v7759_v20 }
  0x57   :  { %6828 = vmatmul.mubr.msk.f32.vlgmr.msra.gmra.mrb[14].mxu0 %vm235_vm5, %v6825_v16 }
  0x58   :  { %7230 = vmatpush1.bf16.msk.msra.mxu0 %vm7473_vm3, %v7776_v25  ;;  %2835 = vmatprep.mubr.f32.mxu0 %v7365_v4 }
  0x59   :  { %7245 = vmatprep.subr.msk.bf16.mxu0 %vm7473_vm3, %v7782_v26 }
  0x5b   :  { %6844 = vmatmul.mubr.msk.f32.vlgmr.msra.gmra.mrb[16].mxu0 %vm235_vm5, %v6841_v21 }
  0x5c   :  { %7248 = vmatpush1.bf16.msk.msra.mxu0 %vm7473_vm3, %v7796_v31  ;;  %3095 = vmatprep.mubr.f32.mxu0 %v7365_v4 }
  0x5d   :  { %7251 = vmatprep.subr.msk.bf16.mxu0 %vm7473_vm3, %v7759_v20 }
  0x5f   :  { %6864 = vmatmul.mubr.msk.f32.vlgmr.msra.gmra.mrb[18].mxu0 %vm235_vm5, %v6861_v32 }
  0x60   :  { %7254 = vmatpush1.bf16.msk.msra.mxu0 %vm7473_vm3, %v7776_v25  ;;  %3179 = vmatprep.mubr.f32.mxu0 %v7365_v4 }
  0x61   :  { %7257 = vmatprep.subr.msk.bf16.mxu0 %vm7473_vm3, %v7836_v44 }
  0x63   :  { %6868 = vmatmul.mubr.msk.f32.vlgmr.msra.gmra.mrb[20].mxu0 %vm235_vm5, %v6865_v42 }
  0x64   :  { %3263 = vmatprep.mubr.f32.mxu0 %v7365_v4  ;;  %7260 = vmatpush1.bf16.msk.msra.mxu0 %vm7473_vm3, %v7842_v47 }
  0x67   :  { %6872 = vmatmul.mubr.msk.f32.vlgmr.msra.gmra.mrb[22].mxu0 %vm235_vm5, %v6869_v23 }
  0x68   :  { %3582 = vmatprep.mubr.f32.mxu0 %v7365_v4 }
  0x82   :  { %v74_v48 = vpop.permute.xlu0 %73 }
  0xde   :  { %v146_v49 = vpop.f32.mrb[0].mxu0 }
  0xdf   :  { %v147_v28 = vadd.f32 %v146_v49, %v74_v48  ;;  %v7044_v50 = vpop.f32.mrb[1].mxu0 }
  0xe1   :  { %6685 = vmatmul.mubr.msk.f32.vlgmr.msra.gmra.mrb[0].mxu1 %vm150_vm7, %v147_v28 }
  0xe2   :  { %7056 = vmatpush1.bf16.msk.msra.mxu1 %vm7473_vm3, %v7489_v19  ;;  %310 = vmatprep.mubr.f32.mxu1 %v7365_v4  ;;  %v493_v53 = vpop.f32.mrb[2].mxu0 }
  0xe3   :  { %7059 = vmatprep.subr.msk.bf16.mxu1 %vm7473_vm3, %v7554_v34  ;;  %v495_v54 = vpop.f32.mrb[3].mxu0  ;;  %498 = vrot.lane.b32.xlu1 %v493_v53, %s7368_s28  ;;  %v6705_v34 = vld [vmem:[%s8918_s3 + $0xc] sm:$0xf] }
  0xe4   :  { %500 = vrot.lane.b32.xlu0 %v495_v54, %s7368_s28 }
  0xe5   :  { %6692 = vmatmul.mubr.msk.f32.vlgmr.msra.gmra.mrb[2].mxu1 %vm235_vm5, %v229_v52 }
  0xe6   :  { %7062 = vmatpush1.bf16.msk.msra.mxu1 %vm7473_vm3, %v7576_v38  ;;  %406 = vmatprep.mubr.f32.mxu1 %v7365_v4  ;;  %v6765_v38 = vld [vmem:[%s8918_s3 + $0x38] sm:$0xf] }
  0xe7   :  { %7071 = vmatprep.subr.msk.bf16.mxu1 %vm7473_vm3, %v7522_v27  ;;  %v6721_v27 = vld [vmem:[%s8918_s3 + $0x18] sm:$0xf] }
  0xe9   :  { %6700 = vmatmul.mubr.msk.f32.vlgmr.msra.gmra.mrb[4].mxu1 %vm235_vm5, %v6693_v57 }
  0xea   :  { %7074 = vmatpush1.bf16.msk.msra.mxu1 %vm7473_vm3, %v7548_v33  ;;  %586 = vmatprep.mubr.f32.mxu1 %v7365_v4  ;;  %v6749_v33 = vld [vmem:[%s8918_s3 + $0x2c] sm:$0xf] }
  0xeb   :  { %7089 = vmatprep.subr.msk.bf16.mxu1 %vm7473_vm3, %v7463_v12  ;;  %v6733_v12 = vld [vmem:[%s8918_s3 + $0x24] sm:$0xf] }
  0xed   :  { %6712 = vmatmul.mubr.msk.f32.vlgmr.msra.gmra.mrb[6].mxu1 %vm235_vm5, %v6705_v34 }
  0xee   :  { %7092 = vmatpush1.bf16.msk.msra.mxu1 %vm7473_vm3, %v7489_v19  ;;  %837 = vmatprep.mubr.f32.mxu1 %v7365_v4  ;;  %v6741_v19 = vld [vmem:[%s8918_s3 + $0x28] sm:$0xf] }
  0xef   :  { %7107 = vmatprep.subr.msk.bf16.mxu1 %vm7473_vm3, %v7634_v51 }
  0xf1   :  { %6724 = vmatmul.mubr.msk.f32.vlgmr.msra.gmra.mrb[8].mxu1 %vm235_vm5, %v6721_v27 }
  0xf2   :  { %7110 = vmatpush1.bf16.msk.msra.mxu1 %vm7473_vm3, %v7653_v55  ;;  %1101 = vmatprep.mubr.f32.mxu1 %v7365_v4 }
  0xf3   :  { %7113 = vmatprep.subr.msk.bf16.mxu1 %vm7473_vm3, %v7656_v56 }
  0xf5   :  { %6740 = vmatmul.mubr.msk.f32.vlgmr.msra.gmra.mrb[10].mxu1 %vm235_vm5, %v6733_v12 }
  0xf6   :  { %7116 = vmatpush1.bf16.msk.msra.mxu1 %vm7473_vm3, %v7676_v60  ;;  %1193 = vmatprep.mubr.f32.mxu1 %v7365_v4  ;;  %v6808_v60 = vld [vmem:[%s8916_s0 + $0x50] sm:$0x1f] }
  0xf7   :  { %7119 = vmatprep.subr.msk.bf16.mxu1 %vm7473_vm3, %v7634_v51 }
  0xf9   :  { %6748 = vmatmul.mubr.msk.f32.vlgmr.msra.gmra.mrb[12].mxu1 %vm235_vm5, %v6741_v19 }
  0xfa   :  { %7122 = vmatpush1.bf16.msk.msra.mxu1 %vm7473_vm3, %v7653_v55  ;;  %1277 = vmatprep.mubr.f32.mxu1 %v7365_v4 }
  0xfb   :  { %7137 = vmatprep.subr.msk.bf16.mxu1 %vm7473_vm3, %v7593_v41  ;;  %v6777_v41 = vld [vmem:[%s8918_s3 + $0x44] sm:$0xf] }
  0xfd   :  { %6752 = vmatmul.mubr.msk.f32.vlgmr.msra.gmra.mrb[14].mxu1 %vm235_vm5, %v6749_v33 }
  0xfe   :  { %7140 = vmatpush1.bf16.msk.msra.mxu1 %vm7473_vm3, %v7613_v45  ;;  %1538 = vmatprep.mubr.f32.mxu1 %v7365_v4  ;;  %v7941_v56 = vpop.f32.mrb[4].mxu0  ;;  %v6781_v45 = vld [vmem:[%s8918_s3 + $0x48] sm:$0xf] }
  0xff   :  { %7155 = vmatprep.subr.msk.bf16.mxu1 %vm7473_vm3, %v7634_v51  ;;  %v7946_v58 = vpop.f32.mrb[5].mxu0  ;;  %v6809_v51 = vld [vmem:[%s8916_s0 + $0x58] sm:$0x1f] }
 0x100   :  { %v7183_v59 = vpack.c.bf16 %v6809_v51, %v7535_v30  ;;  %v7186_v30 = vpack.c.bf16 %v6808_v60, %v7567_v35 }
 0x101   :  { %6768 = vmatmul.mubr.msk.f32.vlgmr.msra.gmra.mrb[16].mxu1 %vm235_vm5, %v6765_v38 }
 0x102   :  { %7158 = vmatpush1.bf16.msk.msra.mxu1 %vm7473_vm3, %v7653_v55  ;;  %1779 = vmatprep.mubr.f32.mxu1 %v7365_v4  ;;  %v6789_v55 = vld [vmem:[%s8918_s3 + $0x4c] sm:$0xf] }
 0x103   :  { %7161 = vmatprep.subr.msk.bf16.mxu1 %vm7473_vm3, %v7702_v2 }
 0x105   :  { %6780 = vmatmul.mubr.msk.f32.vlgmr.msra.gmra.mrb[18].mxu1 %vm235_vm5, %v6777_v41 }
 0x106   :  { %7164 = vmatpush1.bf16.msk.msra.mxu1 %vm7473_vm3, %v7719_v7  ;;  %1887 = vmatprep.mubr.f32.mxu1 %v7365_v4 }
 0x107   :  { %7167 = vmatprep.subr.msk.bf16.mxu1 %vm7473_vm3, %v7725_v8 }
 0x109   :  { %6788 = vmatmul.mubr.msk.f32.vlgmr.msra.gmra.mrb[20].mxu1 %vm235_vm5, %v6781_v45 }
 0x10a   :  { %7170 = vmatpush1.bf16.msk.msra.mxu1 %vm7473_vm3, %v7739_v14  ;;  %1979 = vmatprep.mubr.f32.mxu1 %v7365_v4  ;;  %v6857_v14 = vld [vmem:[%s8916_s0 + $0x78] sm:$0x1f] }
 0x10b   :  { %7173 = vmatprep.subr.msk.bf16.mxu1 %vm7473_vm3, %v7702_v2  ;;  %v7237_v22 = vpack.c.bf16 %v6857_v14, %v7457_v9  ;;  %v6856_v9 = vld [vmem:[%s8916_s0 + $0x70] sm:$0x1f] }
 0x10c   :  { %v7240_v21 = vpack.c.bf16 %v6856_v9, %v7468_v13  ;;  %v6853_v13 = vld [vmem:[%s8918_s3 + $0x7c] sm:$0xf] }
 0x10d   :  { %6792 = vmatmul.mubr.msk.f32.vlgmr.msra.gmra.mrb[22].mxu1 %vm235_vm5, %v6789_v55 }
 0x10e   :  { %7176 = vmatpush1.bf16.msk.msra.mxu1 %vm7473_vm3, %v7719_v7  ;;  %2057 = vmatprep.mubr.f32.mxu1 %v7365_v4 }
 0x10f   :  { %7185 = vmatprep.subr.msk.bf16.mxu1 %vm7473_vm3, %v7183_v59 }
 0x115   :  { %6796 = vmatmul.mubr.msk.f32.vlgmr.msra.gmra.mrb[22].mxu1 %vm235_vm5, %v6793_v62 }
 0x116   :  { %7188 = vmatpush1.bf16.msk.msra.mxu1 %vm7473_vm3, %v7186_v30  ;;  %2239 = vmatprep.mubr.f32.mxu1 %v7365_v4 }
 0x117   :  { %7191 = vmatprep.subr.msk.bf16.mxu1 %vm7473_vm3, %v7679_v61 }
 0x11a   :  { %v8009_v0 = vpop.f32.mrb[6].mxu0 }
 0x11b   :  { %v8011_v2 = vpop.f32.mrb[7].mxu0 }
 0x11d   :  { %6812 = vmatmul.mubr.msk.f32.vlgmr.msra.gmra.mrb[22].mxu1 %vm235_vm5, %v6805_v63 }
 0x11e   :  { %7194 = vmatpush1.bf16.msk.msra.mxu1 %vm7473_vm3, %v7699_v1  ;;  %2317 = vmatprep.mubr.f32.mxu1 %v7365_v4  ;;  %v2147_v35 = vpop.f32.mrb[8].mxu0  ;;  %v6830_v1 = vld [vmem:[%s8918_s3 + $0x70] sm:$0xf]  ;;  %s7373_s3 = smov 11  }
 0x11f   :  { %7215 = vmatprep.subr.msk.bf16.mxu1 %vm7473_vm3, %v7836_v44  ;;  %v2149_v61 = vpop.f32.mrb[9].mxu0  ;;  %2152 = vrot.lane.b32.xlu1 %v2147_v35, %s7369_s14 }
 0x120   :  { %2154 = vrot.lane.b32.xlu0 %v2149_v61, %s7369_s14 }
 0x122   :  { %v2397_v5 = vpop.f32.mrb[10].mxu0 }
 0x123   :  { %v2399_v6 = vpop.f32.mrb[11].mxu0  ;;  %2402 = vrot.lane.b32.xlu1 %v2397_v5, %s7370_s17 }
 0x124   :  { %2404 = vrot.lane.b32.xlu0 %v2399_v6, %s7370_s17 }
 0x125   :  { %6816 = vmatmul.mubr.msk.f32.vlgmr.msra.gmra.mrb[22].mxu1 %vm235_vm5, %v6813_v3 }
 0x126   :  { %7218 = vmatpush1.bf16.msk.msra.mxu1 %vm7473_vm3, %v7842_v47  ;;  %2679 = vmatprep.mubr.f32.mxu1 %v7365_v4  ;;  %v2482_v7 = vpop.f32.mrb[12].mxu0  ;;  %v321_v47 = vlaneseq }
 0x127   :  { %7221 = vmatprep.subr.msk.bf16.mxu1 %vm7473_vm3, %v7759_v20  ;;  %v2484_v8 = vpop.f32.mrb[13].mxu0  ;;  %2487 = vrot.lane.b32.xlu1 %v2482_v7, %s7371_s1 }
 0x128   :  { %2489 = vrot.lane.b32.xlu0 %v2484_v8, %s7371_s1  ;;  %v8121_v49 = vand.u32 127, %v321_v47 }
 0x129   :  { %6837 = vmatmul.mubr.msk.f32.vlgmr.msra.gmra.mrb[24].mxu1 %vm235_vm5, %v6830_v1 }
 0x12a   :  { %7224 = vmatpush1.bf16.msk.msra.mxu1 %vm7473_vm3, %v7776_v25  ;;  %2759 = vmatprep.mubr.f32.mxu1 %v7365_v4  ;;  %v8046_v10 = vpop.f32.mrb[14].mxu0  ;;  %vm1549_vm8 = vcmp.lt.s32.totalorder %v8121_v49, 127  ;;  %vm323_vm9 = vcmp.lt.s32.totalorder %v8121_v49, 11  ;;  %vm417_vm10 = vcmp.lt.s32.totalorder %v8121_v49, 10  ;;  %vm597_vm11 = vcmp.lt.s32.totalorder %v8121_v49, 1 }
 0x12b   :  { %7233 = vmatprep.subr.msk.bf16.mxu1 %vm7473_vm3, %v7782_v26  ;;  %v8051_v11 = vpop.f32.mrb[15].mxu0  ;;  %vm1288_vm13 = vcmp.lt.s32.totalorder %v8121_v49, 9  ;;  %vm2406_vm14 = vcmp.lt.s32.totalorder %v8121_v49, 119  ;;  %vm2491_vm15 = vcmp.lt.s32.totalorder %v8121_v49, 118  ;;  %vm3358_vm0 = vcmp.lt.s32.totalorder %v8121_v49, 117 }
 0x12e   :  { %v2837_v18 = vpop.f32.mrb[16].mxu0 }
 0x12f   :  { %v2839_v24 = vpop.f32.mrb[17].mxu0  ;;  %2842 = vrot.lane.b32.xlu1 %v2837_v18, %s7372_s4 }
 0x130   :  { %2844 = vrot.lane.b32.xlu0 %v2839_v24, %s7372_s4 }
 0x131   :  { %6840 = vmatmul.mubr.msk.f32.vlgmr.msra.gmra.mrb[24].mxu1 %vm235_vm5, %v6829_v17 }
 0x132   :  { %7236 = vmatpush1.bf16.msk.msra.mxu1 %vm7473_vm3, %v7796_v31  ;;  %2929 = vmatprep.mubr.f32.mxu1 %v7365_v4  ;;  %v3097_v16 = vpop.f32.mrb[18].mxu0 }
 0x133   :  { %7239 = vmatprep.subr.msk.bf16.mxu1 %vm7473_vm3, %v7237_v22  ;;  %v3099_v26 = vpop.f32.mrb[19].mxu0  ;;  %3102 = vrot.lane.b32.xlu1 %v3097_v16, %s7372_s4 }
 0x134   :  { %3104 = vrot.lane.b32.xlu0 %v3099_v26, %s7372_s4 }
 0x136   :  { %v3181_v31 = vpop.f32.mrb[20].mxu0 }
 0x137   :  { %v3183_v32 = vpop.f32.mrb[21].mxu0  ;;  %3186 = vrot.lane.b32.xlu1 %v3181_v31, %s7371_s1  ;;  %v52_v31 = vrot.slane %v7816_v39, 4 }
 0x138   :  { %3188 = vrot.lane.b32.xlu0 %v3183_v32, %s7371_s1  ;;  %v59_v32 = vrot.slane %v7818_v40, 4 }
 0x139   :  { %6852 = vmatmul.mubr.msk.f32.vlgmr.msra.gmra.mrb[24].mxu1 %vm235_vm5, %v6845_v29 }
 0x13a   :  { %7242 = vmatpush1.bf16.msk.msra.mxu1 %vm7473_vm3, %v7240_v21  ;;  %3017 = vmatprep.mubr.f32.mxu1 %v7365_v4 }
 0x13b   :  { %7263 = vmatprep.subr.msk.bf16.mxu1 %vm7473_vm3, %v7759_v20  ;;  %v8100_v20 = vpop.f32.mrb[22].mxu0 }
 0x13c   :  { %v8102_v37 = vpop.f32.mrb[23].mxu0 }
 0x141   :  { %6860 = vmatmul.mubr.msk.f32.vlgmr.msra.gmra.mrb[24].mxu1 %vm235_vm5, %v6853_v13 }
 0x142   :  { %7266 = vmatpush1.bf16.msk.msra.mxu1 %vm7473_vm3, %v7776_v25  ;;  %3347 = vmatprep.mubr.f32.mxu1 %v7365_v4 }
 0x145   :  { %6876 = vmatmul.mubr.msk.f32.vlgmr.msra.gmra.mrb[26].mxu1 %vm235_vm5, %v6873_v36  ;;  %v53_v36 = vadd.f32 %v52_v31, %v7816_v39 }
 0x146   :  { %3671 = vmatprep.mubr.f32.mxu1 %v7365_v4 }
 0x155   :  { %v8104_v42 = vpop.permute.xlu1 %498 }
 0x156   :  { %v8106_v43 = vpop.permute.xlu0 %500 }
 0x191   :  { %v8108_v15 = vpop.permute.xlu1 %2152 }
 0x192   :  { %v8110_v25 = vpop.permute.xlu0 %2154 }
 0x195   :  { %v8112_v44 = vpop.permute.xlu1 %2402 }
 0x196   :  { %v8114_v46 = vpop.permute.xlu0 %2404 }
 0x199   :  { %v8116_v23 = vpop.permute.xlu1 %2487 }
 0x19a   :  { %v8118_v48 = vpop.permute.xlu0 %2489 }
 0x1a1   :  { %v2843_v28 = vpop.permute.xlu1 %2842 }
 0x1a2   :  { %v2845_v50 = vpop.permute.xlu0 %2844 }
 0x1a3   :  { %v2846_v52 = vsel %vm1549_vm8, %v2843_v28, %v2845_v50  ;;  %v2847_v53 = vsel %vm1549_vm8, %v2845_v50, %v2843_v28  ;;  %v54_v50 = vrot.slane %v53_v36, 2 }
 0x1a5   :  { %v3103_v54 = vpop.permute.xlu1 %3102 }
 0x1a6   :  { %v3105_v57 = vpop.permute.xlu0 %3104 }
 0x1a7   :  { %v3106_v34 = vsel %vm1549_vm8, %v3103_v54, %v3105_v57  ;;  %v3107_v27 = vsel %vm1549_vm8, %v3105_v57, %v3103_v54  ;;  %v55_v54 = vadd.f32 %v54_v50, %v53_v36 }
 0x1aa   :  { %v8174_v13 = vpop.permute.xlu0 %3188 }
 0x1b4   :  { %v224_v12 = vpop.f32.mrb[0].mxu1 }
 0x1b5   :  { %v226_v19 = vpop.f32.mrb[1].mxu1 }
 0x1b6   :  { %v8132_v33 = vcombine.low %v224_v12, %v226_v19 }
 0x1b8   :  { %v312_v38 = vpop.f32.mrb[2].mxu1 }
 0x1b9   :  { %317 = vrot.lane.b32.xlu0 %v312_v38, %s7373_s3  ;;  %v314_v41 = vpop.f32.mrb[3].mxu1 }
 0x1ba   :  { %319 = vrot.lane.b32.xlu1 %v314_v41, %s7373_s3 }
 0x1bc   :  { %v408_v45 = vpop.f32.mrb[4].mxu1 }
 0x1bd   :  { %v410_v51 = vpop.f32.mrb[5].mxu1 }
 0x1be   :  { %413 = vrot.lane.b32.xlu1 %v408_v45, %s7368_s28  ;;  %415 = vrot.lane.b32.xlu0 %v410_v51, %s7368_s28  ;;  %v502_v45 = vsel %vm417_vm10, %v8104_v42, %v8106_v43  ;;  %v503_v51 = vsel %vm417_vm10, %v8106_v43, %v8104_v42 }
 0x1c0   :  { %v588_v55 = vpop.f32.mrb[6].mxu1 }
 0x1c1   :  { %v590_v59 = vpop.f32.mrb[7].mxu1 }
 0x1c2   :  { %593 = vrot.lane.b32.xlu1 %v588_v55, %s7369_s14  ;;  %595 = vrot.lane.b32.xlu0 %v590_v59, %s7369_s14 }
 0x1c4   :  { %v839_v60 = vpop.f32.mrb[8].mxu1 }
 0x1c5   :  { %v841_v62 = vpop.f32.mrb[9].mxu1 }
 0x1c6   :  { %844 = vrot.lane.b32.xlu1 %v839_v60, %s7369_s14  ;;  %846 = vrot.lane.b32.xlu0 %v841_v62, %s7369_s14 }
 0x1c8   :  { %v1103_v30 = vpop.f32.mrb[10].mxu1 }
 0x1c9   :  { %v1105_v63 = vpop.f32.mrb[11].mxu1 }
 0x1ca   :  { %1108 = vrot.lane.b32.xlu1 %v1103_v30, %s7368_s28  ;;  %1110 = vrot.lane.b32.xlu0 %v1105_v63, %s7368_s28 }
 0x1cc   :  { %v1195_v35 = vpop.f32.mrb[12].mxu1 }
 0x1cd   :  { %v1197_v61 = vpop.f32.mrb[13].mxu1 }
 0x1ce   :  { %1200 = vrot.lane.b32.xlu1 %v1195_v35, %s7368_s28  ;;  %1202 = vrot.lane.b32.xlu0 %v1197_v61, %s7368_s28  ;;  %v56_v35 = vrot.slane %v55_v54, 1 }
 0x1d0   :  { %v1279_v3 = vpop.f32.mrb[14].mxu1  ;;  %v8207_v43 = vadd.f32 %v56_v35, %v55_v54 }
 0x1d1   :  { %v1281_v5 = vpop.f32.mrb[15].mxu1 }
 0x1d2   :  { %1284 = vrot.lane.b32.xlu1 %v1279_v3, %s7374_s5  ;;  %1286 = vrot.lane.b32.xlu0 %v1281_v5, %s7374_s5 }
 0x1d4   :  { %v1540_v6 = vpop.f32.mrb[16].mxu1 }
 0x1d5   :  { %v1542_v1 = vpop.f32.mrb[17].mxu1 }
 0x1d6   :  { %1545 = vrot.lane.b32.xlu1 %v1540_v6, %s7372_s4  ;;  %1547 = vrot.lane.b32.xlu0 %v1542_v1, %s7372_s4 }
 0x1d8   :  { %v1781_v7 = vpop.f32.mrb[18].mxu1 }
 0x1d9   :  { %v1783_v8 = vpop.f32.mrb[19].mxu1 }
 0x1da   :  { %1786 = vrot.lane.b32.xlu1 %v1781_v7, %s7372_s4  ;;  %1788 = vrot.lane.b32.xlu0 %v1783_v8, %s7372_s4 }
 0x1dc   :  { %v1889_v14 = vpop.f32.mrb[20].mxu1 }
 0x1dd   :  { %v1891_v17 = vpop.f32.mrb[21].mxu1 }
 0x1de   :  { %1894 = vrot.lane.b32.xlu1 %v1889_v14, %s7369_s14  ;;  %1896 = vrot.lane.b32.xlu0 %v1891_v17, %s7369_s14 }
 0x1e2   :  { %2572 = vrot.lane.b32.xlu1 %v8046_v10, %s7371_s1  ;;  %2574 = vrot.lane.b32.xlu0 %v8051_v11, %s7371_s1 }
 0x1e6   :  { %3270 = vrot.lane.b32.xlu1 %v8100_v20, %s7371_s1  ;;  %3272 = vrot.lane.b32.xlu0 %v8102_v37, %s7371_s1  ;;  %v8177_v20 = vpop.permute.xlu1 %3186  ;;  %v60_v37 = vadd.f32 %v59_v32, %v7818_v40 }
 0x1f8   :  { %v8162_v18 = vpop.f32.mrb[22].mxu1 }
 0x1f9   :  { %v8164_v22 = vpop.f32.mrb[23].mxu1 }
 0x214   :  { %v3019_v24 = vpop.f32.mrb[24].mxu1 }
 0x215   :  { %v7279_v16 = vadd.f32 %v3019_v24, %v2846_v52  ;;  %v3021_v9 = vpop.f32.mrb[25].mxu1 }
 0x216   :  { %v7280_v26 = vadd.f32 %v3021_v9, %v2847_v53  ;;  %v61_v53 = vrot.slane %v60_v37, 2 }
 0x217   :  { %v8166_v29 = vadd.f32 %v7279_v16, %v3106_v34 }
 0x218   :  { %v8168_v10 = vadd.f32 %v7280_v26, %v3107_v27  ;;  %v3349_v21 = vpop.f32.mrb[26].mxu1  ;;  %v62_v19 = vadd.f32 %v61_v53, %v60_v37 }
 0x219   :  { %3354 = vrot.lane.b32.xlu1 %v3349_v21, %s7375_s12  ;;  %v3351_v11 = vpop.f32.mrb[27].mxu1 }
 0x21a   :  { %3356 = vrot.lane.b32.xlu0 %v3351_v11, %s7375_s12  ;;  %v63_v61 = vrot.slane %v62_v19, 1 }
 0x21c   :  { %v8209_v8 = vadd.f32 %v63_v61, %v62_v19 }
 0x22b   :  { %v318_v28 = vpop.permute.xlu0 %317 }
 0x22c   :  { %v320_v52 = vpop.permute.xlu1 %319 }
 0x22d   :  { %v324_v27 = vsel %vm323_vm9, %v318_v28, %v320_v52  ;;  %v325_v39 = vsel %vm323_vm9, %v320_v52, %v318_v28 }
 0x230   :  { %v414_v57 = vpop.permute.xlu1 %413  ;;  %v416_v34 = vpop.permute.xlu0 %415 }
 0x231   :  { %v418_v40 = vsel %vm417_vm10, %v414_v57, %v416_v34  ;;  %v419_v12 = vsel %vm417_vm10, %v416_v34, %v414_v57 }
 0x232   :  { %v420_v38 = vadd.f32 %v419_v12, %v325_v39  ;;  %v421_v41 = vadd.f32 %v418_v40, %v324_v27 }
 0x234   :  { %v594_v55 = vpop.permute.xlu1 %593  ;;  %v504_v59 = vadd.f32 %v503_v51, %v420_v38  ;;  %v505_v60 = vadd.f32 %v502_v45, %v421_v41  ;;  %v596_v62 = vpop.permute.xlu0 %595 }
 0x235   :  { %v598_v30 = vsel %vm597_vm11, %v594_v55, %v596_v62  ;;  %v599_v63 = vsel %vm597_vm11, %v596_v62, %v594_v55 }
 0x236   :  { %v600_v3 = vadd.f32 %v599_v63, %v504_v59  ;;  %v601_v5 = vadd.f32 %v598_v30, %v505_v60 }
 0x238   :  { %v845_v6 = vpop.permute.xlu1 %844  ;;  %v847_v1 = vpop.permute.xlu0 %846 }
 0x239   :  { %v848_v7 = vsel %vm597_vm11, %v845_v6, %v847_v1  ;;  %v849_v42 = vsel %vm597_vm11, %v847_v1, %v845_v6 }
 0x23a   :  { %v7267_v14 = vadd.f32 %v849_v42, %v600_v3  ;;  %v7269_v17 = vadd.f32 %v848_v7, %v601_v5 }
 0x23c   :  { %v7268_v24 = vadd.f32 %v7267_v14, %v7941_v56  ;;  %v7270_v16 = vadd.f32 %v7269_v17, %v7946_v58  ;;  %v1109_v9 = vpop.permute.xlu1 %1108  ;;  %v1111_v26 = vpop.permute.xlu0 %1110  ;;  %v2157_v14 = vsel %vm597_vm11, %v8110_v25, %v8108_v15 }
 0x23d   :  { %v1112_v54 = vsel %vm417_vm10, %v1109_v9, %v1111_v26  ;;  %v1113_v57 = vsel %vm417_vm10, %v1111_v26, %v1109_v9 }
 0x23e   :  { %v8213_v21 = vcombine.low %v7268_v24, %v7270_v16  ;;  %v1013_v11 = vmul.f32 %v7268_v24, %v8207_v43  ;;  %v1014_v31 = vmul.f32 %v7270_v16, %v8209_v8 }
 0x240   :  { %v1201_v32 = vpop.permute.xlu1 %1200  ;;  %v1203_v36 = vpop.permute.xlu0 %1202  ;;  %v1016_v37 = vsel %vm1015_vm12, %v1013_v11, 0.0  ;;  %v1017_v28 = vsel %vm1015_vm12, %v1014_v31, 0.0 }
 0x241   :  { %v1018_v50 = vadd.f32 %v1017_v28, %v1016_v37  ;;  %v1204_v56 = vsel %vm417_vm10, %v1201_v32, %v1203_v36  ;;  %v1205_v58 = vsel %vm417_vm10, %v1203_v36, %v1201_v32 }
 0x242   :  { %v1206_v39 = vadd.f32 %v1205_v58, %v1113_v57  ;;  %v1207_v40 = vadd.f32 %v1204_v56, %v1112_v54 }
 0x243   :  { %1019 = vadd.xlane.f32.xlu1 %v1018_v50 }
 0x244   :  { %v1285_v52 = vpop.permute.xlu1 %1284  ;;  %v1287_v53 = vpop.permute.xlu0 %1286 }
 0x245   :  { %v1289_v34 = vsel %vm1288_vm13, %v1285_v52, %v1287_v53  ;;  %v1290_v27 = vsel %vm1288_vm13, %v1287_v53, %v1285_v52 }
 0x246   :  { %v1291_v12 = vadd.f32 %v1290_v27, %v1206_v39  ;;  %v1292_v19 = vadd.f32 %v1289_v34, %v1207_v40 }
 0x248   :  { %v1546_v38 = vpop.permute.xlu1 %1545  ;;  %v1548_v41 = vpop.permute.xlu0 %1547 }
 0x249   :  { %v1550_v45 = vsel %vm1549_vm8, %v1546_v38, %v1548_v41  ;;  %v1551_v51 = vsel %vm1549_vm8, %v1548_v41, %v1546_v38  ;;  %v3191_v38 = vsel %vm2491_vm15, %v8174_v13, %v8177_v20 }
 0x24a   :  { %v7271_v55 = vadd.f32 %v1550_v45, %v1291_v12  ;;  %v7273_v59 = vadd.f32 %v1551_v51, %v1292_v19  ;;  %v3190_v19 = vsel %vm2491_vm15, %v8177_v20, %v8174_v13 }
 0x24b   :  { %v3192_v51 = vadd.f32 %v3190_v19, %v8166_v29 }
 0x24c   :  { %v1787_v60 = vpop.permute.xlu1 %1786  ;;  %v7272_v62 = vadd.f32 %v7271_v55, %v8009_v0  ;;  %v7274_v30 = vadd.f32 %v7273_v59, %v8011_v2  ;;  %v1789_v63 = vpop.permute.xlu0 %1788  ;;  %v2156_v2 = vsel %vm597_vm11, %v8108_v15, %v8110_v25  ;;  %v2407_v15 = vsel %vm2406_vm14, %v8112_v44, %v8114_v46 }
 0x24d   :  { %v1790_v35 = vsel %vm1549_vm8, %v1787_v60, %v1789_v63  ;;  %v1791_v61 = vsel %vm1549_vm8, %v1789_v63, %v1787_v60  ;;  %v2408_v25 = vsel %vm2406_vm14, %v8114_v46, %v8112_v44  ;;  %v3193_v55 = vadd.f32 %v3191_v38, %v8168_v10 }
 0x24e   :  { %v1792_v3 = vadd.f32 %v7272_v62, %v1790_v35  ;;  %v1793_v5 = vadd.f32 %v7274_v30, %v1791_v61 }
 0x250   :  { %v8243_v6 = vcombine.low %v1792_v3, %v1793_v5  ;;  %v1895_v1 = vpop.permute.xlu1 %1894  ;;  %v1897_v7 = vpop.permute.xlu0 %1896  ;;  %v1800_v42 = vmul.f32 %v1792_v3, %v8207_v43  ;;  %v1801_v0 = vmul.f32 %v1793_v5, %v8209_v8 }
 0x251   :  { %v1898_v17 = vsel %vm597_vm11, %v1895_v1, %v1897_v7  ;;  %v1899_v24 = vsel %vm597_vm11, %v1897_v7, %v1895_v1 }
 0x252   :  { %v7275_v16 = vadd.f32 %v2157_v14, %v1899_v24  ;;  %v7277_v9 = vadd.f32 %v2156_v2, %v1898_v17  ;;  %v1802_v26 = vsel %vm1015_vm12, %v1800_v42, 0.0  ;;  %v1803_v11 = vsel %vm1015_vm12, %v1801_v0, 0.0 }
 0x253   :  { %v1804_v31 = vadd.f32 %v1803_v11, %v1802_v26  ;;  %v7376_v42 = vmov 839922192  }
 0x254   :  { %v7276_v32 = vadd.f32 %v7275_v16, %v8162_v18  ;;  %v7278_v36 = vadd.f32 %v7277_v9, %v8164_v22  ;;  %v2573_v37 = vpop.permute.xlu1 %2572  ;;  %v2575_v28 = vpop.permute.xlu0 %2574  ;;  %v2492_v18 = vsel %vm2491_vm15, %v8116_v23, %v8118_v48  ;;  %v2493_v22 = vsel %vm2491_vm15, %v8118_v48, %v8116_v23 }
 0x255   :  { %1805 = vadd.xlane.f32.xlu0 %v1804_v31  ;;  %v2576_v44 = vsel %vm2491_vm15, %v2573_v37, %v2575_v28  ;;  %v2577_v46 = vsel %vm2491_vm15, %v2575_v28, %v2573_v37  ;;  %v3381_v0 = vunpack.c.l.s4 %v7376_v42  ;;  %v3384_v16 = vshrl.u32 %v321_v47, 7 }
 0x256   :  { %v2409_v50 = vadd.f32 %v7276_v32, %v2407_v15  ;;  %v2410_v56 = vadd.f32 %v7278_v36, %v2408_v25  ;;  %v8320_v36 = vcombine.low %v8207_v43, %v8209_v8 }
 0x257   :  { %v3382_v24 = vunpack.c.0.s8 %v3381_v0 }
 0x258   :  { %v2494_v58 = vadd.f32 %v2492_v18, %v2409_v50  ;;  %v2495_v52 = vadd.f32 %v2493_v22, %v2410_v56  ;;  %v3271_v40 = vpop.permute.xlu1 %3270  ;;  %v3273_v12 = vpop.permute.xlu0 %3272 }
 0x259   :  { %v3274_v41 = vsel %vm2491_vm15, %v3271_v40, %v3273_v12  ;;  %v3275_v45 = vsel %vm2491_vm15, %v3273_v12, %v3271_v40  ;;  %v8316_v11 = vsub.s32 %v3382_v24, %v3384_v16 }
 0x25a   :  { %v2578_v53 = vadd.f32 %v2576_v44, %v2494_v58  ;;  %v2579_v54 = vadd.f32 %v2577_v46, %v2495_v52  ;;  %v3276_v60 = vadd.f32 %v3274_v41, %v3192_v51  ;;  %v3277_v62 = vadd.f32 %v3275_v45, %v3193_v55 }
 0x25c   :  { %v8284_v57 = vcombine.low %v2578_v53, %v2579_v54  ;;  %v2586_v34 = vmul.f32 %v2578_v53, %v8207_v43  ;;  %v2587_v27 = vmul.f32 %v2579_v54, %v8209_v8 }
 0x25e   :  { %v2588_v39 = vsel %vm1015_vm12, %v2586_v34, 0.0  ;;  %v2589_v23 = vsel %vm1015_vm12, %v2587_v27, 0.0 }
 0x25f   :  { %v2590_v48 = vadd.f32 %v2589_v23, %v2588_v39 }
 0x261   :  { %2591 = vadd.xlane.f32.xlu0 %v2590_v48 }
 0x28b   :  { %v3355_v59 = vpop.permute.xlu1 %3354 }
 0x28c   :  { %v3357_v30 = vpop.permute.xlu0 %3356 }
 0x28d   :  { %v3359_v63 = vsel %vm3358_vm0, %v3355_v59, %v3357_v30  ;;  %v3360_v13 = vsel %vm3358_vm0, %v3357_v30, %v3355_v59 }
 0x28e   :  { %v3361_v20 = vadd.f32 %v3359_v63, %v3276_v60  ;;  %v3362_v35 = vadd.f32 %v3360_v13, %v3277_v62 }
 0x290   :  { %v8309_v61 = vcombine.low %v3361_v20, %v3362_v35  ;;  %v3369_v29 = vmul.f32 %v3361_v20, %v8207_v43  ;;  %v3370_v10 = vmul.f32 %v3362_v35, %v8209_v8 }
 0x292   :  { %v3371_v3 = vsel %vm1015_vm12, %v3369_v29, 0.0  ;;  %v3372_v5 = vsel %vm1015_vm12, %v3370_v10, 0.0 }
 0x293   :  { %v3373_v1 = vadd.f32 %v3372_v5, %v3371_v3  ;;  %v3446_v3 = vld [vmem:[%s8920_s6] sm:$0xf] }
 0x295   :  { %3374 = vadd.xlane.f32.xlu1 %v3373_v1 }
 0x2d0   :  { %v1020_v2 = vpop.xlane.xlu1 %1019 }
 0x2e2   :  { %v1806_v7 = vpop.xlane.xlu0 %1805 }
 0x2e3   :  { %v1807_v17 = vadd.f32 %v1806_v7, %v1020_v2  ;;  %v3448_v7 = vld [vmem:[%s8921_s7] sm:$0xf] }
 0x2ee   :  { %v2592_v14 = vpop.xlane.xlu0 %2591 }
 0x2ef   :  { %v2593_v9 = vadd.f32 %v2592_v14, %v1807_v17 }
 0x322   :  { %v3375_v26 = vpop.xlane.xlu1 %3374 }
 0x323   :  { %v3376_v31 = vadd.f32 %v3375_v26, %v2593_v9 }
 0x325   :  { %v3377_v32 = vmul.f32 0.001953125, %v3376_v31 }
 0x327   :  { %v3386_v15 = vrot.slane %v3377_v32, %v8316_v11 }
 0x329   :  { %v3405_v25 = vsub.f32 %v8243_v6, %v3386_v15  ;;  %v3388_v37 = vsub.f32 %v8213_v21, %v3386_v15  ;;  %v3431_v28 = vsub.f32 %v8309_v61, %v3386_v15  ;;  %v3418_v47 = vsub.f32 %v8284_v57, %v3386_v15 }
 0x32b   :  { %v3406_v50 = vmul.f32 %v3405_v25, %v8320_v36  ;;  %v3393_v56 = vmul.f32 %v8320_v36, %v3388_v37  ;;  %v3432_v18 = vmul.f32 %v3431_v28, %v8320_v36  ;;  %v3419_v22 = vmul.f32 %v3418_v47, %v8320_v36 }
 0x32d   :  { %v3407_v58 = vmul.f32 %v3406_v50, %v3406_v50  ;;  %v3394_v52 = vmul.f32 %v3393_v56, %v3393_v56  ;;  %v3433_v44 = vmul.f32 %v3432_v18, %v3432_v18  ;;  %v3420_v46 = vmul.f32 %v3419_v22, %v3419_v22 }
 0x32f   :  { %v3409_v53 = vcombine.high %v3407_v58, %v3407_v58  ;;  %v3396_v54 = vcombine.high %v3394_v52, %v3394_v52  ;;  %v3435_v34 = vcombine.high %v3433_v44, %v3433_v44  ;;  %v3422_v27 = vcombine.high %v3420_v46, %v3420_v46 }
 0x330   :  { %v3411_v39 = vsel %vm1015_vm12, %v3407_v58, 0.0  ;;  %v3398_v48 = vsel %vm1015_vm12, %v3394_v52, 0.0  ;;  %v3437_v45 = vsel %vm1015_vm12, %v3433_v44, 0.0  ;;  %v3424_v51 = vsel %vm1015_vm12, %v3420_v46, 0.0 }
 0x331   :  { %v3412_v23 = vsel %vm1015_vm12, %v3409_v53, 0.0  ;;  %v3399_v40 = vsel %vm1015_vm12, %v3396_v54, 0.0  ;;  %v3438_v38 = vsel %vm1015_vm12, %v3435_v34, 0.0  ;;  %v3425_v41 = vsel %vm1015_vm12, %v3422_v27, 0.0  ;;  %v3506_v53 = vld [vmem:[%s8922_s8] sm:$0xf] }
 0x332   :  { %v3413_v12 = vadd.f32 %v3412_v23, %v3411_v39  ;;  %v3400_v19 = vadd.f32 %v3399_v40, %v3398_v48  ;;  %v3439_v55 = vadd.f32 %v3438_v38, %v3437_v45  ;;  %v3426_v59 = vadd.f32 %v3425_v41, %v3424_v51  ;;  %v6880_v54 = vld [vmem:[%s8922_s8 + $0x4] sm:$0xf]  ;;  %v6884_v27 = vld [vmem:[%s8922_s8 + $0x8] sm:$0xf]  ;;  %v6888_v39 = vld [vmem:[%s8922_s8 + $0xc] sm:$0xf] }
 0x333   :  { %v6892_v23 = vld [vmem:[%s8922_s8 + $0x10] sm:$0xf]  ;;  %v6900_v48 = vld [vmem:[%s8922_s8 + $0x18] sm:$0xf]  ;;  %v4277_v40 = vld [vmem:[%s8922_s8] sm:$0xf] }
 0x334   :  { %3414 = vadd.xlane.f32.xlu1 %v3413_v12  ;;  %3401 = vadd.xlane.f32.xlu0 %v3400_v19  ;;  %v6896_v12 = vld [vmem:[%s8922_s8 + $0x14] sm:$0xf]  ;;  %v6915_v19 = vld [vmem:[%s8922_s8 + $0x4] sm:$0xf]  ;;  %v6919_v38 = vld [vmem:[%s8922_s8 + $0x8] sm:$0xf] }
 0x335   :  { %v6904_v41 = vld [vmem:[%s8922_s8 + $0x1c] sm:$0xf]  ;;  %v6931_v45 = vld [vmem:[%s8922_s8 + $0x14] sm:$0xf]  ;;  %v6943_v51 = vld [vmem:[%s8922_s8 + $0x20] sm:$0xf] }
 0x338   :  { %3440 = vadd.xlane.f32.xlu1 %v3439_v55  ;;  %3427 = vadd.xlane.f32.xlu0 %v3426_v59  ;;  %v6908_v55 = vld [vmem:[%s8922_s8 + $0x20] sm:$0xf] }
 0x339   :  { %v5040_v59 = vld [vmem:[%s8922_s8] sm:$0xf] }
 0x3c1   :  { %v3415_v60 = vpop.xlane.xlu1 %3414  ;;  %v3402_v62 = vpop.xlane.xlu0 %3401 }
 0x3c2   :  { %v3416_v30 = vadd.f32 %v3415_v60, %v3402_v62  ;;  %v6923_v60 = vld [vmem:[%s8922_s8 + $0xc] sm:$0xf]  ;;  %v6951_v62 = vld [vmem:[%s8922_s8 + $0x4] sm:$0xf] }
 0x3c5   :  { %v3428_v63 = vpop.xlane.xlu0 %3427  ;;  %v3441_v20 = vpop.xlane.xlu1 %3440 }
 0x3c6   :  { %v3429_v13 = vadd.f32 %v3428_v63, %v3416_v30  ;;  %v6927_v30 = vld [vmem:[%s8922_s8 + $0x10] sm:$0xf]  ;;  %v6955_v63 = vld [vmem:[%s8922_s8 + $0x8] sm:$0xf] }
 0x3c8   :  { %v3442_v35 = vadd.f32 %v3441_v20, %v3429_v13  ;;  %v6935_v13 = vld [vmem:[%s8922_s8 + $0x18] sm:$0xf]  ;;  %v6963_v20 = vld [vmem:[%s8922_s8 + $0x10] sm:$0xf] }
 0x3ca   :  { %v3443_v29 = vmul.f32 0.001953125, %v3442_v35  ;;  %v6939_v35 = vld [vmem:[%s8922_s8 + $0x1c] sm:$0xf] }
 0x3cc   :  { %v3444_v10 = vadd.f32 1e-05, %v3443_v29  ;;  %v6967_v29 = vld [vmem:[%s8922_s8 + $0x14] sm:$0xf] }
 0x3ce   :  { %7359 = vrsqrt.f32 %v3444_v10  ;;  %v6959_v10 = vld [vmem:[%s8922_s8 + $0xc] sm:$0xf] }
 0x3d8   :  { %v7360_v5 = vpop.eup %7359 }
 0x3d9   :  { %v3447_v1 = vmul.f32 %v7360_v5, %v3446_v3  ;;  %v6984_v3 = vld [vmem:[%s8922_s8 + $0x4] sm:$0xf]  ;;  %v6971_v5 = vld [vmem:[%s8922_s8 + $0x18] sm:$0xf] }
 0x3db   :  { %3453 = vperm.xlu0 %7357, %v3447_v1   ;;  %v3449_v42 = vmul.f32 %v3447_v1, %v3377_v32  ;;  %v6975_v1 = vld [vmem:[%s8922_s8 + $0x1c] sm:$0xf] }
 0x3dd   :  { %v3450_v0 = vsub.f32 %v3448_v7, %v3449_v42  ;;  %v5803_v7 = vld [vmem:[%s8922_s8] sm:$0xf] }
 0x3de   :  { %v6979_v42 = vld [vmem:[%s8922_s8 + $0x20] sm:$0xf] }
 0x3df   :  { %3466 = vperm.xlu1 %7358, %v3450_v0   ;;  %v6991_v0 = vld [vmem:[%s8922_s8 + $0x8] sm:$0xf] }
 0x45a   :  { %v3454_v2 = vpop.permute.xlu0 %3453 }
 0x45b   :  { %v3461_v14 = vrot.slane %v3454_v2, %v8316_v11  ;;  %v6995_v2 = vld [vmem:[%s8922_s8 + $0xc] sm:$0xf] }
 0x45d   :  { %v3463_v17 = vmul.f32 %v3461_v14, %v8213_v21  ;;  %v3486_v16 = vmul.f32 %v3461_v14, %v8243_v6  ;;  %v3493_v9 = vmul.f32 %v3461_v14, %v8284_v57  ;;  %v3500_v26 = vmul.f32 %v3461_v14, %v8309_v61  ;;  %v7003_v14 = vld [vmem:[%s8922_s8 + $0x14] sm:$0xf] }
 0x45e   :  { %v3467_v24 = vpop.permute.xlu1 %3466 }
 0x45f   :  { %v3474_v31 = vrot.slane %v3467_v24, %v8316_v11  ;;  %v7007_v24 = vld [vmem:[%s8922_s8 + $0x18] sm:$0xf] }
 0x461   :  { %v3476_v15 = vadd.f32 %v3474_v31, %v3463_v17  ;;  %v3487_v25 = vadd.f32 %v3486_v16, %v3474_v31  ;;  %v3494_v37 = vadd.f32 %v3493_v9, %v3474_v31  ;;  %v3501_v32 = vadd.f32 %v3500_v26, %v3474_v31  ;;  %v6999_v17 = vld [vmem:[%s8922_s8 + $0x10] sm:$0xf]  ;;  %v7011_v16 = vld [vmem:[%s8922_s8 + $0x1c] sm:$0xf]  ;;  %v7015_v9 = vld [vmem:[%s8922_s8 + $0x20] sm:$0xf] }
 0x463   :  { %v3477_v28 = vmax.f32 %v3476_v15, 0.0  ;;  %v3488_v47 = vmax.f32 %v3487_v25, 0.0  ;;  %v3495_v50 = vmax.f32 %v3494_v37, 0.0  ;;  %v3502_v56 = vmax.f32 %v3501_v32, 0.0 }
 0x465   :  { %v3489_v18 = vmul.f32 %v3488_v47, %v8320_v36  ;;  %v3496_v21 = vmul.f32 %v3495_v50, %v8320_v36  ;;  %v3503_v6 = vmul.f32 %v3502_v56, %v8320_v36  ;;  %v3478_v57 = vmul.f32 %v3477_v28, %v8320_v36 }
 0x467   :  { %v8356_v61 = vadd.f32 %v3496_v21, %v8132_v33  ;;  %v8359_v22 = vadd.f32 %v3503_v6, %v8132_v33  ;;  %v8362_v58 = vadd.f32 %v3489_v18, %v8132_v33  ;;  %v8373_v46 = vadd.f32 %v8132_v33, %v3478_v57 }
 0x469   :  { %v8366_v52 = vcombine.high %v8359_v22, %v8359_v22  ;;  %v8370_v44 = vcombine.high %v8356_v61, %v8356_v61  ;;  %v8391_v33 = vcombine.high %v8362_v58, %v8362_v58  ;;  %v8401_v34 = vcombine.high %v8373_v46, %v8373_v46 }
 0x46b   :  { %6877 = vmatprep.subr.msk.mxu0 %vm1015_vm12, %v8366_v52  ;;  %6881 = vmatprep.subr.msk.mxu1 %vm1015_vm12, %v8370_v44 }
 0x46c   :  { %6878 = vmatpush1.msk.msra.mxu0 %vm1015_vm12, %v8359_v22  ;;  %6882 = vmatpush1.msk.msra.mxu1 %vm1015_vm12, %v8356_v61 }
 0x46d   :  { %6879 = vmatmul.mubr.msk.f32.vlgmr.msra.gmra.mrb[24].mxu0 %vm3510_vm1, %v3506_v53  ;;  %6883 = vmatmul.mubr.msk.f32.vlgmr.msra.gmra.mrb[28].mxu1 %vm3510_vm1, %v6880_v54 }
 0x46e   :  { %6885 = vmatprep.subr.msk.mxu0 %vm1015_vm12, %v8366_v52  ;;  %6889 = vmatprep.subr.msk.mxu1 %vm1015_vm12, %v8391_v33 }
 0x46f   :  { %6886 = vmatpush1.msk.msra.mxu0 %vm1015_vm12, %v8359_v22  ;;  %6890 = vmatpush1.msk.msra.mxu1 %vm1015_vm12, %v8362_v58 }
 0x470   :  { %6893 = vmatprep.subr.msk.mxu0 %vm1015_vm12, %v8401_v34  ;;  %6901 = vmatprep.subr.msk.mxu1 %vm1015_vm12, %v8366_v52 }
 0x471   :  { %3755 = vmatprep.mubr.f32.mxu0 %v7365_v4  ;;  %3846 = vmatprep.mubr.f32.mxu1 %v7365_v4 }
 0x472   :  { %6887 = vmatmul.mubr.msk.f32.vlgmr.msra.gmra.mrb[26].mxu0 %vm3510_vm1, %v6884_v27  ;;  %6891 = vmatmul.mubr.msk.f32.vlgmr.msra.gmra.mrb[30].mxu1 %vm3510_vm1, %v6888_v39 }
 0x473   :  { %6894 = vmatpush1.msk.msra.mxu0 %vm1015_vm12, %v8373_v46  ;;  %6902 = vmatpush1.msk.msra.mxu1 %vm1015_vm12, %v8359_v22 }
 0x474   :  { %6897 = vmatprep.subr.msk.mxu0 %vm1015_vm12, %v8391_v33  ;;  %6912 = vmatprep.subr.msk.mxu1 %vm1015_vm12, %v8370_v44 }
 0x475   :  { %3937 = vmatprep.mubr.f32.mxu0 %v7365_v4  ;;  %4093 = vmatprep.mubr.f32.mxu1 %v7365_v4 }
 0x476   :  { %6895 = vmatmul.mubr.msk.f32.vlgmr.msra.gmra.mrb[28].mxu0 %vm3510_vm1, %v6892_v23  ;;  %6903 = vmatmul.mubr.msk.f32.vlgmr.msra.gmra.mrb[32].mxu1 %vm3510_vm1, %v6900_v48 }
 0x477   :  { %6898 = vmatpush1.msk.msra.mxu0 %vm1015_vm12, %v8362_v58  ;;  %6913 = vmatpush1.msk.msra.mxu1 %vm1015_vm12, %v8356_v61 }
 0x478   :  { %6905 = vmatprep.subr.msk.mxu0 %vm1015_vm12, %v8370_v44  ;;  %6916 = vmatprep.subr.msk.mxu1 %vm1015_vm12, %v8366_v52 }
 0x479   :  { %4352 = vmatprep.mubr.f32.mxu1 %v7365_v4  ;;  %4015 = vmatprep.mubr.f32.mxu0 %v7365_v4 }
 0x47a   :  { %6914 = vmatmul.mubr.msk.f32.vlgmr.msra.gmra.mrb[34].mxu1 %vm3510_vm1, %v4277_v40 }
 0x47b   :  { %6917 = vmatpush1.msk.msra.mxu1 %vm1015_vm12, %v8359_v22  ;;  %4440 = vmatprep.mubr.f32.mxu1 %v7365_v4 }
 0x47c   :  { %6920 = vmatprep.subr.msk.mxu1 %vm1015_vm12, %v8370_v44 }
 0x47e   :  { %6899 = vmatmul.mubr.msk.f32.vlgmr.msra.gmra.mrb[28].mxu0 %vm3510_vm1, %v6896_v12  ;;  %6918 = vmatmul.mubr.msk.f32.vlgmr.msra.gmra.mrb[36].mxu1 %vm3510_vm1, %v6915_v19 }
 0x47f   :  { %6906 = vmatpush1.msk.msra.mxu0 %vm1015_vm12, %v8356_v61  ;;  %6921 = vmatpush1.msk.msra.mxu1 %vm1015_vm12, %v8356_v61 }
 0x480   :  { %6909 = vmatprep.subr.msk.mxu0 %vm1015_vm12, %v8366_v52  ;;  %6932 = vmatprep.subr.msk.mxu1 %vm1015_vm12, %v8401_v34 }
 0x481   :  { %4523 = vmatprep.mubr.f32.mxu1 %v7365_v4  ;;  %4177 = vmatprep.mubr.f32.mxu0 %v7365_v4 }
 0x482   :  { %6922 = vmatmul.mubr.msk.f32.vlgmr.msra.gmra.mrb[38].mxu1 %vm3510_vm1, %v6919_v38 }
 0x483   :  { %6933 = vmatpush1.msk.msra.mxu1 %vm1015_vm12, %v8373_v46  ;;  %4774 = vmatprep.mubr.f32.mxu1 %v7365_v4 }
 0x484   :  { %6944 = vmatprep.subr.msk.mxu1 %vm1015_vm12, %v8370_v44 }
 0x486   :  { %6907 = vmatmul.mubr.msk.f32.vlgmr.msra.gmra.mrb[28].mxu0 %vm3510_vm1, %v6904_v41  ;;  %6934 = vmatmul.mubr.msk.f32.vlgmr.msra.gmra.mrb[40].mxu1 %vm3510_vm1, %v6931_v45 }
 0x487   :  { %6910 = vmatpush1.msk.msra.mxu0 %vm1015_vm12, %v8359_v22  ;;  %6945 = vmatpush1.msk.msra.mxu1 %vm1015_vm12, %v8356_v61 }
 0x488   :  { %6924 = vmatprep.subr.msk.mxu0 %vm1015_vm12, %v8401_v34  ;;  %6948 = vmatprep.subr.msk.mxu1 %vm1015_vm12, %v8391_v33 }
 0x489   :  { %5011 = vmatprep.mubr.f32.mxu1 %v7365_v4  ;;  %4255 = vmatprep.mubr.f32.mxu0 %v7365_v4 }
 0x48a   :  { %6946 = vmatmul.mubr.msk.f32.vlgmr.msra.gmra.mrb[42].mxu1 %vm3510_vm1, %v6943_v51 }
 0x48b   :  { %6949 = vmatpush1.msk.msra.mxu1 %vm1015_vm12, %v8362_v58  ;;  %5115 = vmatprep.mubr.f32.mxu1 %v7365_v4 }
 0x48c   :  { %6952 = vmatprep.subr.msk.mxu1 %vm1015_vm12, %v8401_v34 }
 0x48e   :  { %6911 = vmatmul.mubr.msk.f32.vlgmr.msra.gmra.mrb[28].mxu0 %vm3510_vm1, %v6908_v55  ;;  %6950 = vmatmul.mubr.msk.f32.vlgmr.msra.gmra.mrb[44].mxu1 %vm3510_vm1, %v5040_v59 }
 0x48f   :  { %6925 = vmatpush1.msk.msra.mxu0 %vm1015_vm12, %v8373_v46  ;;  %6953 = vmatpush1.msk.msra.mxu1 %vm1015_vm12, %v8373_v46 }
 0x490   :  { %6928 = vmatprep.subr.msk.mxu0 %vm1015_vm12, %v8391_v33  ;;  %6956 = vmatprep.subr.msk.mxu1 %vm1015_vm12, %v8391_v33 }
 0x491   :  { %4613 = vmatprep.mubr.f32.mxu0 %v7365_v4  ;;  %5203 = vmatprep.mubr.f32.mxu1 %v7365_v4 }
 0x492   :  { %6926 = vmatmul.mubr.msk.f32.vlgmr.msra.gmra.mrb[30].mxu0 %vm3510_vm1, %v6923_v60  ;;  %6954 = vmatmul.mubr.msk.f32.vlgmr.msra.gmra.mrb[46].mxu1 %vm3510_vm1, %v6951_v62 }
 0x493   :  { %6929 = vmatpush1.msk.msra.mxu0 %vm1015_vm12, %v8362_v58  ;;  %6957 = vmatpush1.msk.msra.mxu1 %vm1015_vm12, %v8362_v58 }
 0x494   :  { %6936 = vmatprep.subr.msk.mxu0 %vm1015_vm12, %v8370_v44  ;;  %6964 = vmatprep.subr.msk.mxu1 %vm1015_vm12, %v8370_v44 }
 0x495   :  { %4697 = vmatprep.mubr.f32.mxu0 %v7365_v4  ;;  %5280 = vmatprep.mubr.f32.mxu1 %v7365_v4 }
 0x49a   :  { %6930 = vmatmul.mubr.msk.f32.vlgmr.msra.gmra.mrb[30].mxu0 %vm3510_vm1, %v6927_v30  ;;  %6958 = vmatmul.mubr.msk.f32.vlgmr.msra.gmra.mrb[46].mxu1 %vm3510_vm1, %v6955_v63 }
 0x49b   :  { %6937 = vmatpush1.msk.msra.mxu0 %vm1015_vm12, %v8356_v61  ;;  %6965 = vmatpush1.msk.msra.mxu1 %vm1015_vm12, %v8356_v61 }
 0x49c   :  { %6940 = vmatprep.subr.msk.mxu0 %vm1015_vm12, %v8366_v52  ;;  %6968 = vmatprep.subr.msk.mxu1 %vm1015_vm12, %v8366_v52 }
 0x49d   :  { %4857 = vmatprep.mubr.f32.mxu0 %v7365_v4  ;;  %5454 = vmatprep.mubr.f32.mxu1 %v7365_v4 }
 0x4a2   :  { %6938 = vmatmul.mubr.msk.f32.vlgmr.msra.gmra.mrb[30].mxu0 %vm3510_vm1, %v6935_v13  ;;  %6966 = vmatmul.mubr.msk.f32.vlgmr.msra.gmra.mrb[46].mxu1 %vm3510_vm1, %v6963_v20 }
 0x4a3   :  { %6941 = vmatpush1.msk.msra.mxu0 %vm1015_vm12, %v8359_v22  ;;  %6969 = vmatpush1.msk.msra.mxu1 %vm1015_vm12, %v8359_v22 }
 0x4a4   :  { %6960 = vmatprep.subr.msk.mxu0 %vm1015_vm12, %v8366_v52  ;;  %6985 = vmatprep.subr.msk.mxu1 %vm1015_vm12, %v8391_v33 }
 0x4a5   :  { %4934 = vmatprep.mubr.f32.mxu0 %v7365_v4  ;;  %5531 = vmatprep.mubr.f32.mxu1 %v7365_v4 }
 0x4aa   :  { %6942 = vmatmul.mubr.msk.f32.vlgmr.msra.gmra.mrb[30].mxu0 %vm3510_vm1, %v6939_v35  ;;  %6970 = vmatmul.mubr.msk.f32.vlgmr.msra.gmra.mrb[46].mxu1 %vm3510_vm1, %v6967_v29 }
 0x4ab   :  { %6961 = vmatpush1.msk.msra.mxu0 %vm1015_vm12, %v8359_v22  ;;  %6986 = vmatpush1.msk.msra.mxu1 %vm1015_vm12, %v8362_v58 }
 0x4ac   :  { %6972 = vmatprep.subr.msk.mxu0 %vm1015_vm12, %v8391_v33  ;;  %6988 = vmatprep.subr.msk.mxu1 %vm1015_vm12, %v8401_v34 }
 0x4ad   :  { %5364 = vmatprep.mubr.f32.mxu0 %v7365_v4  ;;  %5880 = vmatprep.mubr.f32.mxu1 %v7365_v4 }
 0x4ae   :  { %6962 = vmatmul.mubr.msk.f32.vlgmr.msra.gmra.mrb[32].mxu0 %vm3510_vm1, %v6959_v10  ;;  %6987 = vmatmul.mubr.msk.f32.vlgmr.msra.gmra.mrb[48].mxu1 %vm3510_vm1, %v6984_v3 }
 0x4af   :  { %6973 = vmatpush1.msk.msra.mxu0 %vm1015_vm12, %v8362_v58  ;;  %6989 = vmatpush1.msk.msra.mxu1 %vm1015_vm12, %v8373_v46 }
 0x4b0   :  { %6976 = vmatprep.subr.msk.mxu0 %vm1015_vm12, %v8401_v34  ;;  %6996 = vmatprep.subr.msk.mxu1 %vm1015_vm12, %v8370_v44 }
 0x4b1   :  { %5608 = vmatprep.mubr.f32.mxu0 %v7365_v4  ;;  %5960 = vmatprep.mubr.f32.mxu1 %v7365_v4 }
 0x4b2   :  { %6974 = vmatmul.mubr.msk.f32.vlgmr.msra.gmra.mrb[34].mxu0 %vm3510_vm1, %v6971_v5 }
 0x4b3   :  { %6977 = vmatpush1.msk.msra.mxu0 %vm1015_vm12, %v8373_v46  ;;  %5691 = vmatprep.mubr.f32.mxu0 %v7365_v4 }
 0x4b4   :  { %6980 = vmatprep.subr.msk.mxu0 %vm1015_vm12, %v8391_v33 }
 0x4b6   :  { %6978 = vmatmul.mubr.msk.f32.vlgmr.msra.gmra.mrb[36].mxu0 %vm3510_vm1, %v6975_v1  ;;  %6990 = vmatmul.mubr.msk.f32.vlgmr.msra.gmra.mrb[48].mxu1 %vm3510_vm1, %v5803_v7 }
 0x4b7   :  { %6981 = vmatpush1.msk.msra.mxu0 %vm1015_vm12, %v8362_v58  ;;  %6997 = vmatpush1.msk.msra.mxu1 %vm1015_vm12, %v8356_v61 }
 0x4b8   :  { %6992 = vmatprep.subr.msk.mxu0 %vm1015_vm12, %v8401_v34  ;;  %7000 = vmatprep.subr.msk.mxu1 %vm1015_vm12, %v8366_v52 }
 0x4b9   :  { %5774 = vmatprep.mubr.f32.mxu0 %v7365_v4  ;;  %6125 = vmatprep.mubr.f32.mxu1 %v7365_v4 }
 0x4ba   :  { %6982 = vmatmul.mubr.msk.f32.vlgmr.msra.gmra.mrb[38].mxu0 %vm3510_vm1, %v6979_v42 }
 0x4bb   :  { %6993 = vmatpush1.msk.msra.mxu0 %vm1015_vm12, %v8373_v46  ;;  %6035 = vmatprep.mubr.f32.mxu0 %v7365_v4 }
 0x4bc   :  { %7004 = vmatprep.subr.msk.mxu0 %vm1015_vm12, %v8370_v44 }
 0x4be   :  { %6994 = vmatmul.mubr.msk.f32.vlgmr.msra.gmra.mrb[40].mxu0 %vm3510_vm1, %v6991_v0  ;;  %6998 = vmatmul.mubr.msk.f32.vlgmr.msra.gmra.mrb[48].mxu1 %vm3510_vm1, %v6995_v2 }
 0x4bf   :  { %7001 = vmatpush1.msk.msra.mxu1 %vm1015_vm12, %v8359_v22  ;;  %7005 = vmatpush1.msk.msra.mxu0 %vm1015_vm12, %v8356_v61 }
 0x4c0   :  { %7008 = vmatprep.subr.msk.mxu0 %vm1015_vm12, %v8401_v34  ;;  %7016 = vmatprep.subr.msk.mxu1 %vm1015_vm12, %v8401_v34 }
 0x4c1   :  { %6286 = vmatprep.mubr.f32.mxu0 %v7365_v4  ;;  %6209 = vmatprep.mubr.f32.mxu1 %v7365_v4 }
 0x4c2   :  { %7006 = vmatmul.mubr.msk.f32.vlgmr.msra.gmra.mrb[42].mxu0 %vm3510_vm1, %v7003_v14 }
 0x4c3   :  { %7009 = vmatpush1.msk.msra.mxu0 %vm1015_vm12, %v8373_v46  ;;  %6369 = vmatprep.mubr.f32.mxu0 %v7365_v4 }
 0x4c4   :  { %7012 = vmatprep.subr.msk.mxu0 %vm1015_vm12, %v8391_v33 }
 0x4c6   :  { %7002 = vmatmul.mubr.msk.f32.vlgmr.msra.gmra.mrb[48].mxu1 %vm3510_vm1, %v6999_v17  ;;  %7010 = vmatmul.mubr.msk.f32.vlgmr.msra.gmra.mrb[44].mxu0 %vm3510_vm1, %v7007_v24 }
 0x4c7   :  { %7013 = vmatpush1.msk.msra.mxu0 %vm1015_vm12, %v8362_v58  ;;  %7017 = vmatpush1.msk.msra.mxu1 %vm1015_vm12, %v8373_v46 }
 0x4c8   :  { %6452 = vmatprep.mubr.f32.mxu0 %v7365_v4  ;;  %6535 = vmatprep.mubr.f32.mxu1 %v7365_v4 }
 0x4ca   :  { %7014 = vmatmul.mubr.msk.f32.vlgmr.msra.gmra.mrb[46].mxu0 %vm3510_vm1, %v7011_v16  ;;  %7018 = vmatmul.mubr.msk.f32.vlgmr.msra.gmra.mrb[50].mxu1 %vm3510_vm1, %v7015_v9 }
 0x540   :  { %v3584_v26 = vpop.f32.mrb[24].mxu0  ;;  %v3673_v31 = vpop.f32.mrb[28].mxu1 }
 0x541   :  { %3589 = vrot.lane.b32.xlu1 %v3584_v26, %s7373_s3  ;;  %v3586_v15 = vpop.f32.mrb[25].mxu0  ;;  %v3675_v25 = vpop.f32.mrb[29].mxu1 }
 0x542   :  { %3591 = vrot.lane.b32.xlu0 %v3586_v15, %s7373_s3 }
 0x545   :  { %3678 = vrot.lane.b32.xlu1 %v3673_v31, %s7368_s28  ;;  %v3757_v37 = vpop.f32.mrb[26].mxu0  ;;  %v3848_v32 = vpop.f32.mrb[30].mxu1 }
 0x546   :  { %3680 = vrot.lane.b32.xlu0 %v3675_v25, %s7368_s28  ;;  %v3759_v28 = vpop.f32.mrb[27].mxu0  ;;  %v3850_v4 = vpop.f32.mrb[31].mxu1 }
 0x549   :  { %3762 = vrot.lane.b32.xlu1 %v3757_v37, %s7368_s28  ;;  %v4095_v47 = vpop.f32.mrb[32].mxu1 }
 0x54a   :  { %3764 = vrot.lane.b32.xlu0 %v3759_v28, %s7368_s28  ;;  %v4097_v50 = vpop.f32.mrb[33].mxu1 }
 0x54d   :  { %3853 = vrot.lane.b32.xlu1 %v3848_v32, %s7369_s14  ;;  %v4354_v56 = vpop.f32.mrb[34].mxu1 }
 0x54e   :  { %3855 = vrot.lane.b32.xlu0 %v3850_v4, %s7369_s14  ;;  %v4356_v18 = vpop.f32.mrb[35].mxu1 }
 0x551   :  { %4100 = vrot.lane.b32.xlu1 %v4095_v47, %s7369_s14  ;;  %v4442_v21 = vpop.f32.mrb[36].mxu1 }
 0x552   :  { %4102 = vrot.lane.b32.xlu0 %v4097_v50, %s7369_s14  ;;  %v4444_v6 = vpop.f32.mrb[37].mxu1 }
 0x555   :  { %4359 = vrot.lane.b32.xlu1 %v4354_v56, %s7368_s28  ;;  %v4525_v57 = vpop.f32.mrb[38].mxu1 }
 0x556   :  { %4361 = vrot.lane.b32.xlu0 %v4356_v18, %s7368_s28  ;;  %v4527_v61 = vpop.f32.mrb[39].mxu1 }
 0x559   :  { %4447 = vrot.lane.b32.xlu1 %v4442_v21, %s7368_s28  ;;  %v4776_v22 = vpop.f32.mrb[40].mxu1 }
 0x55a   :  { %4449 = vrot.lane.b32.xlu0 %v4444_v6, %s7368_s28  ;;  %v4778_v58 = vpop.f32.mrb[41].mxu1 }
 0x55d   :  { %4530 = vrot.lane.b32.xlu1 %v4525_v57, %s7374_s5  ;;  %v5013_v52 = vpop.f32.mrb[42].mxu1 }
 0x55e   :  { %4532 = vrot.lane.b32.xlu0 %v4527_v61, %s7374_s5  ;;  %v5015_v44 = vpop.f32.mrb[43].mxu1 }
 0x561   :  { %v8721_v46 = vpop.f32.mrb[28].mxu0  ;;  %4781 = vrot.lane.b32.xlu1 %v4776_v22, %s7372_s4  ;;  %v5117_v53 = vpop.f32.mrb[44].mxu1 }
 0x562   :  { %v8724_v54 = vpop.f32.mrb[29].mxu0  ;;  %4783 = vrot.lane.b32.xlu0 %v4778_v58, %s7372_s4  ;;  %v5119_v33 = vpop.f32.mrb[45].mxu1 }
 0x565   :  { %5018 = vrot.lane.b32.xlu1 %v5013_v52, %s7372_s4 }
 0x566   :  { %5020 = vrot.lane.b32.xlu0 %v5015_v44, %s7372_s4 }
 0x569   :  { %5122 = vrot.lane.b32.xlu1 %v5117_v53, %s7369_s14 }
 0x56a   :  { %5124 = vrot.lane.b32.xlu0 %v5119_v33, %s7369_s14 }
 0x57d   :  { %v8731_v34 = vpop.f32.mrb[30].mxu0  ;;  %v8733_v27 = vpop.f32.mrb[46].mxu1 }
 0x57e   :  { %v8735_v39 = vpop.f32.mrb[31].mxu0  ;;  %v8737_v23 = vpop.f32.mrb[47].mxu1 }
 0x581   :  { %v5366_v48 = vpop.f32.mrb[32].mxu0 }
 0x582   :  { %v5368_v40 = vpop.f32.mrb[33].mxu0  ;;  %5371 = vrot.lane.b32.xlu1 %v5366_v48, %s7369_s14 }
 0x583   :  { %5373 = vrot.lane.b32.xlu0 %v5368_v40, %s7369_s14 }
 0x585   :  { %v5610_v12 = vpop.f32.mrb[34].mxu0 }
 0x586   :  { %v5612_v19 = vpop.f32.mrb[35].mxu0  ;;  %5615 = vrot.lane.b32.xlu1 %v5610_v12, %s7370_s17 }
 0x587   :  { %5617 = vrot.lane.b32.xlu0 %v5612_v19, %s7370_s17 }
 0x589   :  { %v5693_v38 = vpop.f32.mrb[36].mxu0 }
 0x58a   :  { %v5695_v41 = vpop.f32.mrb[37].mxu0  ;;  %5698 = vrot.lane.b32.xlu1 %v5693_v38, %s7371_s1 }
 0x58b   :  { %5700 = vrot.lane.b32.xlu0 %v5695_v41, %s7371_s1 }
 0x58d   :  { %v5776_v45 = vpop.f32.mrb[38].mxu0 }
 0x58e   :  { %v5778_v51 = vpop.f32.mrb[39].mxu0  ;;  %5781 = vrot.lane.b32.xlu1 %v5776_v45, %s7371_s1 }
 0x58f   :  { %5783 = vrot.lane.b32.xlu0 %v5778_v51, %s7371_s1 }
 0x591   :  { %v6037_v55 = vpop.f32.mrb[40].mxu0 }
 0x592   :  { %v6039_v59 = vpop.f32.mrb[41].mxu0  ;;  %6042 = vrot.lane.b32.xlu1 %v6037_v55, %s7372_s4 }
 0x593   :  { %6044 = vrot.lane.b32.xlu0 %v6039_v59, %s7372_s4 }
 0x595   :  { %v6288_v60 = vpop.f32.mrb[42].mxu0 }
 0x596   :  { %v6290_v62 = vpop.f32.mrb[43].mxu0  ;;  %6293 = vrot.lane.b32.xlu1 %v6288_v60, %s7372_s4 }
 0x597   :  { %6295 = vrot.lane.b32.xlu0 %v6290_v62, %s7372_s4 }
 0x599   :  { %v8751_v30 = vpop.f32.mrb[48].mxu1  ;;  %v6371_v63 = vpop.f32.mrb[44].mxu0 }
 0x59a   :  { %v8753_v13 = vpop.f32.mrb[49].mxu1  ;;  %v6373_v20 = vpop.f32.mrb[45].mxu0  ;;  %6376 = vrot.lane.b32.xlu1 %v6371_v63, %s7371_s1 }
 0x59b   :  { %6378 = vrot.lane.b32.xlu0 %v6373_v20, %s7371_s1 }
 0x59d   :  { %v6454_v35 = vpop.f32.mrb[46].mxu0  ;;  %v6537_v29 = vpop.f32.mrb[50].mxu1 }
 0x59e   :  { %v6456_v10 = vpop.f32.mrb[47].mxu0  ;;  %6459 = vrot.lane.b32.xlu1 %v6454_v35, %s7371_s1  ;;  %v6539_v3 = vpop.f32.mrb[51].mxu1 }
 0x59f   :  { %6461 = vrot.lane.b32.xlu0 %v6456_v10, %s7371_s1 }
 0x5a2   :  { %6542 = vrot.lane.b32.xlu1 %v6537_v29, %s7375_s12 }
 0x5a3   :  { %6544 = vrot.lane.b32.xlu0 %v6539_v3, %s7375_s12 }
 0x5b3   :  { %v3590_v5 = vpop.permute.xlu1 %3589 }
 0x5b4   :  { %v3592_v1 = vpop.permute.xlu0 %3591 }
 0x5b5   :  { %v3593_v24 = vsel %vm323_vm9, %v3590_v5, %v3592_v1  ;;  %v3594_v16 = vsel %vm323_vm9, %v3592_v1, %v3590_v5 }
 0x5b7   :  { %v3679_v7 = vpop.permute.xlu1 %3678 }
 0x5b8   :  { %v3681_v42 = vpop.permute.xlu0 %3680 }
 0x5b9   :  { %v3682_v14 = vsel %vm417_vm10, %v3679_v7, %v3681_v42  ;;  %v3683_v17 = vsel %vm417_vm10, %v3681_v42, %v3679_v7 }
 0x5ba   :  { %v3684_v15 = vadd.f32 %v3683_v17, %v3594_v16  ;;  %v3685_v25 = vadd.f32 %v3682_v14, %v3593_v24 }
 0x5bb   :  { %v3763_v0 = vpop.permute.xlu1 %3762 }
 0x5bc   :  { %v3765_v2 = vpop.permute.xlu0 %3764 }
 0x5bd   :  { %v3766_v9 = vsel %vm417_vm10, %v3763_v0, %v3765_v2  ;;  %v3767_v26 = vsel %vm417_vm10, %v3765_v2, %v3763_v0 }
 0x5be   :  { %v3768_v4 = vadd.f32 %v3767_v26, %v3684_v15  ;;  %v3769_v47 = vadd.f32 %v3766_v9, %v3685_v25 }
 0x5bf   :  { %v3854_v31 = vpop.permute.xlu1 %3853 }
 0x5c0   :  { %v3856_v37 = vpop.permute.xlu0 %3855 }
 0x5c1   :  { %v3857_v32 = vsel %vm597_vm11, %v3854_v31, %v3856_v37  ;;  %v3858_v28 = vsel %vm597_vm11, %v3856_v37, %v3854_v31 }
 0x5c2   :  { %v3859_v56 = vadd.f32 %v3858_v28, %v3768_v4  ;;  %v3860_v18 = vadd.f32 %v3857_v32, %v3769_v47 }
 0x5c3   :  { %v4101_v50 = vpop.permute.xlu1 %4100 }
 0x5c4   :  { %v4103_v21 = vpop.permute.xlu0 %4102 }
 0x5c5   :  { %v4104_v6 = vsel %vm597_vm11, %v4101_v50, %v4103_v21  ;;  %v4105_v57 = vsel %vm597_vm11, %v4103_v21, %v4101_v50 }
 0x5c6   :  { %v7281_v61 = vadd.f32 %v4105_v57, %v3859_v56  ;;  %v7283_v22 = vadd.f32 %v4104_v6, %v3860_v18 }
 0x5c7   :  { %v4360_v58 = vpop.permute.xlu1 %4359 }
 0x5c8   :  { %v7282_v52 = vadd.f32 %v7281_v61, %v8721_v46  ;;  %v7284_v44 = vadd.f32 %v7283_v22, %v8724_v54  ;;  %v4362_v53 = vpop.permute.xlu0 %4361 }
 0x5c9   :  { %v4363_v59 = vsel %vm417_vm10, %v4360_v58, %v4362_v53  ;;  %v4364_v60 = vsel %vm417_vm10, %v4362_v53, %v4360_v58 }
 0x5ca   :  { %v8783_v33 = vcombine.low %v7282_v52, %v7284_v44  ;;  %v4269_v48 = vmul.f32 %v7282_v52, %v8207_v43  ;;  %v4270_v40 = vmul.f32 %v7284_v44, %v8209_v8 }
 0x5cb   :  { %v4448_v12 = vpop.permute.xlu1 %4447 }
 0x5cc   :  { %v4450_v19 = vpop.permute.xlu0 %4449  ;;  %v4271_v38 = vsel %vm1015_vm12, %v4269_v48, 0.0  ;;  %v4272_v41 = vsel %vm1015_vm12, %v4270_v40, 0.0 }
 0x5cd   :  { %v4273_v45 = vadd.f32 %v4272_v41, %v4271_v38  ;;  %v4451_v51 = vsel %vm417_vm10, %v4448_v12, %v4450_v19  ;;  %v4452_v46 = vsel %vm417_vm10, %v4450_v19, %v4448_v12 }
 0x5ce   :  { %v4453_v20 = vadd.f32 %v4452_v46, %v4364_v60  ;;  %v4454_v35 = vadd.f32 %v4451_v51, %v4363_v59 }
 0x5cf   :  { %v4531_v54 = vpop.permute.xlu1 %4530  ;;  %4274 = vadd.xlane.f32.xlu1 %v4273_v45 }
 0x5d0   :  { %v4533_v55 = vpop.permute.xlu0 %4532 }
 0x5d1   :  { %v4534_v62 = vsel %vm1288_vm13, %v4531_v54, %v4533_v55  ;;  %v4535_v63 = vsel %vm1288_vm13, %v4533_v55, %v4531_v54 }
 0x5d2   :  { %v4536_v10 = vadd.f32 %v4535_v63, %v4453_v20  ;;  %v4537_v3 = vadd.f32 %v4534_v62, %v4454_v35 }
 0x5d3   :  { %v4782_v29 = vpop.permute.xlu1 %4781 }
 0x5d4   :  { %v4784_v5 = vpop.permute.xlu0 %4783 }
 0x5d5   :  { %v4785_v1 = vsel %vm1549_vm8, %v4782_v29, %v4784_v5  ;;  %v4786_v7 = vsel %vm1549_vm8, %v4784_v5, %v4782_v29 }
 0x5d6   :  { %v7285_v42 = vadd.f32 %v4785_v1, %v4536_v10  ;;  %v7287_v0 = vadd.f32 %v4786_v7, %v4537_v3 }
 0x5d7   :  { %v5019_v2 = vpop.permute.xlu1 %5018 }
 0x5d8   :  { %v5021_v14 = vpop.permute.xlu0 %5020  ;;  %v7286_v17 = vadd.f32 %v7285_v42, %v8731_v34  ;;  %v7288_v24 = vadd.f32 %v7287_v0, %v8735_v39 }
 0x5d9   :  { %v5022_v16 = vsel %vm1549_vm8, %v5019_v2, %v5021_v14  ;;  %v5023_v9 = vsel %vm1549_vm8, %v5021_v14, %v5019_v2 }
 0x5da   :  { %v5024_v26 = vadd.f32 %v7286_v17, %v5022_v16  ;;  %v5025_v31 = vadd.f32 %v7288_v24, %v5023_v9 }
 0x5db   :  { %v5123_v39 = vpop.permute.xlu1 %5122 }
 0x5dc   :  { %v8811_v15 = vcombine.low %v5024_v26, %v5025_v31  ;;  %v5032_v25 = vmul.f32 %v5024_v26, %v8207_v43  ;;  %v5033_v37 = vmul.f32 %v5025_v31, %v8209_v8  ;;  %v5125_v4 = vpop.permute.xlu0 %5124 }
 0x5dd   :  { %v5126_v56 = vsel %vm597_vm11, %v5123_v39, %v5125_v4  ;;  %v5127_v18 = vsel %vm597_vm11, %v5125_v4, %v5123_v39 }
 0x5de   :  { %v5034_v32 = vsel %vm1015_vm12, %v5032_v25, 0.0  ;;  %v5035_v34 = vsel %vm1015_vm12, %v5033_v37, 0.0 }
 0x5df   :  { %v5036_v28 = vadd.f32 %v5035_v34, %v5034_v32 }
 0x5e1   :  { %5037 = vadd.xlane.f32.xlu0 %v5036_v28 }
 0x5f4   :  { %v5372_v47 = vpop.permute.xlu1 %5371 }
 0x5f5   :  { %v5374_v50 = vpop.permute.xlu0 %5373 }
 0x5f6   :  { %v5375_v21 = vsel %vm597_vm11, %v5372_v47, %v5374_v50  ;;  %v5376_v6 = vsel %vm597_vm11, %v5374_v50, %v5372_v47 }
 0x5f7   :  { %v7289_v57 = vadd.f32 %v5376_v6, %v5127_v18  ;;  %v7291_v61 = vadd.f32 %v5375_v21, %v5126_v56 }
 0x5f8   :  { %v5616_v22 = vpop.permute.xlu1 %5615 }
 0x5f9   :  { %v5618_v58 = vpop.permute.xlu0 %5617  ;;  %v7290_v52 = vadd.f32 %v7289_v57, %v8733_v27  ;;  %v7292_v44 = vadd.f32 %v7291_v61, %v8737_v23 }
 0x5fa   :  { %v5619_v53 = vsel %vm2406_vm14, %v5616_v22, %v5618_v58  ;;  %v5620_v48 = vsel %vm2406_vm14, %v5618_v58, %v5616_v22 }
 0x5fb   :  { %v5621_v41 = vadd.f32 %v7290_v52, %v5619_v53  ;;  %v5622_v45 = vadd.f32 %v7292_v44, %v5620_v48 }
 0x5fc   :  { %v5699_v40 = vpop.permute.xlu1 %5698 }
 0x5fd   :  { %v5701_v12 = vpop.permute.xlu0 %5700 }
 0x5fe   :  { %v5702_v19 = vsel %vm2491_vm15, %v5699_v40, %v5701_v12  ;;  %v5703_v38 = vsel %vm2491_vm15, %v5701_v12, %v5699_v40 }
 0x5ff   :  { %v5704_v27 = vadd.f32 %v5702_v19, %v5621_v41  ;;  %v5705_v46 = vadd.f32 %v5703_v38, %v5622_v45 }
 0x600   :  { %v5782_v51 = vpop.permute.xlu1 %5781 }
 0x601   :  { %v5784_v23 = vpop.permute.xlu0 %5783 }
 0x602   :  { %v5785_v54 = vsel %vm2491_vm15, %v5782_v51, %v5784_v23  ;;  %v5786_v55 = vsel %vm2491_vm15, %v5784_v23, %v5782_v51 }
 0x603   :  { %v5787_v59 = vadd.f32 %v5785_v54, %v5704_v27  ;;  %v5788_v60 = vadd.f32 %v5786_v55, %v5705_v46 }
 0x604   :  { %v6043_v62 = vpop.permute.xlu1 %6042 }
 0x605   :  { %v8839_v63 = vcombine.low %v5787_v59, %v5788_v60  ;;  %v6045_v20 = vpop.permute.xlu0 %6044  ;;  %v5795_v35 = vmul.f32 %v5787_v59, %v8207_v43  ;;  %v5796_v29 = vmul.f32 %v5788_v60, %v8209_v8 }
 0x606   :  { %v6046_v42 = vsel %vm1549_vm8, %v6043_v62, %v6045_v20  ;;  %v6047_v0 = vsel %vm1549_vm8, %v6045_v20, %v6043_v62 }
 0x607   :  { %v5797_v10 = vsel %vm1015_vm12, %v5795_v35, 0.0  ;;  %v5798_v3 = vsel %vm1015_vm12, %v5796_v29, 0.0  ;;  %v7293_v16 = vadd.f32 %v8751_v30, %v6046_v42  ;;  %v7294_v9 = vadd.f32 %v8753_v13, %v6047_v0 }
 0x608   :  { %v6294_v5 = vpop.permute.xlu1 %6293  ;;  %v5799_v1 = vadd.f32 %v5798_v3, %v5797_v10 }
 0x609   :  { %v6296_v7 = vpop.permute.xlu0 %6295 }
 0x60a   :  { %5800 = vadd.xlane.f32.xlu0 %v5799_v1  ;;  %v6297_v17 = vsel %vm1549_vm8, %v6294_v5, %v6296_v7  ;;  %v6298_v24 = vsel %vm1549_vm8, %v6296_v7, %v6294_v5 }
 0x60b   :  { %v6299_v37 = vadd.f32 %v7293_v16, %v6297_v17  ;;  %v6300_v32 = vadd.f32 %v7294_v9, %v6298_v24 }
 0x60c   :  { %v6377_v2 = vpop.permute.xlu1 %6376 }
 0x60d   :  { %v6379_v14 = vpop.permute.xlu0 %6378 }
 0x60e   :  { %v6380_v26 = vsel %vm2491_vm15, %v6377_v2, %v6379_v14  ;;  %v6381_v31 = vsel %vm2491_vm15, %v6379_v14, %v6377_v2 }
 0x60f   :  { %v6382_v4 = vadd.f32 %v6380_v26, %v6299_v37  ;;  %v6383_v30 = vadd.f32 %v6381_v31, %v6300_v32 }
 0x610   :  { %v6460_v25 = vpop.permute.xlu1 %6459 }
 0x611   :  { %v6462_v34 = vpop.permute.xlu0 %6461 }
 0x612   :  { %v6463_v28 = vsel %vm2491_vm15, %v6460_v25, %v6462_v34  ;;  %v6464_v39 = vsel %vm2491_vm15, %v6462_v34, %v6460_v25 }
 0x613   :  { %v6465_v13 = vadd.f32 %v6463_v28, %v6382_v4  ;;  %v6466_v50 = vadd.f32 %v6464_v39, %v6383_v30 }
 0x614   :  { %v6543_v47 = vpop.permute.xlu1 %6542 }
 0x615   :  { %v6545_v56 = vpop.permute.xlu0 %6544 }
 0x616   :  { %v6546_v18 = vsel %vm3358_vm0, %v6543_v47, %v6545_v56  ;;  %v6547_v21 = vsel %vm3358_vm0, %v6545_v56, %v6543_v47  ;;  %v6629_v47 = vld [vmem:[%s8923_s9] sm:$0xf] }
 0x617   :  { %v6548_v6 = vadd.f32 %v6546_v18, %v6465_v13  ;;  %v6549_v57 = vadd.f32 %v6547_v21, %v6466_v50  ;;  %v6631_v56 = vld [vmem:[%s8924_s10] sm:$0xf] }
 0x619   :  { %v8867_v61 = vcombine.low %v6548_v6, %v6549_v57  ;;  %v6556_v22 = vmul.f32 %v6548_v6, %v8207_v43  ;;  %v6557_v58 = vmul.f32 %v6549_v57, %v8209_v8 }
 0x61b   :  { %v6558_v52 = vsel %vm1015_vm12, %v6556_v22, 0.0  ;;  %v6559_v44 = vsel %vm1015_vm12, %v6557_v58, 0.0 }
 0x61c   :  { %v6560_v53 = vadd.f32 %v6559_v44, %v6558_v52 }
 0x61e   :  { %6561 = vadd.xlane.f32.xlu1 %v6560_v53 }
 0x65c   :  { %v4275_v40 = vpop.xlane.xlu1 %4274 }
 0x66e   :  { %v5038_v48 = vpop.xlane.xlu0 %5037 }
 0x66f   :  { %v5039_v19 = vadd.f32 %v5038_v48, %v4275_v40 }
 0x697   :  { %v5801_v12 = vpop.xlane.xlu0 %5800 }
 0x698   :  { %v5802_v49 = vadd.f32 %v5801_v12, %v5039_v19 }
 0x6ab   :  { %v6562_v38 = vpop.xlane.xlu1 %6561 }
 0x6ac   :  { %v6563_v41 = vadd.f32 %v6562_v38, %v5802_v49 }
 0x6ae   :  { %v6564_v45 = vmul.f32 0.001953125, %v6563_v41 }
 0x6b0   :  { %v6573_v51 = vrot.slane %v6564_v45, %v8316_v11 }
 0x6b2   :  { %v6588_v43 = vsub.f32 %v8811_v15, %v6573_v51  ;;  %v6575_v8 = vsub.f32 %v8783_v33, %v6573_v51  ;;  %v6614_v27 = vsub.f32 %v8867_v61, %v6573_v51  ;;  %v6601_v46 = vsub.f32 %v8839_v63, %v6573_v51 }
 0x6b4   :  { %v6589_v23 = vmul.f32 %v6588_v43, %v8320_v36  ;;  %v6576_v54 = vmul.f32 %v6575_v8, %v8320_v36  ;;  %v6615_v55 = vmul.f32 %v6614_v27, %v8320_v36  ;;  %v6602_v59 = vmul.f32 %v6601_v46, %v8320_v36 }
 0x6b6   :  { %v6590_v60 = vmul.f32 %v6589_v23, %v6589_v23  ;;  %v6577_v62 = vmul.f32 %v6576_v54, %v6576_v54  ;;  %v6616_v20 = vmul.f32 %v6615_v55, %v6615_v55  ;;  %v6603_v35 = vmul.f32 %v6602_v59, %v6602_v59 }
 0x6b8   :  { %v6592_v29 = vcombine.high %v6590_v60, %v6590_v60  ;;  %v6579_v10 = vcombine.high %v6577_v62, %v6577_v62  ;;  %v6618_v3 = vcombine.high %v6616_v20, %v6616_v20  ;;  %v6605_v5 = vcombine.high %v6603_v35, %v6603_v35 }
 0x6b9   :  { %v6594_v1 = vsel %vm1015_vm12, %v6590_v60, 0.0  ;;  %v6581_v42 = vsel %vm1015_vm12, %v6577_v62, 0.0  ;;  %v6620_v24 = vsel %vm1015_vm12, %v6616_v20, 0.0  ;;  %v6607_v16 = vsel %vm1015_vm12, %v6603_v35, 0.0 }
 0x6ba   :  { %v6595_v7 = vsel %vm1015_vm12, %v6592_v29, 0.0  ;;  %v6582_v0 = vsel %vm1015_vm12, %v6579_v10, 0.0  ;;  %v6621_v36 = vsel %vm1015_vm12, %v6618_v3, 0.0  ;;  %v6608_v17 = vsel %vm1015_vm12, %v6605_v5, 0.0 }
 0x6bb   :  { %v6596_v2 = vadd.f32 %v6595_v7, %v6594_v1  ;;  %v6583_v14 = vadd.f32 %v6582_v0, %v6581_v42  ;;  %v6622_v9 = vadd.f32 %v6621_v36, %v6620_v24  ;;  %v6609_v26 = vadd.f32 %v6608_v17, %v6607_v16 }
 0x6bd   :  { %6597 = vadd.xlane.f32.xlu1 %v6596_v2  ;;  %6584 = vadd.xlane.f32.xlu0 %v6583_v14 }
 0x6c1   :  { %6623 = vadd.xlane.f32.xlu1 %v6622_v9  ;;  %6610 = vadd.xlane.f32.xlu0 %v6609_v26 }
 0x74a   :  { %v6598_v31 = vpop.xlane.xlu1 %6597  ;;  %v6585_v25 = vpop.xlane.xlu0 %6584 }
 0x74b   :  { %v6599_v37 = vadd.f32 %v6598_v31, %v6585_v25 }
 0x74e   :  { %v6611_v32 = vpop.xlane.xlu0 %6610  ;;  %v6624_v28 = vpop.xlane.xlu1 %6623 }
 0x74f   :  { %v6612_v34 = vadd.f32 %v6611_v32, %v6599_v37 }
 0x751   :  { %v6625_v39 = vadd.f32 %v6624_v28, %v6612_v34 }
 0x753   :  { %v6626_v4 = vmul.f32 0.001953125, %v6625_v39 }
 0x755   :  { %v6627_v30 = vadd.f32 1e-05, %v6626_v4 }
 0x757   :  { %7361 = vrsqrt.f32 %v6627_v30 }
 0x761   :  { %v7362_v13 = vpop.eup %7361 }
 0x762   :  { %v6630_v50 = vmul.f32 %v7362_v13, %v6629_v47 }
 0x764   :  { %6636 = vperm.xlu0 %7357, %v6630_v50   ;;  %v6632_v18 = vmul.f32 %v6630_v50, %v6564_v45 }
 0x766   :  { %v6633_v21 = vsub.f32 %v6631_v56, %v6632_v18 }
 0x768   :  { %6649 = vperm.xlu1 %7358, %v6633_v21  }
 0x7e3   :  { %v6637_v6 = vpop.permute.xlu0 %6636 }
 0x7e4   :  { %v6644_v57 = vrot.slane %v6637_v6, %v8316_v11 }
 0x7e6   :  { %v6646_v22 = vmul.f32 %v6644_v57, %v8783_v33  ;;  %v6663_v52 = vmul.f32 %v6644_v57, %v8811_v15  ;;  %v6668_v44 = vmul.f32 %v6644_v57, %v8839_v63  ;;  %v6673_v53 = vmul.f32 %v6644_v57, %v8867_v61 }
 0x7e7   :  { %v6650_v58 = vpop.permute.xlu1 %6649 }
 0x7e8   :  { %v6657_v48 = vrot.slane %v6650_v58, %v8316_v11 }
 0x7ea   :  { %v6659_v40 = vadd.f32 %v6657_v48, %v6646_v22  ;;  %v6664_v12 = vadd.f32 %v6663_v52, %v6657_v48  ;;  %v6669_v19 = vadd.f32 %v6668_v44, %v6657_v48  ;;  %v6674_v49 = vadd.f32 %v6673_v53, %v6657_v48 }
 0x7ec   :  { %v6660_v38 = vmax.f32 %v6659_v40, 0.0  ;;  %v6665_v41 = vmax.f32 %v6664_v12, 0.0  ;;  %v6670_v45 = vmax.f32 %v6669_v19, 0.0  ;;  %v6675_v51 = vmax.f32 %v6674_v49, 0.0 }
 0x7ee   :  { %6661 = vst [vmem:[%s8925_s11] sm:$0xff] %v6660_v38  ;;  %7024 = vst [vmem:[%s8925_s11 + $0x8] sm:$0xff] %v6665_v41 }
 0x7ef   :  { %7026 = vst [vmem:[%s8925_s11 + $0x10] sm:$0xff] %v6670_v45  ;;  %7028 = vst [vmem:[%s8925_s11 + $0x18] sm:$0xff] %v6675_v51 }

</bundles_post_ra>
